<compile_context>
chip_gen: v7x
topology: tpu7x:2x2x1
jax: 0.10.0
libtpu: 0.0.40
codegen_flags: <defaults>
</compile_context>

<pallas_src>
import functools

import jax
import jax.numpy as jnp
from jax.experimental import pallas as pl
from jax.experimental.pallas import tpu as pltpu

BN_EPS = 1e-5
LANE = 128
VMEM_LIMIT = 32 * 1024 * 1024


def _round_up(x, m):
    return (x + m - 1) // m * m


# ---------------------------------------------------------------------------
# Pallas kernels
# ---------------------------------------------------------------------------
def _deconv_kernel(x_ref, w_ref, b_ref, o_ref):
    # x: (TILE_M, Cin) f32   w: (Cin, 8*Cout_p) bf16   b: (1, 8*Cout_p) f32
    x = x_ref[...].astype(jnp.bfloat16)
    o_ref[...] = (
        jnp.dot(x, w_ref[...], preferred_element_type=jnp.float32) + b_ref[...]
    )


def _conv3_kernel(x0_ref, x1_ref, x2_ref, w_ref, b_ref, o_ref, st_ref, *, Ho, Wo):
    # x{kd}_ref: (Ho+2, Wo+2, Cin) halo slab at depth d+kd (padded input)
    # w_ref:     (27, Cin, Cout_p) bf16, tap-major
    # b_ref:     (1, Cout_p)
    # o_ref:     (Ho*Wo, Cout_p) raw conv output for this (n, d) slice
    # st_ref:    (8, Cout_p) row0 = sum, row1 = sum of squares (partial BN stats)
    cin = w_ref.shape[1]
    cout = w_ref.shape[2]
    acc = jnp.zeros((Ho * Wo, cout), jnp.float32)
    slabs = (x0_ref, x1_ref, x2_ref)
    for kd in range(3):
        slab = slabs[kd][...]                       # (Ho+2, Wo+2, Cin)
        for kh in range(3):
            for kw in range(3):
                win = slab[kh:kh + Ho, kw:kw + Wo, :].reshape(Ho * Wo, cin)
                wk = w_ref[(kd * 3 + kh) * 3 + kw]  # (Cin, Cout_p) bf16
                acc = acc + jnp.dot(
                    win.astype(jnp.bfloat16), wk,
                    preferred_element_type=jnp.float32)
    acc = acc + b_ref[...]
    o_ref[...] = acc
    s = jnp.sum(acc, axis=0, keepdims=True)
    q = jnp.sum(acc * acc, axis=0, keepdims=True)
    st_ref[...] = jnp.concatenate(
        [s, q, jnp.zeros((6, cout), jnp.float32)], axis=0)


def _bn_relu_kernel(y_ref, scale_ref, shift_ref, o_ref):
    # y: (TILE_M, Cout_p)  scale/shift: (1, Cout_p)
    o_ref[...] = jnp.maximum(y_ref[...] * scale_ref[...] + shift_ref[...], 0.0)


# ---------------------------------------------------------------------------
# Wrappers
# ---------------------------------------------------------------------------
def deconv_k2s2(x_ndhwc, w, b, tile_m=512):
    """ConvTranspose3d(kernel=2, stride=2, pad=0).
    x: (N,D,H,W,Cin); w: torch layout (Cin, Cout, 2,2,2); b: (Cout,)."""
    N, D, H, W, Cin = x_ndhwc.shape
    Cout = w.shape[1]
    Cout_p = _round_up(Cout, 16)           # 8*Cout_p is a multiple of 128 (lane-dense)
    Kcols = 8 * Cout_p

    M = N * D * H * W
    tile_m = min(tile_m, _round_up(M, 8))
    Mp = _round_up(M, tile_m)

    x2 = x_ndhwc.reshape(M, Cin)
    if Mp != M:
        x2 = jnp.pad(x2, ((0, Mp - M), (0, 0)))

    # (Cin, Cout, 2,2,2) -> (Cin, 2,2,2, Cout_p) -> (Cin, 8*Cout_p), K-pos major
    w_p = jnp.pad(w, ((0, 0), (0, Cout_p - Cout), (0, 0), (0, 0), (0, 0)))
    w2 = jnp.transpose(w_p, (0, 2, 3, 4, 1)).reshape(Cin, Kcols).astype(jnp.bfloat16)
    b2 = jnp.tile(jnp.pad(b, (0, Cout_p - Cout)), 8).reshape(1, Kcols)

    y = pl.pallas_call(
        _deconv_kernel,
        out_shape=jax.ShapeDtypeStruct((Mp, Kcols), jnp.float32),
        grid=(Mp // tile_m,),
        in_specs=[
            pl.BlockSpec((tile_m, Cin), lambda i: (i, 0)),
            pl.BlockSpec((Cin, Kcols), lambda i: (0, 0)),
            pl.BlockSpec((1, Kcols), lambda i: (0, 0)),
        ],
        out_specs=pl.BlockSpec((tile_m, Kcols), lambda i: (i, 0)),
        compiler_params=pltpu.CompilerParams(
            dimension_semantics=("parallel",),
            vmem_limit_bytes=VMEM_LIMIT),
    )(x2, w2, b2)

    # out[n, 2d+i, 2h+j, 2w+k, c]
    # TODO(synk): write interleaved output directly from the kernel / fuse with conv1
    #             to remove this XLA transpose + the concat round trip.
    y = y[:M].reshape(N, D, H, W, 2, 2, 2, Cout_p)[..., :Cout]
    y = jnp.transpose(y, (0, 1, 4, 2, 5, 3, 6, 7)).reshape(N, 2 * D, 2 * H, 2 * W, Cout)
    return y


def conv3_raw_and_stats(x_ndhwc, w, b, cout_p):
    """Conv3d(k=3, pad=1): raw (un-normalized) output + per-(n,d) partial BN stats.
    x: (N,Do,Ho,Wo,Cin); w: torch layout (Cout, Cin, 3,3,3)."""
    N, Do, Ho, Wo, Cin = x_ndhwc.shape
    Cout = w.shape[0]

    xp = jnp.pad(x_ndhwc, ((0, 0), (1, 1), (1, 1), (1, 1), (0, 0)))

    # (Cout, Cin, 3,3,3) -> (3,3,3, Cin, Cout_p) -> (27, Cin, Cout_p), tap-major
    w_p = jnp.pad(w, ((0, cout_p - Cout), (0, 0), (0, 0), (0, 0), (0, 0)))
    w2 = jnp.transpose(w_p, (2, 3, 4, 1, 0)).reshape(27, Cin, cout_p).astype(jnp.bfloat16)
    b2 = jnp.pad(b, (0, cout_p - Cout)).reshape(1, cout_p)

    kernel = functools.partial(_conv3_kernel, Ho=Ho, Wo=Wo)

    def slab_spec(kd):
        # depth-1 blocks => block index along D is an element index, giving the
        # d+kd halo slice without materializing im2col in HBM.
        return pl.BlockSpec((None, None, Ho + 2, Wo + 2, Cin),
                            lambda n, d, kd=kd: (n, d + kd, 0, 0, 0))

    flops = 2 * N * Do * Ho * Wo * 27 * Cin * cout_p
    bytes_accessed = 4 * (3 * N * (Do + 2) * (Ho + 2) * (Wo + 2) * Cin
                          + N * Do * Ho * Wo * cout_p)

    conv_raw, stats = pl.pallas_call(
        kernel,
        out_shape=(jax.ShapeDtypeStruct((N, Do, Ho * Wo, cout_p), jnp.float32),
                   jax.ShapeDtypeStruct((N, Do, 8, cout_p), jnp.float32)),
        grid=(N, Do),
        in_specs=[
            slab_spec(0), slab_spec(1), slab_spec(2),
            pl.BlockSpec((27, Cin, cout_p), lambda n, d: (0, 0, 0)),
            pl.BlockSpec((1, cout_p), lambda n, d: (0, 0)),
        ],
        out_specs=(
            pl.BlockSpec((None, None, Ho * Wo, cout_p), lambda n, d: (n, d, 0, 0)),
            pl.BlockSpec((None, None, 8, cout_p), lambda n, d: (n, d, 0, 0)),
        ),
        compiler_params=pltpu.CompilerParams(
            dimension_semantics=("parallel", "parallel"),
            vmem_limit_bytes=VMEM_LIMIT),
        cost_estimate=pl.CostEstimate(
            flops=flops, transcendentals=0, bytes_accessed=bytes_accessed),
    )(xp, xp, xp, w2, b2)
    return conv_raw, stats


def bn_relu(conv_raw, stats, gamma, beta, cout, tile_m=512):
    """Pass 2 of BatchNorm3d (training stats) + ReLU, tiled over rows."""
    N, Do, HW, cout_p = conv_raw.shape
    count = N * Do * HW

    s = jnp.sum(stats[:, :, 0, :], axis=(0, 1))            # (cout_p,)
    q = jnp.sum(stats[:, :, 1, :], axis=(0, 1))
    mean = s / count
    var = q / count - mean * mean                           # biased batch variance

    g = jnp.pad(gamma, (0, cout_p - cout), constant_values=1.0)
    bt = jnp.pad(beta, (0, cout_p - cout))
    scale = g * jax.lax.rsqrt(var + BN_EPS)
    shift = bt - mean * scale

    M = count
    tile_m = min(tile_m, _round_up(M, 8))
    Mp = _round_up(M, tile_m)
    y2 = conv_raw.reshape(M, cout_p)
    if Mp != M:
        y2 = jnp.pad(y2, ((0, Mp - M), (0, 0)))

    out = pl.pallas_call(
        _bn_relu_kernel,
        out_shape=jax.ShapeDtypeStruct((Mp, cout_p), jnp.float32),
        grid=(Mp // tile_m,),
        in_specs=[
            pl.BlockSpec((tile_m, cout_p), lambda i: (i, 0)),
            pl.BlockSpec((1, cout_p), lambda i: (0, 0)),
            pl.BlockSpec((1, cout_p), lambda i: (0, 0)),
        ],
        out_specs=pl.BlockSpec((tile_m, cout_p), lambda i: (i, 0)),
        compiler_params=pltpu.CompilerParams(
            dimension_semantics=("parallel",),
            vmem_limit_bytes=VMEM_LIMIT),
    )(y2, scale.reshape(1, cout_p), shift.reshape(1, cout_p))

    return out[:M, :cout].reshape(N, Do, -1, cout)


def up_block_forward(params, skip_ncdhw, x_ncdhw):
    """Equivalent of UpBlock.forward(skip, x) with NCDHW inputs/outputs."""
    skip = jnp.transpose(skip_ncdhw, (0, 2, 3, 4, 1))  # -> NDHWC
    x = jnp.transpose(x_ncdhw, (0, 2, 3, 4, 1))        # -> NDHWC

    out_ch = params["deconv_w"].shape[1]
    cout_p = _round_up(out_ch, LANE)                   # lane-dense conv output width

    deconv = deconv_k2s2(x, params["deconv_w"], params["deconv_b"])
    concat = jnp.concatenate([deconv, skip], axis=-1)  # torch.cat(dim=1) in NCDHW

    N, Do, Ho, Wo, _ = concat.shape

    raw1, st1 = conv3_raw_and_stats(concat, params["conv1_w"], params["conv1_b"], cout_p)
    h1 = bn_relu(raw1, st1, params["bn1_g"], params["bn1_b"], out_ch)
    h1 = h1.reshape(N, Do, Ho, Wo, out_ch)

    raw2, st2 = conv3_raw_and_stats(h1, params["conv2_w"], params["conv2_b"], cout_p)
    h2 = bn_relu(raw2, st2, params["bn2_g"], params["bn2_b"], out_ch)
    h2 = h2.reshape(N, Do, Ho, Wo, out_ch)

    return jnp.transpose(h2, (0, 4, 1, 2, 3))          # back to NCDHW


def init_params(key, in_channels, out_channels):
    ks = jax.random.split(key, 6)
    return {
        # ConvTranspose3d weight: (Cin, Cout, 2, 2, 2)
        "deconv_w": 0.1 * jax.random.normal(ks[0], (in_channels, out_channels, 2, 2, 2), jnp.float32),
        "deconv_b": 0.1 * jax.random.normal(ks[1], (out_channels,), jnp.float32),
        # Conv3d weights: (Cout, Cin, 3, 3, 3)
        "conv1_w": 0.1 * jax.random.normal(ks[2], (out_channels, in_channels, 3, 3, 3), jnp.float32),
        "conv1_b": 0.1 * jax.random.normal(ks[3], (out_channels,), jnp.float32),
        "bn1_g": jnp.ones((out_channels,), jnp.float32),
        "bn1_b": jnp.zeros((out_channels,), jnp.float32),
        "conv2_w": 0.1 * jax.random.normal(ks[4], (out_channels, out_channels, 3, 3, 3), jnp.float32),
        "conv2_b": 0.1 * jax.random.normal(ks[5], (out_channels,), jnp.float32),
        "bn2_g": jnp.ones((out_channels,), jnp.float32),
        "bn2_b": jnp.zeros((out_channels,), jnp.float32),
    }


if __name__ == "__main__":
    IN_CH, OUT_CH = 8, 4           # concat(deconv[OUT_CH], skip[IN_CH-OUT_CH]) == IN_CH
    N, D, H, W = 2, 4, 4, 4        # x spatial; skip / output spatial is 2x

    key = jax.random.PRNGKey(0)
    k_skip, k_x, k_p = jax.random.split(key, 3)

    x = jax.random.normal(k_x, (N, IN_CH, D, H, W), jnp.float32)                    # NCDHW
    skip = jax.random.normal(k_skip, (N, IN_CH - OUT_CH, 2 * D, 2 * H, 2 * W), jnp.float32)
    params = init_params(k_p, IN_CH, OUT_CH)

    out = jax.jit(up_block_forward)(params, skip, x)
    out = jax.block_until_ready(out)

    assert out.shape == (N, OUT_CH, 2 * D, 2 * H, 2 * W), out.shape
    assert bool(jnp.all(jnp.isfinite(out)))
    print("KERNEL_OK")
</pallas_src>

<mosaic_0001>
module attributes {stable_mosaic.version = 11 : i64} {
  func.func @_deconv_kernel(%arg0: i32, %arg1: memref<128x8xf32, #tpu.memory_space<vmem>>, %arg2: memref<8x128xbf16, #tpu.memory_space<vmem>>, %arg3: memref<1x128xf32, #tpu.memory_space<vmem>>, %arg4: memref<128x128xf32, #tpu.memory_space<vmem>>) attributes {dimension_semantics = [#tpu.dimension_semantics<parallel>], iteration_bounds = array<i64: 1>, scalar_prefetch = 0 : i64, scratch_operands = 0 : i64, tpu.core_type = #tpu.core_type<tc>, window_params = [{transform_indices = @transform_0, window_bounds = array<i64: 128, 8>}, {pipeline_mode = #tpu.pipeline_mode<synchronous>, transform_indices = @transform_1, window_bounds = array<i64: 8, 128>}, {pipeline_mode = #tpu.pipeline_mode<synchronous>, transform_indices = @transform_2, window_bounds = array<i64: 1, 128>}, {transform_indices = @transform_3, window_bounds = array<i64: 128, 128>}]} {
    %c0 = arith.constant 0 : index
    %c0_0 = arith.constant 0 : index
    %0 = vector.load %arg1[%c0, %c0_0] : memref<128x8xf32, #tpu.memory_space<vmem>>, vector<128x8xf32>
    %1 = arith.truncf %0 : vector<128x8xf32> to vector<128x8xbf16>
    %c0_1 = arith.constant 0 : index
    %c0_2 = arith.constant 0 : index
    %2 = vector.load %arg2[%c0_1, %c0_2] : memref<8x128xbf16, #tpu.memory_space<vmem>>, vector<8x128xbf16>
    %cst = arith.constant dense<0.000000e+00> : vector<128x128xf32>
    %3 = tpu.matmul %1, %2, %cst {dimension_numbers = #tpu.dot_dimension_numbers<[1], [0], [0], [1], [0, 0, 1, 1], [], []>} : vector<128x8xbf16>, vector<8x128xbf16>, vector<128x128xf32> -> vector<128x128xf32>
    %c0_3 = arith.constant 0 : index
    %c0_4 = arith.constant 0 : index
    %4 = vector.load %arg3[%c0_3, %c0_4] : memref<1x128xf32, #tpu.memory_space<vmem>>, vector<1x128xf32>
    %5 = vector.broadcast %4 : vector<1x128xf32> to vector<128x128xf32>
    %6 = arith.addf %3, %5 : vector<128x128xf32>
    %c0_5 = arith.constant 0 : index
    %c0_6 = arith.constant 0 : index
    %7 = vector.load %arg4[%c0_5, %c0_6] : memref<128x128xf32, #tpu.memory_space<vmem>>, vector<128x128xf32>
    tpu.vector_store %arg4[%c0_5, %c0_6], %6 {strides = array<i32>} : memref<128x128xf32, #tpu.memory_space<vmem>>, vector<128x128xf32>,
    return
  }
  func.func @transform_0(%arg0: i32) -> (i32, i32) {
    %c0_i32 = arith.constant 0 : i32
    %c0_i32_0 = arith.constant 0 : i32
    return %arg0, %c0_i32 : i32, i32
  }
  func.func @transform_1(%arg0: i32) -> (i32, i32) {
    %c0_i32 = arith.constant 0 : i32
    %c0_i32_0 = arith.constant 0 : i32
    %c0_i32_1 = arith.constant 0 : i32
    return %c0_i32, %c0_i32_0 : i32, i32
  }
  func.func @transform_2(%arg0: i32) -> (i32, i32) {
    %c0_i32 = arith.constant 0 : i32
    %c0_i32_0 = arith.constant 0 : i32
    %c0_i32_1 = arith.constant 0 : i32
    return %c0_i32, %c0_i32_0 : i32, i32
  }
  func.func @transform_3(%arg0: i32) -> (i32, i32) {
    %c0_i32 = arith.constant 0 : i32
    %c0_i32_0 = arith.constant 0 : i32
    return %arg0, %c0_i32 : i32, i32
  }
}

module attributes {stable_mosaic.version = 11 : i64} {
  func.func @_conv3_kernel(%arg0: i32, %arg1: i32, %arg2: memref<1x1x10x10x8xf32, #tpu.memory_space<vmem>>, %arg3: memref<1x1x10x10x8xf32, #tpu.memory_space<vmem>>, %arg4: memref<1x1x10x10x8xf32, #tpu.memory_space<vmem>>, %arg5: memref<27x8x128xbf16, #tpu.memory_space<vmem>>, %arg6: memref<1x128xf32, #tpu.memory_space<vmem>>, %arg7: memref<1x1x64x128xf32, #tpu.memory_space<vmem>>, %arg8: memref<1x1x8x128xf32, #tpu.memory_space<vmem>>) attributes {dimension_semantics = [#tpu.dimension_semantics<parallel>, #tpu.dimension_semantics<parallel>], iteration_bounds = array<i64: 2, 8>, scalar_prefetch = 0 : i64, scratch_operands = 0 : i64, tpu.core_type = #tpu.core_type<tc>, window_params = [{transform_indices = @transform_0, window_bounds = array<i64: 1, 1, 10, 10, 8>}, {transform_indices = @transform_1, window_bounds = array<i64: 1, 1, 10, 10, 8>}, {transform_indices = @transform_2, window_bounds = array<i64: 1, 1, 10, 10, 8>}, {pipeline_mode = #tpu.pipeline_mode<synchronous>, transform_indices = @transform_3, window_bounds = array<i64: 27, 8, 128>}, {pipeline_mode = #tpu.pipeline_mode<synchronous>, transform_indices = @transform_4, window_bounds = array<i64: 1, 128>}, {transform_indices = @transform_5, window_bounds = array<i64: 1, 1, 64, 128>}, {transform_indices = @transform_6, window_bounds = array<i64: 1, 1, 8, 128>}]} {
    %cst = arith.constant 0.000000e+00 : f32
    %0 = vector.broadcast %cst : f32 to vector<64x128xf32>
    %c0 = arith.constant 0 : index
    %c0_0 = arith.constant 0 : index
    %c0_1 = arith.constant 0 : index
    %c0_2 = arith.constant 0 : index
    %c0_3 = arith.constant 0 : index
    %1 = vector.load %arg2[%c0, %c0_0, %c0_1, %c0_2, %c0_3] : memref<1x1x10x10x8xf32, #tpu.memory_space<vmem>>, vector<1x1x10x10x8xf32>
    %2 = vector.shape_cast %1 : vector<1x1x10x10x8xf32> to vector<10x10x8xf32>
    %3 = vector.extract_strided_slice %2 {offsets = [0, 0, 0], sizes = [8, 8, 8], strides = [1, 1, 1]} : vector<10x10x8xf32> to vector<8x8x8xf32>
    %4 = vector.shape_cast %3 : vector<8x8x8xf32> to vector<64x8xf32>
    %c0_4 = arith.constant 0 : index
    %c0_5 = arith.constant 0 : index
    %c0_6 = arith.constant 0 : index
    %5 = vector.load %arg5[%c0_4, %c0_5, %c0_6] : memref<27x8x128xbf16, #tpu.memory_space<vmem>>, vector<1x8x128xbf16>
    %6 = vector.shape_cast %5 : vector<1x8x128xbf16> to vector<8x128xbf16>
    %7 = arith.truncf %4 : vector<64x8xf32> to vector<64x8xbf16>
    %cst_7 = arith.constant dense<0.000000e+00> : vector<64x128xf32>
    %8 = tpu.matmul %7, %6, %cst_7 {dimension_numbers = #tpu.dot_dimension_numbers<[1], [0], [0], [1], [0, 0, 1, 1], [], []>} : vector<64x8xbf16>, vector<8x128xbf16>, vector<64x128xf32> -> vector<64x128xf32>
    %9 = arith.addf %0, %8 : vector<64x128xf32>
    %10 = vector.extract_strided_slice %2 {offsets = [0, 1, 0], sizes = [8, 8, 8], strides = [1, 1, 1]} : vector<10x10x8xf32> to vector<8x8x8xf32>
    %11 = vector.shape_cast %10 : vector<8x8x8xf32> to vector<64x8xf32>
    %c1 = arith.constant 1 : index
    %c0_8 = arith.constant 0 : index
    %c0_9 = arith.constant 0 : index
    %12 = vector.load %arg5[%c1, %c0_8, %c0_9] : memref<27x8x128xbf16, #tpu.memory_space<vmem>>, vector<1x8x128xbf16>
    %13 = vector.shape_cast %12 : vector<1x8x128xbf16> to vector<8x128xbf16>
    %14 = arith.truncf %11 : vector<64x8xf32> to vector<64x8xbf16>
    %cst_10 = arith.constant dense<0.000000e+00> : vector<64x128xf32>
    %15 = tpu.matmul %14, %13, %cst_10 {dimension_numbers = #tpu.dot_dimension_numbers<[1], [0], [0], [1], [0, 0, 1, 1], [], []>} : vector<64x8xbf16>, vector<8x128xbf16>, vector<64x128xf32> -> vector<64x128xf32>
    %16 = arith.addf %9, %15 : vector<64x128xf32>
    %17 = vector.extract_strided_slice %2 {offsets = [0, 2, 0], sizes = [8, 8, 8], strides = [1, 1, 1]} : vector<10x10x8xf32> to vector<8x8x8xf32>
    %18 = vector.shape_cast %17 : vector<8x8x8xf32> to vector<64x8xf32>
    %c2 = arith.constant 2 : index
    %c0_11 = arith.constant 0 : index
    %c0_12 = arith.constant 0 : index
    %19 = vector.load %arg5[%c2, %c0_11, %c0_12] : memref<27x8x128xbf16, #tpu.memory_space<vmem>>, vector<1x8x128xbf16>
    %20 = vector.shape_cast %19 : vector<1x8x128xbf16> to vector<8x128xbf16>
    %21 = arith.truncf %18 : vector<64x8xf32> to vector<64x8xbf16>
    %cst_13 = arith.constant dense<0.000000e+00> : vector<64x128xf32>
    %22 = tpu.matmul %21, %20, %cst_13 {dimension_numbers = #tpu.dot_dimension_numbers<[1], [0], [0], [1], [0, 0, 1, 1], [], []>} : vector<64x8xbf16>, vector<8x128xbf16>, vector<64x128xf32> -> vector<64x128xf32>
    %23 = arith.addf %16, %22 : vector<64x128xf32>
    %24 = vector.extract_strided_slice %2 {offsets = [1, 0, 0], sizes = [8, 8, 8], strides = [1, 1, 1]} : vector<10x10x8xf32> to vector<8x8x8xf32>
    %25 = vector.shape_cast %24 : vector<8x8x8xf32> to vector<64x8xf32>
    %c3 = arith.constant 3 : index
    %c0_14 = arith.constant 0 : index
    %c0_15 = arith.constant 0 : index
    %26 = vector.load %arg5[%c3, %c0_14, %c0_15] : memref<27x8x128xbf16, #tpu.memory_space<vmem>>, vector<1x8x128xbf16>
    %27 = vector.shape_cast %26 : vector<1x8x128xbf16> to vector<8x128xbf16>
    %28 = arith.truncf %25 : vector<64x8xf32> to vector<64x8xbf16>
    %cst_16 = arith.constant dense<0.000000e+00> : vector<64x128xf32>
    %29 = tpu.matmul %28, %27, %cst_16 {dimension_numbers = #tpu.dot_dimension_numbers<[1], [0], [0], [1], [0, 0, 1, 1], [], []>} : vector<64x8xbf16>, vector<8x128xbf16>, vector<64x128xf32> -> vector<64x128xf32>
    %30 = arith.addf %23, %29 : vector<64x128xf32>
    %31 = vector.extract_strided_slice %2 {offsets = [1, 1, 0], sizes = [8, 8, 8], strides = [1, 1, 1]} : vector<10x10x8xf32> to vector<8x8x8xf32>
    %32 = vector.shape_cast %31 : vector<8x8x8xf32> to vector<64x8xf32>
    %c4 = arith.constant 4 : index
    %c0_17 = arith.constant 0 : index
    %c0_18 = arith.constant 0 : index
    %33 = vector.load %arg5[%c4, %c0_17, %c0_18] : memref<27x8x128xbf16, #tpu.memory_space<vmem>>, vector<1x8x128xbf16>
    %34 = vector.shape_cast %33 : vector<1x8x128xbf16> to vector<8x128xbf16>
    %35 = arith.truncf %32 : vector<64x8xf32> to vector<64x8xbf16>
    %cst_19 = arith.constant dense<0.000000e+00> : vector<64x128xf32>
    %36 = tpu.matmul %35, %34, %cst_19 {dimension_numbers = #tpu.dot_dimension_numbers<[1], [0], [0], [1], [0, 0, 1, 1], [], []>} : vector<64x8xbf16>, vector<8x128xbf16>, vector<64x128xf32> -> vector<64x128xf32>
    %37 = arith.addf %30, %36 : vector<64x128xf32>
    %38 = vector.extract_strided_slice %2 {offsets = [1, 2, 0], sizes = [8, 8, 8], strides = [1, 1, 1]} : vector<10x10x8xf32> to vector<8x8x8xf32>
    %39 = vector.shape_cast %38 : vector<8x8x8xf32> to vector<64x8xf32>
    %c5 = arith.constant 5 : index
    %c0_20 = arith.constant 0 : index
    %c0_21 = arith.constant 0 : index
    %40 = vector.load %arg5[%c5, %c0_20, %c0_21] : memref<27x8x128xbf16, #tpu.memory_space<vmem>>, vector<1x8x128xbf16>
    %41 = vector.shape_cast %40 : vector<1x8x128xbf16> to vector<8x128xbf16>
    %42 = arith.truncf %39 : vector<64x8xf32> to vector<64x8xbf16>
    %cst_22 = arith.constant dense<0.000000e+00> : vector<64x128xf32>
    %43 = tpu.matmul %42, %41, %cst_22 {dimension_numbers = #tpu.dot_dimension_numbers<[1], [0], [0], [1], [0, 0, 1, 1], [], []>} : vector<64x8xbf16>, vector<8x128xbf16>, vector<64x128xf32> -> vector<64x128xf32>
    %44 = arith.addf %37, %43 : vector<64x128xf32>
    %45 = vector.extract_strided_slice %2 {offsets = [2, 0, 0], sizes = [8, 8, 8], strides = [1, 1, 1]} : vector<10x10x8xf32> to vector<8x8x8xf32>
    %46 = vector.shape_cast %45 : vector<8x8x8xf32> to vector<64x8xf32>
    %c6 = arith.constant 6 : index
    %c0_23 = arith.constant 0 : index
    %c0_24 = arith.constant 0 : index
    %47 = vector.load %arg5[%c6, %c0_23, %c0_24] : memref<27x8x128xbf16, #tpu.memory_space<vmem>>, vector<1x8x128xbf16>
    %48 = vector.shape_cast %47 : vector<1x8x128xbf16> to vector<8x128xbf16>
    %49 = arith.truncf %46 : vector<64x8xf32> to vector<64x8xbf16>
    %cst_25 = arith.constant dense<0.000000e+00> : vector<64x128xf32>
    %50 = tpu.matmul %49, %48, %cst_25 {dimension_numbers = #tpu.dot_dimension_numbers<[1], [0], [0], [1], [0, 0, 1, 1], [], []>} : vector<64x8xbf16>, vector<8x128xbf16>, vector<64x128xf32> -> vector<64x128xf32>
    %51 = arith.addf %44, %50 : vector<64x128xf32>
    %52 = vector.extract_strided_slice %2 {offsets = [2, 1, 0], sizes = [8, 8, 8], strides = [1, 1, 1]} : vector<10x10x8xf32> to vector<8x8x8xf32>
    %53 = vector.shape_cast %52 : vector<8x8x8xf32> to vector<64x8xf32>
    %c7 = arith.constant 7 : index
    %c0_26 = arith.constant 0 : index
    %c0_27 = arith.constant 0 : index
    %54 = vector.load %arg5[%c7, %c0_26, %c0_27] : memref<27x8x128xbf16, #tpu.memory_space<vmem>>, vector<1x8x128xbf16>
    %55 = vector.shape_cast %54 : vector<1x8x128xbf16> to vector<8x128xbf16>
    %56 = arith.truncf %53 : vector<64x8xf32> to vector<64x8xbf16>
    %cst_28 = arith.constant dense<0.000000e+00> : vector<64x128xf32>
    %57 = tpu.matmul %56, %55, %cst_28 {dimension_numbers = #tpu.dot_dimension_numbers<[1], [0], [0], [1], [0, 0, 1, 1], [], []>} : vector<64x8xbf16>, vector<8x128xbf16>, vector<64x128xf32> -> vector<64x128xf32>
    %58 = arith.addf %51, %57 : vector<64x128xf32>
    %59 = vector.extract_strided_slice %2 {offsets = [2, 2, 0], sizes = [8, 8, 8], strides = [1, 1, 1]} : vector<10x10x8xf32> to vector<8x8x8xf32>
    %60 = vector.shape_cast %59 : vector<8x8x8xf32> to vector<64x8xf32>
    %c8 = arith.constant 8 : index
    %c0_29 = arith.constant 0 : index
    %c0_30 = arith.constant 0 : index
    %61 = vector.load %arg5[%c8, %c0_29, %c0_30] : memref<27x8x128xbf16, #tpu.memory_space<vmem>>, vector<1x8x128xbf16>
    %62 = vector.shape_cast %61 : vector<1x8x128xbf16> to vector<8x128xbf16>
    %63 = arith.truncf %60 : vector<64x8xf32> to vector<64x8xbf16>
    %cst_31 = arith.constant dense<0.000000e+00> : vector<64x128xf32>
    %64 = tpu.matmul %63, %62, %cst_31 {dimension_numbers = #tpu.dot_dimension_numbers<[1], [0], [0], [1], [0, 0, 1, 1], [], []>} : vector<64x8xbf16>, vector<8x128xbf16>, vector<64x128xf32> -> vector<64x128xf32>
    %65 = arith.addf %58, %64 : vector<64x128xf32>
    %c0_32 = arith.constant 0 : index
    %c0_33 = arith.constant 0 : index
    %c0_34 = arith.constant 0 : index
    %c0_35 = arith.constant 0 : index
    %c0_36 = arith.constant 0 : index
    %66 = vector.load %arg3[%c0_32, %c0_33, %c0_34, %c0_35, %c0_36] : memref<1x1x10x10x8xf32, #tpu.memory_space<vmem>>, vector<1x1x10x10x8xf32>
    %67 = vector.shape_cast %66 : vector<1x1x10x10x8xf32> to vector<10x10x8xf32>
    %68 = vector.extract_strided_slice %67 {offsets = [0, 0, 0], sizes = [8, 8, 8], strides = [1, 1, 1]} : vector<10x10x8xf32> to vector<8x8x8xf32>
    %69 = vector.shape_cast %68 : vector<8x8x8xf32> to vector<64x8xf32>
    %c9 = arith.constant 9 : index
    %c0_37 = arith.constant 0 : index
    %c0_38 = arith.constant 0 : index
    %70 = vector.load %arg5[%c9, %c0_37, %c0_38] : memref<27x8x128xbf16, #tpu.memory_space<vmem>>, vector<1x8x128xbf16>
    %71 = vector.shape_cast %70 : vector<1x8x128xbf16> to vector<8x128xbf16>
    %72 = arith.truncf %69 : vector<64x8xf32> to vector<64x8xbf16>
    %cst_39 = arith.constant dense<0.000000e+00> : vector<64x128xf32>
    %73 = tpu.matmul %72, %71, %cst_39 {dimension_numbers = #tpu.dot_dimension_numbers<[1], [0], [0], [1], [0, 0, 1, 1], [], []>} : vector<64x8xbf16>, vector<8x128xbf16>, vector<64x128xf32> -> vector<64x128xf32>
    %74 = arith.addf %65, %73 : vector<64x128xf32>
    %75 = vector.extract_strided_slice %67 {offsets = [0, 1, 0], sizes = [8, 8, 8], strides = [1, 1, 1]} : vector<10x10x8xf32> to vector<8x8x8xf32>
    %76 = vector.shape_cast %75 : vector<8x8x8xf32> to vector<64x8xf32>
    %c10 = arith.constant 10 : index
    %c0_40 = arith.constant 0 : index
    %c0_41 = arith.constant 0 : index
    %77 = vector.load %arg5[%c10, %c0_40, %c0_41] : memref<27x8x128xbf16, #tpu.memory_space<vmem>>, vector<1x8x128xbf16>
    %78 = vector.shape_cast %77 : vector<1x8x128xbf16> to vector<8x128xbf16>
    %79 = arith.truncf %76 : vector<64x8xf32> to vector<64x8xbf16>
    %cst_42 = arith.constant dense<0.000000e+00> : vector<64x128xf32>
    %80 = tpu.matmul %79, %78, %cst_42 {dimension_numbers = #tpu.dot_dimension_numbers<[1], [0], [0], [1], [0, 0, 1, 1], [], []>} : vector<64x8xbf16>, vector<8x128xbf16>, vector<64x128xf32> -> vector<64x128xf32>
    %81 = arith.addf %74, %80 : vector<64x128xf32>
    %82 = vector.extract_strided_slice %67 {offsets = [0, 2, 0], sizes = [8, 8, 8], strides = [1, 1, 1]} : vector<10x10x8xf32> to vector<8x8x8xf32>
    %83 = vector.shape_cast %82 : vector<8x8x8xf32> to vector<64x8xf32>
    %c11 = arith.constant 11 : index
    %c0_43 = arith.constant 0 : index
    %c0_44 = arith.constant 0 : index
    %84 = vector.load %arg5[%c11, %c0_43, %c0_44] : memref<27x8x128xbf16, #tpu.memory_space<vmem>>, vector<1x8x128xbf16>
    %85 = vector.shape_cast %84 : vector<1x8x128xbf16> to vector<8x128xbf16>
    %86 = arith.truncf %83 : vector<64x8xf32> to vector<64x8xbf16>
    %cst_45 = arith.constant dense<0.000000e+00> : vector<64x128xf32>
    %87 = tpu.matmul %86, %85, %cst_45 {dimension_numbers = #tpu.dot_dimension_numbers<[1], [0], [0], [1], [0, 0, 1, 1], [], []>} : vector<64x8xbf16>, vector<8x128xbf16>, vector<64x128xf32> -> vector<64x128xf32>
    %88 = arith.addf %81, %87 : vector<64x128xf32>
    %89 = vector.extract_strided_slice %67 {offsets = [1, 0, 0], sizes = [8, 8, 8], strides = [1, 1, 1]} : vector<10x10x8xf32> to vector<8x8x8xf32>
    %90 = vector.shape_cast %89 : vector<8x8x8xf32> to vector<64x8xf32>
    %c12 = arith.constant 12 : index
    %c0_46 = arith.constant 0 : index
    %c0_47 = arith.constant 0 : index
    %91 = vector.load %arg5[%c12, %c0_46, %c0_47] : memref<27x8x128xbf16, #tpu.memory_space<vmem>>, vector<1x8x128xbf16>
    %92 = vector.shape_cast %91 : vector<1x8x128xbf16> to vector<8x128xbf16>
    %93 = arith.truncf %90 : vector<64x8xf32> to vector<64x8xbf16>
    %cst_48 = arith.constant dense<0.000000e+00> : vector<64x128xf32>
    %94 = tpu.matmul %93, %92, %cst_48 {dimension_numbers = #tpu.dot_dimension_numbers<[1], [0], [0], [1], [0, 0, 1, 1], [], []>} : vector<64x8xbf16>, vector<8x128xbf16>, vector<64x128xf32> -> vector<64x128xf32>
    %95 = arith.addf %88, %94 : vector<64x128xf32>
    %96 = vector.extract_strided_slice %67 {offsets = [1, 1, 0], sizes = [8, 8, 8], strides = [1, 1, 1]} : vector<10x10x8xf32> to vector<8x8x8xf32>
    %97 = vector.shape_cast %96 : vector<8x8x8xf32> to vector<64x8xf32>
    %c13 = arith.constant 13 : index
    %c0_49 = arith.constant 0 : index
    %c0_50 = arith.constant 0 : index
    %98 = vector.load %arg5[%c13, %c0_49, %c0_50] : memref<27x8x128xbf16, #tpu.memory_space<vmem>>, vector<1x8x128xbf16>
    %99 = vector.shape_cast %98 : vector<1x8x128xbf16> to vector<8x128xbf16>
    %100 = arith.truncf %97 : vector<64x8xf32> to vector<64x8xbf16>
    %cst_51 = arith.constant dense<0.000000e+00> : vector<64x128xf32>
    %101 = tpu.matmul %100, %99, %cst_51 {dimension_numbers = #tpu.dot_dimension_numbers<[1], [0], [0], [1], [0, 0, 1, 1], [], []>} : vector<64x8xbf16>, vector<8x128xbf16>, vector<64x128xf32> -> vector<64x128xf32>
    %102 = arith.addf %95, %101 : vector<64x128xf32>
    %103 = vector.extract_strided_slice %67 {offsets = [1, 2, 0], sizes = [8, 8, 8], strides = [1, 1, 1]} : vector<10x10x8xf32> to vector<8x8x8xf32>
    %104 = vector.shape_cast %103 : vector<8x8x8xf32> to vector<64x8xf32>
    %c14 = arith.constant 14 : index
    %c0_52 = arith.constant 0 : index
    %c0_53 = arith.constant 0 : index
    %105 = vector.load %arg5[%c14, %c0_52, %c0_53] : memref<27x8x128xbf16, #tpu.memory_space<vmem>>, vector<1x8x128xbf16>
    %106 = vector.shape_cast %105 : vector<1x8x128xbf16> to vector<8x128xbf16>
    %107 = arith.truncf %104 : vector<64x8xf32> to vector<64x8xbf16>
    %cst_54 = arith.constant dense<0.000000e+00> : vector<64x128xf32>
    %108 = tpu.matmul %107, %106, %cst_54 {dimension_numbers = #tpu.dot_dimension_numbers<[1], [0], [0], [1], [0, 0, 1, 1], [], []>} : vector<64x8xbf16>, vector<8x128xbf16>, vector<64x128xf32> -> vector<64x128xf32>
    %109 = arith.addf %102, %108 : vector<64x128xf32>
    %110 = vector.extract_strided_slice %67 {offsets = [2, 0, 0], sizes = [8, 8, 8], strides = [1, 1, 1]} : vector<10x10x8xf32> to vector<8x8x8xf32>
    %111 = vector.shape_cast %110 : vector<8x8x8xf32> to vector<64x8xf32>
    %c15 = arith.constant 15 : index
    %c0_55 = arith.constant 0 : index
    %c0_56 = arith.constant 0 : index
    %112 = vector.load %arg5[%c15, %c0_55, %c0_56] : memref<27x8x128xbf16, #tpu.memory_space<vmem>>, vector<1x8x128xbf16>
    %113 = vector.shape_cast %112 : vector<1x8x128xbf16> to vector<8x128xbf16>
    %114 = arith.truncf %111 : vector<64x8xf32> to vector<64x8xbf16>
    %cst_57 = arith.constant dense<0.000000e+00> : vector<64x128xf32>
    %115 = tpu.matmul %114, %113, %cst_57 {dimension_numbers = #tpu.dot_dimension_numbers<[1], [0], [0], [1], [0, 0, 1, 1], [], []>} : vector<64x8xbf16>, vector<8x128xbf16>, vector<64x128xf32> -> vector<64x128xf32>
    %116 = arith.addf %109, %115 : vector<64x128xf32>
    %117 = vector.extract_strided_slice %67 {offsets = [2, 1, 0], sizes = [8, 8, 8], strides = [1, 1, 1]} : vector<10x10x8xf32> to vector<8x8x8xf32>
    %118 = vector.shape_cast %117 : vector<8x8x8xf32> to vector<64x8xf32>
    %c16 = arith.constant 16 : index
    %c0_58 = arith.constant 0 : index
    %c0_59 = arith.constant 0 : index
    %119 = vector.load %arg5[%c16, %c0_58, %c0_59] : memref<27x8x128xbf16, #tpu.memory_space<vmem>>, vector<1x8x128xbf16>
    %120 = vector.shape_cast %119 : vector<1x8x128xbf16> to vector<8x128xbf16>
    %121 = arith.truncf %118 : vector<64x8xf32> to vector<64x8xbf16>
    %cst_60 = arith.constant dense<0.000000e+00> : vector<64x128xf32>
    %122 = tpu.matmul %121, %120, %cst_60 {dimension_numbers = #tpu.dot_dimension_numbers<[1], [0], [0], [1], [0, 0, 1, 1], [], []>} : vector<64x8xbf16>, vector<8x128xbf16>, vector<64x128xf32> -> vector<64x128xf32>
    %123 = arith.addf %116, %122 : vector<64x128xf32>
    %124 = vector.extract_strided_slice %67 {offsets = [2, 2, 0], sizes = [8, 8, 8], strides = [1, 1, 1]} : vector<10x10x8xf32> to vector<8x8x8xf32>
    %125 = vector.shape_cast %124 : vector<8x8x8xf32> to vector<64x8xf32>
    %c17 = arith.constant 17 : index
    %c0_61 = arith.constant 0 : index
    %c0_62 = arith.constant 0 : index
    %126 = vector.load %arg5[%c17, %c0_61, %c0_62] : memref<27x8x128xbf16, #tpu.memory_space<vmem>>, vector<1x8x128xbf16>
    %127 = vector.shape_cast %126 : vector<1x8x128xbf16> to vector<8x128xbf16>
    %128 = arith.truncf %125 : vector<64x8xf32> to vector<64x8xbf16>
    %cst_63 = arith.constant dense<0.000000e+00> : vector<64x128xf32>
    %129 = tpu.matmul %128, %127, %cst_63 {dimension_numbers = #tpu.dot_dimension_numbers<[1], [0], [0], [1], [0, 0, 1, 1], [], []>} : vector<64x8xbf16>, vector<8x128xbf16>, vector<64x128xf32> -> vector<64x128xf32>
    %130 = arith.addf %123, %129 : vector<64x128xf32>
    %c0_64 = arith.constant 0 : index
    %c0_65 = arith.constant 0 : index
    %c0_66 = arith.constant 0 : index
    %c0_67 = arith.constant 0 : index
    %c0_68 = arith.constant 0 : index
    %131 = vector.load %arg4[%c0_64, %c0_65, %c0_66, %c0_67, %c0_68] : memref<1x1x10x10x8xf32, #tpu.memory_space<vmem>>, vector<1x1x10x10x8xf32>
    %132 = vector.shape_cast %131 : vector<1x1x10x10x8xf32> to vector<10x10x8xf32>
    %133 = vector.extract_strided_slice %132 {offsets = [0, 0, 0], sizes = [8, 8, 8], strides = [1, 1, 1]} : vector<10x10x8xf32> to vector<8x8x8xf32>
    %134 = vector.shape_cast %133 : vector<8x8x8xf32> to vector<64x8xf32>
    %c18 = arith.constant 18 : index
    %c0_69 = arith.constant 0 : index
    %c0_70 = arith.constant 0 : index
    %135 = vector.load %arg5[%c18, %c0_69, %c0_70] : memref<27x8x128xbf16, #tpu.memory_space<vmem>>, vector<1x8x128xbf16>
    %136 = vector.shape_cast %135 : vector<1x8x128xbf16> to vector<8x128xbf16>
    %137 = arith.truncf %134 : vector<64x8xf32> to vector<64x8xbf16>
    %cst_71 = arith.constant dense<0.000000e+00> : vector<64x128xf32>
    %138 = tpu.matmul %137, %136, %cst_71 {dimension_numbers = #tpu.dot_dimension_numbers<[1], [0], [0], [1], [0, 0, 1, 1], [], []>} : vector<64x8xbf16>, vector<8x128xbf16>, vector<64x128xf32> -> vector<64x128xf32>
    %139 = arith.addf %130, %138 : vector<64x128xf32>
    %140 = vector.extract_strided_slice %132 {offsets = [0, 1, 0], sizes = [8, 8, 8], strides = [1, 1, 1]} : vector<10x10x8xf32> to vector<8x8x8xf32>
    %141 = vector.shape_cast %140 : vector<8x8x8xf32> to vector<64x8xf32>
    %c19 = arith.constant 19 : index
    %c0_72 = arith.constant 0 : index
    %c0_73 = arith.constant 0 : index
    %142 = vector.load %arg5[%c19, %c0_72, %c0_73] : memref<27x8x128xbf16, #tpu.memory_space<vmem>>, vector<1x8x128xbf16>
    %143 = vector.shape_cast %142 : vector<1x8x128xbf16> to vector<8x128xbf16>
    %144 = arith.truncf %141 : vector<64x8xf32> to vector<64x8xbf16>
    %cst_74 = arith.constant dense<0.000000e+00> : vector<64x128xf32>
    %145 = tpu.matmul %144, %143, %cst_74 {dimension_numbers = #tpu.dot_dimension_numbers<[1], [0], [0], [1], [0, 0, 1, 1], [], []>} : vector<64x8xbf16>, vector<8x128xbf16>, vector<64x128xf32> -> vector<64x128xf32>
    %146 = arith.addf %139, %145 : vector<64x128xf32>
    %147 = vector.extract_strided_slice %132 {offsets = [0, 2, 0], sizes = [8, 8, 8], strides = [1, 1, 1]} : vector<10x10x8xf32> to vector<8x8x8xf32>
    %148 = vector.shape_cast %147 : vector<8x8x8xf32> to vector<64x8xf32>
    %c20 = arith.constant 20 : index
    %c0_75 = arith.constant 0 : index
    %c0_76 = arith.constant 0 : index
    %149 = vector.load %arg5[%c20, %c0_75, %c0_76] : memref<27x8x128xbf16, #tpu.memory_space<vmem>>, vector<1x8x128xbf16>
    %150 = vector.shape_cast %149 : vector<1x8x128xbf16> to vector<8x128xbf16>
    %151 = arith.truncf %148 : vector<64x8xf32> to vector<64x8xbf16>
    %cst_77 = arith.constant dense<0.000000e+00> : vector<64x128xf32>
    %152 = tpu.matmul %151, %150, %cst_77 {dimension_numbers = #tpu.dot_dimension_numbers<[1], [0], [0], [1], [0, 0, 1, 1], [], []>} : vector<64x8xbf16>, vector<8x128xbf16>, vector<64x128xf32> -> vector<64x128xf32>
    %153 = arith.addf %146, %152 : vector<64x128xf32>
    %154 = vector.extract_strided_slice %132 {offsets = [1, 0, 0], sizes = [8, 8, 8], strides = [1, 1, 1]} : vector<10x10x8xf32> to vector<8x8x8xf32>
    %155 = vector.shape_cast %154 : vector<8x8x8xf32> to vector<64x8xf32>
    %c21 = arith.constant 21 : index
    %c0_78 = arith.constant 0 : index
    %c0_79 = arith.constant 0 : index
    %156 = vector.load %arg5[%c21, %c0_78, %c0_79] : memref<27x8x128xbf16, #tpu.memory_space<vmem>>, vector<1x8x128xbf16>
    %157 = vector.shape_cast %156 : vector<1x8x128xbf16> to vector<8x128xbf16>
    %158 = arith.truncf %155 : vector<64x8xf32> to vector<64x8xbf16>
    %cst_80 = arith.constant dense<0.000000e+00> : vector<64x128xf32>
    %159 = tpu.matmul %158, %157, %cst_80 {dimension_numbers = #tpu.dot_dimension_numbers<[1], [0], [0], [1], [0, 0, 1, 1], [], []>} : vector<64x8xbf16>, vector<8x128xbf16>, vector<64x128xf32> -> vector<64x128xf32>
    %160 = arith.addf %153, %159 : vector<64x128xf32>
    %161 = vector.extract_strided_slice %132 {offsets = [1, 1, 0], sizes = [8, 8, 8], strides = [1, 1, 1]} : vector<10x10x8xf32> to vector<8x8x8xf32>
    %162 = vector.shape_cast %161 : vector<8x8x8xf32> to vector<64x8xf32>
    %c22 = arith.constant 22 : index
    %c0_81 = arith.constant 0 : index
    %c0_82 = arith.constant 0 : index
    %163 = vector.load %arg5[%c22, %c0_81, %c0_82] : memref<27x8x128xbf16, #tpu.memory_space<vmem>>, vector<1x8x128xbf16>
    %164 = vector.shape_cast %163 : vector<1x8x128xbf16> to vector<8x128xbf16>
    %165 = arith.truncf %162 : vector<64x8xf32> to vector<64x8xbf16>
    %cst_83 = arith.constant dense<0.000000e+00> : vector<64x128xf32>
    %166 = tpu.matmul %165, %164, %cst_83 {dimension_numbers = #tpu.dot_dimension_numbers<[1], [0], [0], [1], [0, 0, 1, 1], [], []>} : vector<64x8xbf16>, vector<8x128xbf16>, vector<64x128xf32> -> vector<64x128xf32>
    %167 = arith.addf %160, %166 : vector<64x128xf32>
    %168 = vector.extract_strided_slice %132 {offsets = [1, 2, 0], sizes = [8, 8, 8], strides = [1, 1, 1]} : vector<10x10x8xf32> to vector<8x8x8xf32>
    %169 = vector.shape_cast %168 : vector<8x8x8xf32> to vector<64x8xf32>
    %c23 = arith.constant 23 : index
    %c0_84 = arith.constant 0 : index
    %c0_85 = arith.constant 0 : index
    %170 = vector.load %arg5[%c23, %c0_84, %c0_85] : memref<27x8x128xbf16, #tpu.memory_space<vmem>>, vector<1x8x128xbf16>
    %171 = vector.shape_cast %170 : vector<1x8x128xbf16> to vector<8x128xbf16>
    %172 = arith.truncf %169 : vector<64x8xf32> to vector<64x8xbf16>
    %cst_86 = arith.constant dense<0.000000e+00> : vector<64x128xf32>
    %173 = tpu.matmul %172, %171, %cst_86 {dimension_numbers = #tpu.dot_dimension_numbers<[1], [0], [0], [1], [0, 0, 1, 1], [], []>} : vector<64x8xbf16>, vector<8x128xbf16>, vector<64x128xf32> -> vector<64x128xf32>
    %174 = arith.addf %167, %173 : vector<64x128xf32>
    %175 = vector.extract_strided_slice %132 {offsets = [2, 0, 0], sizes = [8, 8, 8], strides = [1, 1, 1]} : vector<10x10x8xf32> to vector<8x8x8xf32>
    %176 = vector.shape_cast %175 : vector<8x8x8xf32> to vector<64x8xf32>
    %c24 = arith.constant 24 : index
    %c0_87 = arith.constant 0 : index
    %c0_88 = arith.constant 0 : index
    %177 = vector.load %arg5[%c24, %c0_87, %c0_88] : memref<27x8x128xbf16, #tpu.memory_space<vmem>>, vector<1x8x128xbf16>
    %178 = vector.shape_cast %177 : vector<1x8x128xbf16> to vector<8x128xbf16>
    %179 = arith.truncf %176 : vector<64x8xf32> to vector<64x8xbf16>
    %cst_89 = arith.constant dense<0.000000e+00> : vector<64x128xf32>
    %180 = tpu.matmul %179, %178, %cst_89 {dimension_numbers = #tpu.dot_dimension_numbers<[1], [0], [0], [1], [0, 0, 1, 1], [], []>} : vector<64x8xbf16>, vector<8x128xbf16>, vector<64x128xf32> -> vector<64x128xf32>
    %181 = arith.addf %174, %180 : vector<64x128xf32>
    %182 = vector.extract_strided_slice %132 {offsets = [2, 1, 0], sizes = [8, 8, 8], strides = [1, 1, 1]} : vector<10x10x8xf32> to vector<8x8x8xf32>
    %183 = vector.shape_cast %182 : vector<8x8x8xf32> to vector<64x8xf32>
    %c25 = arith.constant 25 : index
    %c0_90 = arith.constant 0 : index
    %c0_91 = arith.constant 0 : index
    %184 = vector.load %arg5[%c25, %c0_90, %c0_91] : memref<27x8x128xbf16, #tpu.memory_space<vmem>>, vector<1x8x128xbf16>
    %185 = vector.shape_cast %184 : vector<1x8x128xbf16> to vector<8x128xbf16>
    %186 = arith.truncf %183 : vector<64x8xf32> to vector<64x8xbf16>
    %cst_92 = arith.constant dense<0.000000e+00> : vector<64x128xf32>
    %187 = tpu.matmul %186, %185, %cst_92 {dimension_numbers = #tpu.dot_dimension_numbers<[1], [0], [0], [1], [0, 0, 1, 1], [], []>} : vector<64x8xbf16>, vector<8x128xbf16>, vector<64x128xf32> -> vector<64x128xf32>
    %188 = arith.addf %181, %187 : vector<64x128xf32>
    %189 = vector.extract_strided_slice %132 {offsets = [2, 2, 0], sizes = [8, 8, 8], strides = [1, 1, 1]} : vector<10x10x8xf32> to vector<8x8x8xf32>
    %190 = vector.shape_cast %189 : vector<8x8x8xf32> to vector<64x8xf32>
    %c26 = arith.constant 26 : index
    %c0_93 = arith.constant 0 : index
    %c0_94 = arith.constant 0 : index
    %191 = vector.load %arg5[%c26, %c0_93, %c0_94] : memref<27x8x128xbf16, #tpu.memory_space<vmem>>, vector<1x8x128xbf16>
    %192 = vector.shape_cast %191 : vector<1x8x128xbf16> to vector<8x128xbf16>
    %193 = arith.truncf %190 : vector<64x8xf32> to vector<64x8xbf16>
    %cst_95 = arith.constant dense<0.000000e+00> : vector<64x128xf32>
    %194 = tpu.matmul %193, %192, %cst_95 {dimension_numbers = #tpu.dot_dimension_numbers<[1], [0], [0], [1], [0, 0, 1, 1], [], []>} : vector<64x8xbf16>, vector<8x128xbf16>, vector<64x128xf32> -> vector<64x128xf32>
    %195 = arith.addf %188, %194 : vector<64x128xf32>
    %c0_96 = arith.constant 0 : index
    %c0_97 = arith.constant 0 : index
    %196 = vector.load %arg6[%c0_96, %c0_97] : memref<1x128xf32, #tpu.memory_space<vmem>>, vector<1x128xf32>
    %197 = vector.broadcast %196 : vector<1x128xf32> to vector<64x128xf32>
    %198 = arith.addf %195, %197 : vector<64x128xf32>
    %c0_98 = arith.constant 0 : index
    %c0_99 = arith.constant 0 : index
    %c0_100 = arith.constant 0 : index
    %c0_101 = arith.constant 0 : index
    %199 = vector.load %arg7[%c0_98, %c0_99, %c0_100, %c0_101] : memref<1x1x64x128xf32, #tpu.memory_space<vmem>>, vector<1x1x64x128xf32>
    %200 = vector.shape_cast %199 : vector<1x1x64x128xf32> to vector<64x128xf32>
    %201 = vector.shape_cast %198 : vector<64x128xf32> to vector<1x1x64x128xf32>
    tpu.vector_store %arg7[%c0_98, %c0_99, %c0_100, %c0_101], %201 {strides = array<i32>} : memref<1x1x64x128xf32, #tpu.memory_space<vmem>>, vector<1x1x64x128xf32>,
    %cst_102 = arith.constant dense<0.000000e+00> : vector<128xf32>
    %202 = vector.multi_reduction <add>, %198, %cst_102 [0] : vector<64x128xf32> to vector<128xf32>
    %203 = vector.shape_cast %202 : vector<128xf32> to vector<1x128xf32>
    %204 = arith.mulf %198, %198 : vector<64x128xf32>
    %cst_103 = arith.constant dense<0.000000e+00> : vector<128xf32>
    %205 = vector.multi_reduction <add>, %204, %cst_103 [0] : vector<64x128xf32> to vector<128xf32>
    %206 = vector.shape_cast %205 : vector<128xf32> to vector<1x128xf32>
    %cst_104 = arith.constant 0.000000e+00 : f32
    %207 = vector.broadcast %cst_104 : f32 to vector<6x128xf32>
    %208 = tpu.concatenate %203, %206, %207 in 0 : vector<1x128xf32>, vector<1x128xf32>, vector<6x128xf32> -> vector<8x128xf32>
    %c0_105 = arith.constant 0 : index
    %c0_106 = arith.constant 0 : index
    %c0_107 = arith.constant 0 : index
    %c0_108 = arith.constant 0 : index
    %209 = vector.load %arg8[%c0_105, %c0_106, %c0_107, %c0_108] : memref<1x1x8x128xf32, #tpu.memory_space<vmem>>, vector<1x1x8x128xf32>
    %210 = vector.shape_cast %209 : vector<1x1x8x128xf32> to vector<8x128xf32>
    %211 = vector.shape_cast %208 : vector<8x128xf32> to vector<1x1x8x128xf32>
    tpu.vector_store %arg8[%c0_105, %c0_106, %c0_107, %c0_108], %211 {strides = array<i32>} : memref<1x1x8x128xf32, #tpu.memory_space<vmem>>, vector<1x1x8x128xf32>,
    return
  }
  func.func @transform_0(%arg0: i32, %arg1: i32) -> (i32, i32, i32, i32, i32) {
    %c0_i32 = arith.constant 0 : i32
    %0 = arith.addi %arg1, %c0_i32 : i32
    %c0_i32_0 = arith.constant 0 : i32
    %c0_i32_1 = arith.constant 0 : i32
    %c0_i32_2 = arith.constant 0 : i32
    %c0_i32_3 = arith.constant 0 : i32
    return %arg0, %0, %c0_i32_0, %c0_i32_1, %c0_i32_2 : i32, i32, i32, i32, i32
  }
  func.func @transform_1(%arg0: i32, %arg1: i32) -> (i32, i32, i32, i32, i32) {
    %c1_i32 = arith.constant 1 : i32
    %0 = arith.addi %arg1, %c1_i32 : i32
    %c0_i32 = arith.constant 0 : i32
    %c0_i32_0 = arith.constant 0 : i32
    %c0_i32_1 = arith.constant 0 : i32
    %c0_i32_2 = arith.constant 0 : i32
    return %arg0, %0, %c0_i32, %c0_i32_0, %c0_i32_1 : i32, i32, i32, i32, i32
  }
  func.func @transform_2(%arg0: i32, %arg1: i32) -> (i32, i32, i32, i32, i32) {
    %c2_i32 = arith.constant 2 : i32
    %0 = arith.addi %arg1, %c2_i32 : i32
    %c0_i32 = arith.constant 0 : i32
    %c0_i32_0 = arith.constant 0 : i32
    %c0_i32_1 = arith.constant 0 : i32
    %c0_i32_2 = arith.constant 0 : i32
    return %arg0, %0, %c0_i32, %c0_i32_0, %c0_i32_1 : i32, i32, i32, i32, i32
  }
  func.func @transform_3(%arg0: i32, %arg1: i32) -> (i32, i32, i32) {
    %c0_i32 = arith.constant 0 : i32
    %c0_i32_0 = arith.constant 0 : i32
    %c0_i32_1 = arith.constant 0 : i32
    %c0_i32_2 = arith.constant 0 : i32
    return %c0_i32, %c0_i32_0, %c0_i32_1 : i32, i32, i32
  }
  func.func @transform_4(%arg0: i32, %arg1: i32) -> (i32, i32) {
    %c0_i32 = arith.constant 0 : i32
    %c0_i32_0 = arith.constant 0 : i32
    %c0_i32_1 = arith.constant 0 : i32
    return %c0_i32, %c0_i32_0 : i32, i32
  }
  func.func @transform_5(%arg0: i32, %arg1: i32) -> (i32, i32, i32, i32) {
    %c0_i32 = arith.constant 0 : i32
    %c0_i32_0 = arith.constant 0 : i32
    %c0_i32_1 = arith.constant 0 : i32
    return %arg0, %arg1, %c0_i32, %c0_i32_0 : i32, i32, i32, i32
  }
  func.func @transform_6(%arg0: i32, %arg1: i32) -> (i32, i32, i32, i32) {
    %c0_i32 = arith.constant 0 : i32
    %c0_i32_0 = arith.constant 0 : i32
    %c0_i32_1 = arith.constant 0 : i32
    return %arg0, %arg1, %c0_i32, %c0_i32_0 : i32, i32, i32, i32
  }
}

module attributes {stable_mosaic.version = 11 : i64} {
  func.func @_bn_relu_kernel(%arg0: i32, %arg1: memref<512x128xf32, #tpu.memory_space<vmem>>, %arg2: memref<1x128xf32, #tpu.memory_space<vmem>>, %arg3: memref<1x128xf32, #tpu.memory_space<vmem>>, %arg4: memref<512x128xf32, #tpu.memory_space<vmem>>) attributes {dimension_semantics = [#tpu.dimension_semantics<parallel>], iteration_bounds = array<i64: 2>, scalar_prefetch = 0 : i64, scratch_operands = 0 : i64, tpu.core_type = #tpu.core_type<tc>, window_params = [{transform_indices = @transform_0, window_bounds = array<i64: 512, 128>}, {pipeline_mode = #tpu.pipeline_mode<synchronous>, transform_indices = @transform_1, window_bounds = array<i64: 1, 128>}, {pipeline_mode = #tpu.pipeline_mode<synchronous>, transform_indices = @transform_2, window_bounds = array<i64: 1, 128>}, {transform_indices = @transform_3, window_bounds = array<i64: 512, 128>}]} {
    %c0 = arith.constant 0 : index
    %c0_0 = arith.constant 0 : index
    %0 = vector.load %arg1[%c0, %c0_0] : memref<512x128xf32, #tpu.memory_space<vmem>>, vector<512x128xf32>
    %c0_1 = arith.constant 0 : index
    %c0_2 = arith.constant 0 : index
    %1 = vector.load %arg2[%c0_1, %c0_2] : memref<1x128xf32, #tpu.memory_space<vmem>>, vector<1x128xf32>
    %2 = vector.broadcast %1 : vector<1x128xf32> to vector<512x128xf32>
    %3 = arith.mulf %0, %2 : vector<512x128xf32>
    %c0_3 = arith.constant 0 : index
    %c0_4 = arith.constant 0 : index
    %4 = vector.load %arg3[%c0_3, %c0_4] : memref<1x128xf32, #tpu.memory_space<vmem>>, vector<1x128xf32>
    %5 = vector.broadcast %4 : vector<1x128xf32> to vector<512x128xf32>
    %6 = arith.addf %3, %5 : vector<512x128xf32>
    %cst = arith.constant 0.000000e+00 : f32
    %7 = vector.broadcast %cst : f32 to vector<512x128xf32>
    %8 = arith.maximumf %6, %7 : vector<512x128xf32>
    %c0_5 = arith.constant 0 : index
    %c0_6 = arith.constant 0 : index
    %9 = vector.load %arg4[%c0_5, %c0_6] : memref<512x128xf32, #tpu.memory_space<vmem>>, vector<512x128xf32>
    tpu.vector_store %arg4[%c0_5, %c0_6], %8 {strides = array<i32>} : memref<512x128xf32, #tpu.memory_space<vmem>>, vector<512x128xf32>,
    return
  }
  func.func @transform_0(%arg0: i32) -> (i32, i32) {
    %c0_i32 = arith.constant 0 : i32
    %c0_i32_0 = arith.constant 0 : i32
    return %arg0, %c0_i32 : i32, i32
  }
  func.func @transform_1(%arg0: i32) -> (i32, i32) {
    %c0_i32 = arith.constant 0 : i32
    %c0_i32_0 = arith.constant 0 : i32
    %c0_i32_1 = arith.constant 0 : i32
    return %c0_i32, %c0_i32_0 : i32, i32
  }
  func.func @transform_2(%arg0: i32) -> (i32, i32) {
    %c0_i32 = arith.constant 0 : i32
    %c0_i32_0 = arith.constant 0 : i32
    %c0_i32_1 = arith.constant 0 : i32
    return %c0_i32, %c0_i32_0 : i32, i32
  }
  func.func @transform_3(%arg0: i32) -> (i32, i32) {
    %c0_i32 = arith.constant 0 : i32
    %c0_i32_0 = arith.constant 0 : i32
    return %arg0, %c0_i32 : i32, i32
  }
}

module attributes {stable_mosaic.version = 11 : i64} {
  func.func @_conv3_kernel(%arg0: i32, %arg1: i32, %arg2: memref<1x1x10x10x4xf32, #tpu.memory_space<vmem>>, %arg3: memref<1x1x10x10x4xf32, #tpu.memory_space<vmem>>, %arg4: memref<1x1x10x10x4xf32, #tpu.memory_space<vmem>>, %arg5: memref<27x4x128xbf16, #tpu.memory_space<vmem>>, %arg6: memref<1x128xf32, #tpu.memory_space<vmem>>, %arg7: memref<1x1x64x128xf32, #tpu.memory_space<vmem>>, %arg8: memref<1x1x8x128xf32, #tpu.memory_space<vmem>>) attributes {dimension_semantics = [#tpu.dimension_semantics<parallel>, #tpu.dimension_semantics<parallel>], iteration_bounds = array<i64: 2, 8>, scalar_prefetch = 0 : i64, scratch_operands = 0 : i64, tpu.core_type = #tpu.core_type<tc>, window_params = [{transform_indices = @transform_0, window_bounds = array<i64: 1, 1, 10, 10, 4>}, {transform_indices = @transform_1, window_bounds = array<i64: 1, 1, 10, 10, 4>}, {transform_indices = @transform_2, window_bounds = array<i64: 1, 1, 10, 10, 4>}, {pipeline_mode = #tpu.pipeline_mode<synchronous>, transform_indices = @transform_3, window_bounds = array<i64: 27, 4, 128>}, {pipeline_mode = #tpu.pipeline_mode<synchronous>, transform_indices = @transform_4, window_bounds = array<i64: 1, 128>}, {transform_indices = @transform_5, window_bounds = array<i64: 1, 1, 64, 128>}, {transform_indices = @transform_6, window_bounds = array<i64: 1, 1, 8, 128>}]} {
    %cst = arith.constant 0.000000e+00 : f32
    %0 = vector.broadcast %cst : f32 to vector<64x128xf32>
    %c0 = arith.constant 0 : index
    %c0_0 = arith.constant 0 : index
    %c0_1 = arith.constant 0 : index
    %c0_2 = arith.constant 0 : index
    %c0_3 = arith.constant 0 : index
    %1 = vector.load %arg2[%c0, %c0_0, %c0_1, %c0_2, %c0_3] : memref<1x1x10x10x4xf32, #tpu.memory_space<vmem>>, vector<1x1x10x10x4xf32>
    %2 = vector.shape_cast %1 : vector<1x1x10x10x4xf32> to vector<10x10x4xf32>
    %3 = vector.extract_strided_slice %2 {offsets = [0, 0, 0], sizes = [8, 8, 4], strides = [1, 1, 1]} : vector<10x10x4xf32> to vector<8x8x4xf32>
    %4 = vector.shape_cast %3 : vector<8x8x4xf32> to vector<64x4xf32>
    %c0_4 = arith.constant 0 : index
    %c0_5 = arith.constant 0 : index
    %c0_6 = arith.constant 0 : index
    %5 = vector.load %arg5[%c0_4, %c0_5, %c0_6] : memref<27x4x128xbf16, #tpu.memory_space<vmem>>, vector<1x4x128xbf16>
    %6 = vector.shape_cast %5 : vector<1x4x128xbf16> to vector<4x128xbf16>
    %7 = arith.truncf %4 : vector<64x4xf32> to vector<64x4xbf16>
    %cst_7 = arith.constant dense<0.000000e+00> : vector<64x128xf32>
    %8 = tpu.matmul %7, %6, %cst_7 {dimension_numbers = #tpu.dot_dimension_numbers<[1], [0], [0], [1], [0, 0, 1, 1], [], []>} : vector<64x4xbf16>, vector<4x128xbf16>, vector<64x128xf32> -> vector<64x128xf32>
    %9 = arith.addf %0, %8 : vector<64x128xf32>
    %10 = vector.extract_strided_slice %2 {offsets = [0, 1, 0], sizes = [8, 8, 4], strides = [1, 1, 1]} : vector<10x10x4xf32> to vector<8x8x4xf32>
    %11 = vector.shape_cast %10 : vector<8x8x4xf32> to vector<64x4xf32>
    %c1 = arith.constant 1 : index
    %c0_8 = arith.constant 0 : index
    %c0_9 = arith.constant 0 : index
    %12 = vector.load %arg5[%c1, %c0_8, %c0_9] : memref<27x4x128xbf16, #tpu.memory_space<vmem>>, vector<1x4x128xbf16>
    %13 = vector.shape_cast %12 : vector<1x4x128xbf16> to vector<4x128xbf16>
    %14 = arith.truncf %11 : vector<64x4xf32> to vector<64x4xbf16>
    %cst_10 = arith.constant dense<0.000000e+00> : vector<64x128xf32>
    %15 = tpu.matmul %14, %13, %cst_10 {dimension_numbers = #tpu.dot_dimension_numbers<[1], [0], [0], [1], [0, 0, 1, 1], [], []>} : vector<64x4xbf16>, vector<4x128xbf16>, vector<64x128xf32> -> vector<64x128xf32>
    %16 = arith.addf %9, %15 : vector<64x128xf32>
    %17 = vector.extract_strided_slice %2 {offsets = [0, 2, 0], sizes = [8, 8, 4], strides = [1, 1, 1]} : vector<10x10x4xf32> to vector<8x8x4xf32>
    %18 = vector.shape_cast %17 : vector<8x8x4xf32> to vector<64x4xf32>
    %c2 = arith.constant 2 : index
    %c0_11 = arith.constant 0 : index
    %c0_12 = arith.constant 0 : index
    %19 = vector.load %arg5[%c2, %c0_11, %c0_12] : memref<27x4x128xbf16, #tpu.memory_space<vmem>>, vector<1x4x128xbf16>
    %20 = vector.shape_cast %19 : vector<1x4x128xbf16> to vector<4x128xbf16>
    %21 = arith.truncf %18 : vector<64x4xf32> to vector<64x4xbf16>
    %cst_13 = arith.constant dense<0.000000e+00> : vector<64x128xf32>
    %22 = tpu.matmul %21, %20, %cst_13 {dimension_numbers = #tpu.dot_dimension_numbers<[1], [0], [0], [1], [0, 0, 1, 1], [], []>} : vector<64x4xbf16>, vector<4x128xbf16>, vector<64x128xf32> -> vector<64x128xf32>
    %23 = arith.addf %16, %22 : vector<64x128xf32>
    %24 = vector.extract_strided_slice %2 {offsets = [1, 0, 0], sizes = [8, 8, 4], strides = [1, 1, 1]} : vector<10x10x4xf32> to vector<8x8x4xf32>
    %25 = vector.shape_cast %24 : vector<8x8x4xf32> to vector<64x4xf32>
    %c3 = arith.constant 3 : index
    %c0_14 = arith.constant 0 : index
    %c0_15 = arith.constant 0 : index
    %26 = vector.load %arg5[%c3, %c0_14, %c0_15] : memref<27x4x128xbf16, #tpu.memory_space<vmem>>, vector<1x4x128xbf16>
    %27 = vector.shape_cast %26 : vector<1x4x128xbf16> to vector<4x128xbf16>
    %28 = arith.truncf %25 : vector<64x4xf32> to vector<64x4xbf16>
    %cst_16 = arith.constant dense<0.000000e+00> : vector<64x128xf32>
    %29 = tpu.matmul %28, %27, %cst_16 {dimension_numbers = #tpu.dot_dimension_numbers<[1], [0], [0], [1], [0, 0, 1, 1], [], []>} : vector<64x4xbf16>, vector<4x128xbf16>, vector<64x128xf32> -> vector<64x128xf32>
    %30 = arith.addf %23, %29 : vector<64x128xf32>
    %31 = vector.extract_strided_slice %2 {offsets = [1, 1, 0], sizes = [8, 8, 4], strides = [1, 1, 1]} : vector<10x10x4xf32> to vector<8x8x4xf32>
    %32 = vector.shape_cast %31 : vector<8x8x4xf32> to vector<64x4xf32>
    %c4 = arith.constant 4 : index
    %c0_17 = arith.constant 0 : index
    %c0_18 = arith.constant 0 : index
    %33 = vector.load %arg5[%c4, %c0_17, %c0_18] : memref<27x4x128xbf16, #tpu.memory_space<vmem>>, vector<1x4x128xbf16>
    %34 = vector.shape_cast %33 : vector<1x4x128xbf16> to vector<4x128xbf16>
    %35 = arith.truncf %32 : vector<64x4xf32> to vector<64x4xbf16>
    %cst_19 = arith.constant dense<0.000000e+00> : vector<64x128xf32>
    %36 = tpu.matmul %35, %34, %cst_19 {dimension_numbers = #tpu.dot_dimension_numbers<[1], [0], [0], [1], [0, 0, 1, 1], [], []>} : vector<64x4xbf16>, vector<4x128xbf16>, vector<64x128xf32> -> vector<64x128xf32>
    %37 = arith.addf %30, %36 : vector<64x128xf32>
    %38 = vector.extract_strided_slice %2 {offsets = [1, 2, 0], sizes = [8, 8, 4], strides = [1, 1, 1]} : vector<10x10x4xf32> to vector<8x8x4xf32>
    %39 = vector.shape_cast %38 : vector<8x8x4xf32> to vector<64x4xf32>
    %c5 = arith.constant 5 : index
    %c0_20 = arith.constant 0 : index
    %c0_21 = arith.constant 0 : index
    %40 = vector.load %arg5[%c5, %c0_20, %c0_21] : memref<27x4x128xbf16, #tpu.memory_space<vmem>>, vector<1x4x128xbf16>
    %41 = vector.shape_cast %40 : vector<1x4x128xbf16> to vector<4x128xbf16>
    %42 = arith.truncf %39 : vector<64x4xf32> to vector<64x4xbf16>
    %cst_22 = arith.constant dense<0.000000e+00> : vector<64x128xf32>
    %43 = tpu.matmul %42, %41, %cst_22 {dimension_numbers = #tpu.dot_dimension_numbers<[1], [0], [0], [1], [0, 0, 1, 1], [], []>} : vector<64x4xbf16>, vector<4x128xbf16>, vector<64x128xf32> -> vector<64x128xf32>
    %44 = arith.addf %37, %43 : vector<64x128xf32>
    %45 = vector.extract_strided_slice %2 {offsets = [2, 0, 0], sizes = [8, 8, 4], strides = [1, 1, 1]} : vector<10x10x4xf32> to vector<8x8x4xf32>
    %46 = vector.shape_cast %45 : vector<8x8x4xf32> to vector<64x4xf32>
    %c6 = arith.constant 6 : index
    %c0_23 = arith.constant 0 : index
    %c0_24 = arith.constant 0 : index
    %47 = vector.load %arg5[%c6, %c0_23, %c0_24] : memref<27x4x128xbf16, #tpu.memory_space<vmem>>, vector<1x4x128xbf16>
    %48 = vector.shape_cast %47 : vector<1x4x128xbf16> to vector<4x128xbf16>
    %49 = arith.truncf %46 : vector<64x4xf32> to vector<64x4xbf16>
    %cst_25 = arith.constant dense<0.000000e+00> : vector<64x128xf32>
    %50 = tpu.matmul %49, %48, %cst_25 {dimension_numbers = #tpu.dot_dimension_numbers<[1], [0], [0], [1], [0, 0, 1, 1], [], []>} : vector<64x4xbf16>, vector<4x128xbf16>, vector<64x128xf32> -> vector<64x128xf32>
    %51 = arith.addf %44, %50 : vector<64x128xf32>
    %52 = vector.extract_strided_slice %2 {offsets = [2, 1, 0], sizes = [8, 8, 4], strides = [1, 1, 1]} : vector<10x10x4xf32> to vector<8x8x4xf32>
    %53 = vector.shape_cast %52 : vector<8x8x4xf32> to vector<64x4xf32>
    %c7 = arith.constant 7 : index
    %c0_26 = arith.constant 0 : index
    %c0_27 = arith.constant 0 : index
    %54 = vector.load %arg5[%c7, %c0_26, %c0_27] : memref<27x4x128xbf16, #tpu.memory_space<vmem>>, vector<1x4x128xbf16>
    %55 = vector.shape_cast %54 : vector<1x4x128xbf16> to vector<4x128xbf16>
    %56 = arith.truncf %53 : vector<64x4xf32> to vector<64x4xbf16>
    %cst_28 = arith.constant dense<0.000000e+00> : vector<64x128xf32>
    %57 = tpu.matmul %56, %55, %cst_28 {dimension_numbers = #tpu.dot_dimension_numbers<[1], [0], [0], [1], [0, 0, 1, 1], [], []>} : vector<64x4xbf16>, vector<4x128xbf16>, vector<64x128xf32> -> vector<64x128xf32>
    %58 = arith.addf %51, %57 : vector<64x128xf32>
    %59 = vector.extract_strided_slice %2 {offsets = [2, 2, 0], sizes = [8, 8, 4], strides = [1, 1, 1]} : vector<10x10x4xf32> to vector<8x8x4xf32>
    %60 = vector.shape_cast %59 : vector<8x8x4xf32> to vector<64x4xf32>
    %c8 = arith.constant 8 : index
    %c0_29 = arith.constant 0 : index
    %c0_30 = arith.constant 0 : index
    %61 = vector.load %arg5[%c8, %c0_29, %c0_30] : memref<27x4x128xbf16, #tpu.memory_space<vmem>>, vector<1x4x128xbf16>
    %62 = vector.shape_cast %61 : vector<1x4x128xbf16> to vector<4x128xbf16>
    %63 = arith.truncf %60 : vector<64x4xf32> to vector<64x4xbf16>
    %cst_31 = arith.constant dense<0.000000e+00> : vector<64x128xf32>
    %64 = tpu.matmul %63, %62, %cst_31 {dimension_numbers = #tpu.dot_dimension_numbers<[1], [0], [0], [1], [0, 0, 1, 1], [], []>} : vector<64x4xbf16>, vector<4x128xbf16>, vector<64x128xf32> -> vector<64x128xf32>
    %65 = arith.addf %58, %64 : vector<64x128xf32>
    %c0_32 = arith.constant 0 : index
    %c0_33 = arith.constant 0 : index
    %c0_34 = arith.constant 0 : index
    %c0_35 = arith.constant 0 : index
    %c0_36 = arith.constant 0 : index
    %66 = vector.load %arg3[%c0_32, %c0_33, %c0_34, %c0_35, %c0_36] : memref<1x1x10x10x4xf32, #tpu.memory_space<vmem>>, vector<1x1x10x10x4xf32>
    %67 = vector.shape_cast %66 : vector<1x1x10x10x4xf32> to vector<10x10x4xf32>
    %68 = vector.extract_strided_slice %67 {offsets = [0, 0, 0], sizes = [8, 8, 4], strides = [1, 1, 1]} : vector<10x10x4xf32> to vector<8x8x4xf32>
    %69 = vector.shape_cast %68 : vector<8x8x4xf32> to vector<64x4xf32>
    %c9 = arith.constant 9 : index
    %c0_37 = arith.constant 0 : index
    %c0_38 = arith.constant 0 : index
    %70 = vector.load %arg5[%c9, %c0_37, %c0_38] : memref<27x4x128xbf16, #tpu.memory_space<vmem>>, vector<1x4x128xbf16>
    %71 = vector.shape_cast %70 : vector<1x4x128xbf16> to vector<4x128xbf16>
    %72 = arith.truncf %69 : vector<64x4xf32> to vector<64x4xbf16>
    %cst_39 = arith.constant dense<0.000000e+00> : vector<64x128xf32>
    %73 = tpu.matmul %72, %71, %cst_39 {dimension_numbers = #tpu.dot_dimension_numbers<[1], [0], [0], [1], [0, 0, 1, 1], [], []>} : vector<64x4xbf16>, vector<4x128xbf16>, vector<64x128xf32> -> vector<64x128xf32>
    %74 = arith.addf %65, %73 : vector<64x128xf32>
    %75 = vector.extract_strided_slice %67 {offsets = [0, 1, 0], sizes = [8, 8, 4], strides = [1, 1, 1]} : vector<10x10x4xf32> to vector<8x8x4xf32>
    %76 = vector.shape_cast %75 : vector<8x8x4xf32> to vector<64x4xf32>
    %c10 = arith.constant 10 : index
    %c0_40 = arith.constant 0 : index
    %c0_41 = arith.constant 0 : index
    %77 = vector.load %arg5[%c10, %c0_40, %c0_41] : memref<27x4x128xbf16, #tpu.memory_space<vmem>>, vector<1x4x128xbf16>
    %78 = vector.shape_cast %77 : vector<1x4x128xbf16> to vector<4x128xbf16>
    %79 = arith.truncf %76 : vector<64x4xf32> to vector<64x4xbf16>
    %cst_42 = arith.constant dense<0.000000e+00> : vector<64x128xf32>
    %80 = tpu.matmul %79, %78, %cst_42 {dimension_numbers = #tpu.dot_dimension_numbers<[1], [0], [0], [1], [0, 0, 1, 1], [], []>} : vector<64x4xbf16>, vector<4x128xbf16>, vector<64x128xf32> -> vector<64x128xf32>
    %81 = arith.addf %74, %80 : vector<64x128xf32>
    %82 = vector.extract_strided_slice %67 {offsets = [0, 2, 0], sizes = [8, 8, 4], strides = [1, 1, 1]} : vector<10x10x4xf32> to vector<8x8x4xf32>
    %83 = vector.shape_cast %82 : vector<8x8x4xf32> to vector<64x4xf32>
    %c11 = arith.constant 11 : index
    %c0_43 = arith.constant 0 : index
    %c0_44 = arith.constant 0 : index
    %84 = vector.load %arg5[%c11, %c0_43, %c0_44] : memref<27x4x128xbf16, #tpu.memory_space<vmem>>, vector<1x4x128xbf16>
    %85 = vector.shape_cast %84 : vector<1x4x128xbf16> to vector<4x128xbf16>
    %86 = arith.truncf %83 : vector<64x4xf32> to vector<64x4xbf16>
    %cst_45 = arith.constant dense<0.000000e+00> : vector<64x128xf32>
    %87 = tpu.matmul %86, %85, %cst_45 {dimension_numbers = #tpu.dot_dimension_numbers<[1], [0], [0], [1], [0, 0, 1, 1], [], []>} : vector<64x4xbf16>, vector<4x128xbf16>, vector<64x128xf32> -> vector<64x128xf32>
    %88 = arith.addf %81, %87 : vector<64x128xf32>
    %89 = vector.extract_strided_slice %67 {offsets = [1, 0, 0], sizes = [8, 8, 4], strides = [1, 1, 1]} : vector<10x10x4xf32> to vector<8x8x4xf32>
    %90 = vector.shape_cast %89 : vector<8x8x4xf32> to vector<64x4xf32>
    %c12 = arith.constant 12 : index
    %c0_46 = arith.constant 0 : index
    %c0_47 = arith.constant 0 : index
    %91 = vector.load %arg5[%c12, %c0_46, %c0_47] : memref<27x4x128xbf16, #tpu.memory_space<vmem>>, vector<1x4x128xbf16>
    %92 = vector.shape_cast %91 : vector<1x4x128xbf16> to vector<4x128xbf16>
    %93 = arith.truncf %90 : vector<64x4xf32> to vector<64x4xbf16>
    %cst_48 = arith.constant dense<0.000000e+00> : vector<64x128xf32>
    %94 = tpu.matmul %93, %92, %cst_48 {dimension_numbers = #tpu.dot_dimension_numbers<[1], [0], [0], [1], [0, 0, 1, 1], [], []>} : vector<64x4xbf16>, vector<4x128xbf16>, vector<64x128xf32> -> vector<64x128xf32>
    %95 = arith.addf %88, %94 : vector<64x128xf32>
    %96 = vector.extract_strided_slice %67 {offsets = [1, 1, 0], sizes = [8, 8, 4], strides = [1, 1, 1]} : vector<10x10x4xf32> to vector<8x8x4xf32>
    %97 = vector.shape_cast %96 : vector<8x8x4xf32> to vector<64x4xf32>
    %c13 = arith.constant 13 : index
    %c0_49 = arith.constant 0 : index
    %c0_50 = arith.constant 0 : index
    %98 = vector.load %arg5[%c13, %c0_49, %c0_50] : memref<27x4x128xbf16, #tpu.memory_space<vmem>>, vector<1x4x128xbf16>
    %99 = vector.shape_cast %98 : vector<1x4x128xbf16> to vector<4x128xbf16>
    %100 = arith.truncf %97 : vector<64x4xf32> to vector<64x4xbf16>
    %cst_51 = arith.constant dense<0.000000e+00> : vector<64x128xf32>
    %101 = tpu.matmul %100, %99, %cst_51 {dimension_numbers = #tpu.dot_dimension_numbers<[1], [0], [0], [1], [0, 0, 1, 1], [], []>} : vector<64x4xbf16>, vector<4x128xbf16>, vector<64x128xf32> -> vector<64x128xf32>
    %102 = arith.addf %95, %101 : vector<64x128xf32>
    %103 = vector.extract_strided_slice %67 {offsets = [1, 2, 0], sizes = [8, 8, 4], strides = [1, 1, 1]} : vector<10x10x4xf32> to vector<8x8x4xf32>
    %104 = vector.shape_cast %103 : vector<8x8x4xf32> to vector<64x4xf32>
    %c14 = arith.constant 14 : index
    %c0_52 = arith.constant 0 : index
    %c0_53 = arith.constant 0 : index
    %105 = vector.load %arg5[%c14, %c0_52, %c0_53] : memref<27x4x128xbf16, #tpu.memory_space<vmem>>, vector<1x4x128xbf16>
    %106 = vector.shape_cast %105 : vector<1x4x128xbf16> to vector<4x128xbf16>
    %107 = arith.truncf %104 : vector<64x4xf32> to vector<64x4xbf16>
    %cst_54 = arith.constant dense<0.000000e+00> : vector<64x128xf32>
    %108 = tpu.matmul %107, %106, %cst_54 {dimension_numbers = #tpu.dot_dimension_numbers<[1], [0], [0], [1], [0, 0, 1, 1], [], []>} : vector<64x4xbf16>, vector<4x128xbf16>, vector<64x128xf32> -> vector<64x128xf32>
    %109 = arith.addf %102, %108 : vector<64x128xf32>
    %110 = vector.extract_strided_slice %67 {offsets = [2, 0, 0], sizes = [8, 8, 4], strides = [1, 1, 1]} : vector<10x10x4xf32> to vector<8x8x4xf32>
    %111 = vector.shape_cast %110 : vector<8x8x4xf32> to vector<64x4xf32>
    %c15 = arith.constant 15 : index
    %c0_55 = arith.constant 0 : index
    %c0_56 = arith.constant 0 : index
    %112 = vector.load %arg5[%c15, %c0_55, %c0_56] : memref<27x4x128xbf16, #tpu.memory_space<vmem>>, vector<1x4x128xbf16>
    %113 = vector.shape_cast %112 : vector<1x4x128xbf16> to vector<4x128xbf16>
    %114 = arith.truncf %111 : vector<64x4xf32> to vector<64x4xbf16>
    %cst_57 = arith.constant dense<0.000000e+00> : vector<64x128xf32>
    %115 = tpu.matmul %114, %113, %cst_57 {dimension_numbers = #tpu.dot_dimension_numbers<[1], [0], [0], [1], [0, 0, 1, 1], [], []>} : vector<64x4xbf16>, vector<4x128xbf16>, vector<64x128xf32> -> vector<64x128xf32>
    %116 = arith.addf %109, %115 : vector<64x128xf32>
    %117 = vector.extract_strided_slice %67 {offsets = [2, 1, 0], sizes = [8, 8, 4], strides = [1, 1, 1]} : vector<10x10x4xf32> to vector<8x8x4xf32>
    %118 = vector.shape_cast %117 : vector<8x8x4xf32> to vector<64x4xf32>
    %c16 = arith.constant 16 : index
    %c0_58 = arith.constant 0 : index
    %c0_59 = arith.constant 0 : index
    %119 = vector.load %arg5[%c16, %c0_58, %c0_59] : memref<27x4x128xbf16, #tpu.memory_space<vmem>>, vector<1x4x128xbf16>
    %120 = vector.shape_cast %119 : vector<1x4x128xbf16> to vector<4x128xbf16>
    %121 = arith.truncf %118 : vector<64x4xf32> to vector<64x4xbf16>
    %cst_60 = arith.constant dense<0.000000e+00> : vector<64x128xf32>
    %122 = tpu.matmul %121, %120, %cst_60 {dimension_numbers = #tpu.dot_dimension_numbers<[1], [0], [0], [1], [0, 0, 1, 1], [], []>} : vector<64x4xbf16>, vector<4x128xbf16>, vector<64x128xf32> -> vector<64x128xf32>
    %123 = arith.addf %116, %122 : vector<64x128xf32>
    %124 = vector.extract_strided_slice %67 {offsets = [2, 2, 0], sizes = [8, 8, 4], strides = [1, 1, 1]} : vector<10x10x4xf32> to vector<8x8x4xf32>
    %125 = vector.shape_cast %124 : vector<8x8x4xf32> to vector<64x4xf32>
    %c17 = arith.constant 17 : index
    %c0_61 = arith.constant 0 : index
    %c0_62 = arith.constant 0 : index
    %126 = vector.load %arg5[%c17, %c0_61, %c0_62] : memref<27x4x128xbf16, #tpu.memory_space<vmem>>, vector<1x4x128xbf16>
    %127 = vector.shape_cast %126 : vector<1x4x128xbf16> to vector<4x128xbf16>
    %128 = arith.truncf %125 : vector<64x4xf32> to vector<64x4xbf16>
    %cst_63 = arith.constant dense<0.000000e+00> : vector<64x128xf32>
    %129 = tpu.matmul %128, %127, %cst_63 {dimension_numbers = #tpu.dot_dimension_numbers<[1], [0], [0], [1], [0, 0, 1, 1], [], []>} : vector<64x4xbf16>, vector<4x128xbf16>, vector<64x128xf32> -> vector<64x128xf32>
    %130 = arith.addf %123, %129 : vector<64x128xf32>
    %c0_64 = arith.constant 0 : index
    %c0_65 = arith.constant 0 : index
    %c0_66 = arith.constant 0 : index
    %c0_67 = arith.constant 0 : index
    %c0_68 = arith.constant 0 : index
    %131 = vector.load %arg4[%c0_64, %c0_65, %c0_66, %c0_67, %c0_68] : memref<1x1x10x10x4xf32, #tpu.memory_space<vmem>>, vector<1x1x10x10x4xf32>
    %132 = vector.shape_cast %131 : vector<1x1x10x10x4xf32> to vector<10x10x4xf32>
    %133 = vector.extract_strided_slice %132 {offsets = [0, 0, 0], sizes = [8, 8, 4], strides = [1, 1, 1]} : vector<10x10x4xf32> to vector<8x8x4xf32>
    %134 = vector.shape_cast %133 : vector<8x8x4xf32> to vector<64x4xf32>
    %c18 = arith.constant 18 : index
    %c0_69 = arith.constant 0 : index
    %c0_70 = arith.constant 0 : index
    %135 = vector.load %arg5[%c18, %c0_69, %c0_70] : memref<27x4x128xbf16, #tpu.memory_space<vmem>>, vector<1x4x128xbf16>
    %136 = vector.shape_cast %135 : vector<1x4x128xbf16> to vector<4x128xbf16>
    %137 = arith.truncf %134 : vector<64x4xf32> to vector<64x4xbf16>
    %cst_71 = arith.constant dense<0.000000e+00> : vector<64x128xf32>
    %138 = tpu.matmul %137, %136, %cst_71 {dimension_numbers = #tpu.dot_dimension_numbers<[1], [0], [0], [1], [0, 0, 1, 1], [], []>} : vector<64x4xbf16>, vector<4x128xbf16>, vector<64x128xf32> -> vector<64x128xf32>
    %139 = arith.addf %130, %138 : vector<64x128xf32>
    %140 = vector.extract_strided_slice %132 {offsets = [0, 1, 0], sizes = [8, 8, 4], strides = [1, 1, 1]} : vector<10x10x4xf32> to vector<8x8x4xf32>
    %141 = vector.shape_cast %140 : vector<8x8x4xf32> to vector<64x4xf32>
    %c19 = arith.constant 19 : index
    %c0_72 = arith.constant 0 : index
    %c0_73 = arith.constant 0 : index
    %142 = vector.load %arg5[%c19, %c0_72, %c0_73] : memref<27x4x128xbf16, #tpu.memory_space<vmem>>, vector<1x4x128xbf16>
    %143 = vector.shape_cast %142 : vector<1x4x128xbf16> to vector<4x128xbf16>
    %144 = arith.truncf %141 : vector<64x4xf32> to vector<64x4xbf16>
    %cst_74 = arith.constant dense<0.000000e+00> : vector<64x128xf32>
    %145 = tpu.matmul %144, %143, %cst_74 {dimension_numbers = #tpu.dot_dimension_numbers<[1], [0], [0], [1], [0, 0, 1, 1], [], []>} : vector<64x4xbf16>, vector<4x128xbf16>, vector<64x128xf32> -> vector<64x128xf32>
    %146 = arith.addf %139, %145 : vector<64x128xf32>
    %147 = vector.extract_strided_slice %132 {offsets = [0, 2, 0], sizes = [8, 8, 4], strides = [1, 1, 1]} : vector<10x10x4xf32> to vector<8x8x4xf32>
    %148 = vector.shape_cast %147 : vector<8x8x4xf32> to vector<64x4xf32>
    %c20 = arith.constant 20 : index
    %c0_75 = arith.constant 0 : index
    %c0_76 = arith.constant 0 : index
    %149 = vector.load %arg5[%c20, %c0_75, %c0_76] : memref<27x4x128xbf16, #tpu.memory_space<vmem>>, vector<1x4x128xbf16>
    %150 = vector.shape_cast %149 : vector<1x4x128xbf16> to vector<4x128xbf16>
    %151 = arith.truncf %148 : vector<64x4xf32> to vector<64x4xbf16>
    %cst_77 = arith.constant dense<0.000000e+00> : vector<64x128xf32>
    %152 = tpu.matmul %151, %150, %cst_77 {dimension_numbers = #tpu.dot_dimension_numbers<[1], [0], [0], [1], [0, 0, 1, 1], [], []>} : vector<64x4xbf16>, vector<4x128xbf16>, vector<64x128xf32> -> vector<64x128xf32>
    %153 = arith.addf %146, %152 : vector<64x128xf32>
    %154 = vector.extract_strided_slice %132 {offsets = [1, 0, 0], sizes = [8, 8, 4], strides = [1, 1, 1]} : vector<10x10x4xf32> to vector<8x8x4xf32>
    %155 = vector.shape_cast %154 : vector<8x8x4xf32> to vector<64x4xf32>
    %c21 = arith.constant 21 : index
    %c0_78 = arith.constant 0 : index
    %c0_79 = arith.constant 0 : index
    %156 = vector.load %arg5[%c21, %c0_78, %c0_79] : memref<27x4x128xbf16, #tpu.memory_space<vmem>>, vector<1x4x128xbf16>
    %157 = vector.shape_cast %156 : vector<1x4x128xbf16> to vector<4x128xbf16>
    %158 = arith.truncf %155 : vector<64x4xf32> to vector<64x4xbf16>
    %cst_80 = arith.constant dense<0.000000e+00> : vector<64x128xf32>
    %159 = tpu.matmul %158, %157, %cst_80 {dimension_numbers = #tpu.dot_dimension_numbers<[1], [0], [0], [1], [0, 0, 1, 1], [], []>} : vector<64x4xbf16>, vector<4x128xbf16>, vector<64x128xf32> -> vector<64x128xf32>
    %160 = arith.addf %153, %159 : vector<64x128xf32>
    %161 = vector.extract_strided_slice %132 {offsets = [1, 1, 0], sizes = [8, 8, 4], strides = [1, 1, 1]} : vector<10x10x4xf32> to vector<8x8x4xf32>
    %162 = vector.shape_cast %161 : vector<8x8x4xf32> to vector<64x4xf32>
    %c22 = arith.constant 22 : index
    %c0_81 = arith.constant 0 : index
    %c0_82 = arith.constant 0 : index
    %163 = vector.load %arg5[%c22, %c0_81, %c0_82] : memref<27x4x128xbf16, #tpu.memory_space<vmem>>, vector<1x4x128xbf16>
    %164 = vector.shape_cast %163 : vector<1x4x128xbf16> to vector<4x128xbf16>
    %165 = arith.truncf %162 : vector<64x4xf32> to vector<64x4xbf16>
    %cst_83 = arith.constant dense<0.000000e+00> : vector<64x128xf32>
    %166 = tpu.matmul %165, %164, %cst_83 {dimension_numbers = #tpu.dot_dimension_numbers<[1], [0], [0], [1], [0, 0, 1, 1], [], []>} : vector<64x4xbf16>, vector<4x128xbf16>, vector<64x128xf32> -> vector<64x128xf32>
    %167 = arith.addf %160, %166 : vector<64x128xf32>
    %168 = vector.extract_strided_slice %132 {offsets = [1, 2, 0], sizes = [8, 8, 4], strides = [1, 1, 1]} : vector<10x10x4xf32> to vector<8x8x4xf32>
    %169 = vector.shape_cast %168 : vector<8x8x4xf32> to vector<64x4xf32>
    %c23 = arith.constant 23 : index
    %c0_84 = arith.constant 0 : index
    %c0_85 = arith.constant 0 : index
    %170 = vector.load %arg5[%c23, %c0_84, %c0_85] : memref<27x4x128xbf16, #tpu.memory_space<vmem>>, vector<1x4x128xbf16>
    %171 = vector.shape_cast %170 : vector<1x4x128xbf16> to vector<4x128xbf16>
    %172 = arith.truncf %169 : vector<64x4xf32> to vector<64x4xbf16>
    %cst_86 = arith.constant dense<0.000000e+00> : vector<64x128xf32>
    %173 = tpu.matmul %172, %171, %cst_86 {dimension_numbers = #tpu.dot_dimension_numbers<[1], [0], [0], [1], [0, 0, 1, 1], [], []>} : vector<64x4xbf16>, vector<4x128xbf16>, vector<64x128xf32> -> vector<64x128xf32>
    %174 = arith.addf %167, %173 : vector<64x128xf32>
    %175 = vector.extract_strided_slice %132 {offsets = [2, 0, 0], sizes = [8, 8, 4], strides = [1, 1, 1]} : vector<10x10x4xf32> to vector<8x8x4xf32>
    %176 = vector.shape_cast %175 : vector<8x8x4xf32> to vector<64x4xf32>
    %c24 = arith.constant 24 : index
    %c0_87 = arith.constant 0 : index
    %c0_88 = arith.constant 0 : index
    %177 = vector.load %arg5[%c24, %c0_87, %c0_88] : memref<27x4x128xbf16, #tpu.memory_space<vmem>>, vector<1x4x128xbf16>
    %178 = vector.shape_cast %177 : vector<1x4x128xbf16> to vector<4x128xbf16>
    %179 = arith.truncf %176 : vector<64x4xf32> to vector<64x4xbf16>
    %cst_89 = arith.constant dense<0.000000e+00> : vector<64x128xf32>
    %180 = tpu.matmul %179, %178, %cst_89 {dimension_numbers = #tpu.dot_dimension_numbers<[1], [0], [0], [1], [0, 0, 1, 1], [], []>} : vector<64x4xbf16>, vector<4x128xbf16>, vector<64x128xf32> -> vector<64x128xf32>
    %181 = arith.addf %174, %180 : vector<64x128xf32>
    %182 = vector.extract_strided_slice %132 {offsets = [2, 1, 0], sizes = [8, 8, 4], strides = [1, 1, 1]} : vector<10x10x4xf32> to vector<8x8x4xf32>
    %183 = vector.shape_cast %182 : vector<8x8x4xf32> to vector<64x4xf32>
    %c25 = arith.constant 25 : index
    %c0_90 = arith.constant 0 : index
    %c0_91 = arith.constant 0 : index
    %184 = vector.load %arg5[%c25, %c0_90, %c0_91] : memref<27x4x128xbf16, #tpu.memory_space<vmem>>, vector<1x4x128xbf16>
    %185 = vector.shape_cast %184 : vector<1x4x128xbf16> to vector<4x128xbf16>
    %186 = arith.truncf %183 : vector<64x4xf32> to vector<64x4xbf16>
    %cst_92 = arith.constant dense<0.000000e+00> : vector<64x128xf32>
    %187 = tpu.matmul %186, %185, %cst_92 {dimension_numbers = #tpu.dot_dimension_numbers<[1], [0], [0], [1], [0, 0, 1, 1], [], []>} : vector<64x4xbf16>, vector<4x128xbf16>, vector<64x128xf32> -> vector<64x128xf32>
    %188 = arith.addf %181, %187 : vector<64x128xf32>
    %189 = vector.extract_strided_slice %132 {offsets = [2, 2, 0], sizes = [8, 8, 4], strides = [1, 1, 1]} : vector<10x10x4xf32> to vector<8x8x4xf32>
    %190 = vector.shape_cast %189 : vector<8x8x4xf32> to vector<64x4xf32>
    %c26 = arith.constant 26 : index
    %c0_93 = arith.constant 0 : index
    %c0_94 = arith.constant 0 : index
    %191 = vector.load %arg5[%c26, %c0_93, %c0_94] : memref<27x4x128xbf16, #tpu.memory_space<vmem>>, vector<1x4x128xbf16>
    %192 = vector.shape_cast %191 : vector<1x4x128xbf16> to vector<4x128xbf16>
    %193 = arith.truncf %190 : vector<64x4xf32> to vector<64x4xbf16>
    %cst_95 = arith.constant dense<0.000000e+00> : vector<64x128xf32>
    %194 = tpu.matmul %193, %192, %cst_95 {dimension_numbers = #tpu.dot_dimension_numbers<[1], [0], [0], [1], [0, 0, 1, 1], [], []>} : vector<64x4xbf16>, vector<4x128xbf16>, vector<64x128xf32> -> vector<64x128xf32>
    %195 = arith.addf %188, %194 : vector<64x128xf32>
    %c0_96 = arith.constant 0 : index
    %c0_97 = arith.constant 0 : index
    %196 = vector.load %arg6[%c0_96, %c0_97] : memref<1x128xf32, #tpu.memory_space<vmem>>, vector<1x128xf32>
    %197 = vector.broadcast %196 : vector<1x128xf32> to vector<64x128xf32>
    %198 = arith.addf %195, %197 : vector<64x128xf32>
    %c0_98 = arith.constant 0 : index
    %c0_99 = arith.constant 0 : index
    %c0_100 = arith.constant 0 : index
    %c0_101 = arith.constant 0 : index
    %199 = vector.load %arg7[%c0_98, %c0_99, %c0_100, %c0_101] : memref<1x1x64x128xf32, #tpu.memory_space<vmem>>, vector<1x1x64x128xf32>
    %200 = vector.shape_cast %199 : vector<1x1x64x128xf32> to vector<64x128xf32>
    %201 = vector.shape_cast %198 : vector<64x128xf32> to vector<1x1x64x128xf32>
    tpu.vector_store %arg7[%c0_98, %c0_99, %c0_100, %c0_101], %201 {strides = array<i32>} : memref<1x1x64x128xf32, #tpu.memory_space<vmem>>, vector<1x1x64x128xf32>,
    %cst_102 = arith.constant dense<0.000000e+00> : vector<128xf32>
    %202 = vector.multi_reduction <add>, %198, %cst_102 [0] : vector<64x128xf32> to vector<128xf32>
    %203 = vector.shape_cast %202 : vector<128xf32> to vector<1x128xf32>
    %204 = arith.mulf %198, %198 : vector<64x128xf32>
    %cst_103 = arith.constant dense<0.000000e+00> : vector<128xf32>
    %205 = vector.multi_reduction <add>, %204, %cst_103 [0] : vector<64x128xf32> to vector<128xf32>
    %206 = vector.shape_cast %205 : vector<128xf32> to vector<1x128xf32>
    %cst_104 = arith.constant 0.000000e+00 : f32
    %207 = vector.broadcast %cst_104 : f32 to vector<6x128xf32>
    %208 = tpu.concatenate %203, %206, %207 in 0 : vector<1x128xf32>, vector<1x128xf32>, vector<6x128xf32> -> vector<8x128xf32>
    %c0_105 = arith.constant 0 : index
    %c0_106 = arith.constant 0 : index
    %c0_107 = arith.constant 0 : index
    %c0_108 = arith.constant 0 : index
    %209 = vector.load %arg8[%c0_105, %c0_106, %c0_107, %c0_108] : memref<1x1x8x128xf32, #tpu.memory_space<vmem>>, vector<1x1x8x128xf32>
    %210 = vector.shape_cast %209 : vector<1x1x8x128xf32> to vector<8x128xf32>
    %211 = vector.shape_cast %208 : vector<8x128xf32> to vector<1x1x8x128xf32>
    tpu.vector_store %arg8[%c0_105, %c0_106, %c0_107, %c0_108], %211 {strides = array<i32>} : memref<1x1x8x128xf32, #tpu.memory_space<vmem>>, vector<1x1x8x128xf32>,
    return
  }
  func.func @transform_0(%arg0: i32, %arg1: i32) -> (i32, i32, i32, i32, i32) {
    %c0_i32 = arith.constant 0 : i32
    %0 = arith.addi %arg1, %c0_i32 : i32
    %c0_i32_0 = arith.constant 0 : i32
    %c0_i32_1 = arith.constant 0 : i32
    %c0_i32_2 = arith.constant 0 : i32
    %c0_i32_3 = arith.constant 0 : i32
    return %arg0, %0, %c0_i32_0, %c0_i32_1, %c0_i32_2 : i32, i32, i32, i32, i32
  }
  func.func @transform_1(%arg0: i32, %arg1: i32) -> (i32, i32, i32, i32, i32) {
    %c1_i32 = arith.constant 1 : i32
    %0 = arith.addi %arg1, %c1_i32 : i32
    %c0_i32 = arith.constant 0 : i32
    %c0_i32_0 = arith.constant 0 : i32
    %c0_i32_1 = arith.constant 0 : i32
    %c0_i32_2 = arith.constant 0 : i32
    return %arg0, %0, %c0_i32, %c0_i32_0, %c0_i32_1 : i32, i32, i32, i32, i32
  }
  func.func @transform_2(%arg0: i32, %arg1: i32) -> (i32, i32, i32, i32, i32) {
    %c2_i32 = arith.constant 2 : i32
    %0 = arith.addi %arg1, %c2_i32 : i32
    %c0_i32 = arith.constant 0 : i32
    %c0_i32_0 = arith.constant 0 : i32
    %c0_i32_1 = arith.constant 0 : i32
    %c0_i32_2 = arith.constant 0 : i32
    return %arg0, %0, %c0_i32, %c0_i32_0, %c0_i32_1 : i32, i32, i32, i32, i32
  }
  func.func @transform_3(%arg0: i32, %arg1: i32) -> (i32, i32, i32) {
    %c0_i32 = arith.constant 0 : i32
    %c0_i32_0 = arith.constant 0 : i32
    %c0_i32_1 = arith.constant 0 : i32
    %c0_i32_2 = arith.constant 0 : i32
    return %c0_i32, %c0_i32_0, %c0_i32_1 : i32, i32, i32
  }
  func.func @transform_4(%arg0: i32, %arg1: i32) -> (i32, i32) {
    %c0_i32 = arith.constant 0 : i32
    %c0_i32_0 = arith.constant 0 : i32
    %c0_i32_1 = arith.constant 0 : i32
    return %c0_i32, %c0_i32_0 : i32, i32
  }
  func.func @transform_5(%arg0: i32, %arg1: i32) -> (i32, i32, i32, i32) {
    %c0_i32 = arith.constant 0 : i32
    %c0_i32_0 = arith.constant 0 : i32
    %c0_i32_1 = arith.constant 0 : i32
    return %arg0, %arg1, %c0_i32, %c0_i32_0 : i32, i32, i32, i32
  }
  func.func @transform_6(%arg0: i32, %arg1: i32) -> (i32, i32, i32, i32) {
    %c0_i32 = arith.constant 0 : i32
    %c0_i32_0 = arith.constant 0 : i32
    %c0_i32_1 = arith.constant 0 : i32
    return %arg0, %arg1, %c0_i32, %c0_i32_0 : i32, i32, i32, i32
  }
}

</mosaic_0001>

<bundles_post_ra>
// kernel: tile.8
= control target key start
LH: loop header
LB: loop body
LE: loop exit
PB: predicated region body
PF: predicated region fallthrough
CT: control target
= control target key end

     0   :  { %s22_s0 = inlined_call_operand.vmem [shape: f32[16], index: 0, kind: input, shape index: {}]   ;;  %s23_s1 = inlined_call_operand.vmem [shape: f32[8,16], index: 1, kind: output, shape index: {}]  }
   0x1   :  { %v4_v0 = vld [vmem:[%s22_s0] ss:$0 sm:$0xff] }
   0x2   :  { %5 = vst [vmem:[%s23_s1] sm:$0xff] %v4_v0 }

// kernel: tile.9
= control target key start
LH: loop header
LB: loop body
LE: loop exit
PB: predicated region body
PF: predicated region fallthrough
CT: control target
= control target key end

     0   :  { %s67_s10 = smov 112   ;;  %s68_s11 = smov 80   ;;  %vm3_vm0 = vcmask 130048   ;;  %vm9_vm1 = vcmask 1048448   ;;  %vm15_vm2 = vcmask 917248   ;;  %vm21_vm3 = vcmask 786048   ;;  %s111_s0 = inlined_call_operand.vmem [shape: f32[8,16], index: 0, kind: input, shape index: {}]   ;;  %s112_s1 = inlined_call_operand.vmem [shape: f32[1,128], index: 1, kind: output, shape index: {}]  }
   0x1   :  { %v53_v0 = vld [vmem:[%s111_s0 + $0x7] sm:$0x1]   ;;  %v55_v1 = vld [vmem:[%s111_s0 + $0x5] sm:$0x1]   ;;  %v54_v2 = vld [vmem:[%s111_s0 + $0x6] sm:$0x1]  }
   0x2   :  { %7 = vrot.lane.b32.xlu0 %v53_v0, %s67_s10  ;;  %19 = vrot.lane.b32.xlu1 %v55_v1, %s68_s11  ;;  %v56_v3 = vld [vmem:[%s111_s0 + $0x4] sm:$0x1]   ;;  %v2_v4 = vld [vmem:[%s111_s0] sm:$0x1]   ;;  %s69_s18 = smov 96   ;;  %s70_s19 = smov 64  }
   0x3   :  { %4 = vst.msk [vmem:[#allocation0] sm:$0x1] %vm3_vm0, %v2_v4   ;;  %v57_v5 = vld [vmem:[%s111_s0 + $0x3] sm:$0x1]   ;;  %v58_v6 = vld [vmem:[%s111_s0 + $0x2] sm:$0x1]  }
   0x4   :  { %s71_s24 = smov 48   ;;  %s72_s25 = smov 32   ;;  %v59_v7 = vld [vmem:[%s111_s0 + $0x1] sm:$0x1]   ;;  %vm27_vm4 = vcmask 654848   ;;  %vm33_vm5 = vcmask 523648  }
   0x5   :  { %s73_s0 = smov 16   ;;  %vm39_vm6 = vcmask 392448   ;;  %vm45_vm7 = vcmask 261248  }
   0x6   :  { %13 = vrot.lane.b32.xlu0 %v54_v2, %s69_s18  ;;  %25 = vrot.lane.b32.xlu1 %v56_v3, %s70_s19 }
   0xa   :  { %31 = vrot.lane.b32.xlu0 %v57_v5, %s71_s24  ;;  %37 = vrot.lane.b32.xlu1 %v58_v6, %s72_s25 }
   0xe   :  { %43 = vrot.lane.b32.xlu0 %v59_v7, %s73_s0 }
  0x74   :  { %v8_v8 = vpop.permute.xlu0 %7   ;;  %v20_v9 = vpop.permute.xlu1 %19  }
  0x75   :  { %10 = vst.msk [vmem:[#allocation0] sm:$0x1] %vm9_vm1, %v8_v8  }
  0x78   :  { %v14_v10 = vpop.permute.xlu0 %13   ;;  %v26_v11 = vpop.permute.xlu1 %25  }
  0x79   :  { %16 = vst.msk [vmem:[#allocation0] sm:$0x1] %vm15_vm2, %v14_v10  }
  0x7a   :  { %22 = vst.msk [vmem:[#allocation0] sm:$0x1] %vm21_vm3, %v20_v9  }
  0x7b   :  { %28 = vst.msk [vmem:[#allocation0] sm:$0x1] %vm27_vm4, %v26_v11  }
  0x7c   :  { %v32_v12 = vpop.permute.xlu0 %31   ;;  %v38_v13 = vpop.permute.xlu1 %37  }
  0x7d   :  { %34 = vst.msk [vmem:[#allocation0] sm:$0x1] %vm33_vm5, %v32_v12  }
  0x7e   :  { %40 = vst.msk [vmem:[#allocation0] sm:$0x1] %vm39_vm6, %v38_v13  }
  0x80   :  { %v44_v14 = vpop.permute.xlu0 %43  }
  0x81   :  { %46 = vst.msk [vmem:[#allocation0] sm:$0x1] %vm45_vm7, %v44_v14  }
  0x88   :  { %v50_v15 = vld [vmem:[#allocation0] sm:$0x1] }
  0x89   :  { %52 = vst [vmem:[%s112_s1] sm:$0x1] %v50_v15 }

// kernel: up_block_forward.5
= control target key start
LH: loop header
LB: loop body
LE: loop exit
PB: predicated region body
PF: predicated region fallthrough
CT: control target
= control target key end

     0   :  { %8 = vsyncpa [#allocation3], 0  ;;  %s275_s12 = smov [#allocation2]   ;;  %s372_s0 = inlined_call_operand.hbm [shape: f32[128,8], index: 0, kind: input, shape index: {}]   ;;  %s373_s1 = inlined_call_operand.vmem [shape: bf16[8,128], index: 1, kind: input, shape index: {}]   ;;  %s374_s2 = inlined_call_operand.vmem [shape: f32[1,128], index: 2, kind: input, shape index: {}]   ;;  %s375_s3 = inlined_call_operand.vmem [shape: f32[128,128], index: 3, kind: output, shape index: {}]  }
   0x1   :  { %s14_s13 = sshll.u32 %s275_s12, 4  ;;  %s251_s16 = scalar_lea.hbm %s372_s0, 2048  ;;  %s15_s13 = int_to_ptr.vmem [resolvable:$true] %s14_s13 }
   0x2   :  { %p252_p0 = scmp.ne.s32.totalorder %s372_s0, %s251_s16  ;;  %p255_p1 = scmp.lt.u32.totalorder %s251_s16, %s372_s0 }
   0x4   :  { %p257_p2 = pnand %p255_p1, %p252_p0 }
   0x6   :  { %260 = shalt.err (!%p257_p2)
}
   0x7   :  { %s261_s21 = scalar_lea.vmem %s15_s13, 2048  ;;  %p266_p4 = scmp.lt.s32.totalorder %s15_s13, %s15_s13 }
   0x8   :  { %p262_p3 = scmp.ne.s32.totalorder %s15_s13, %s261_s21  ;;  %p267_p5 = scmp.lt.s32.totalorder %s261_s21, %s261_s21 }
   0xa   :  { %p268_p6 = por %p267_p5, %p266_p4 }
   0xc   :  { %p269_p7 = pnand %p268_p6, %p262_p3 }
   0xe   :  { %272 = shalt.err (!%p269_p7)
}
   0xf   :  { %s276_s22 = smov 128   ;;  %s277_s23 = smov 8  }
  0x10   :  { %20 = dma.hbm_to_vmem [thread:$0]  %s372_s0, 2048, %s15_s13, [#allocation3], %s276_s22, %s276_s22, %s277_s23  }
  0x11   :  { %273 = dma.done.wait [#allocation3], 2048  }
  0x12   :  { %274 = vsyncadd [#allocation3], 4294965248  ;;  %vm86_vm0 = vcmask 1043456   ;;  %v53_v0 = vld [vmem:[%s373_s1] sm:$0xf]  ;;  %v30_v2 = vld [vmem:[#allocation2 + $0x8] sm:$0xff] }
  0x13   :  { %v29_v1 = vld [vmem:[#allocation2] sm:$0xff]  ;;  %vm61_vm1 = vcmask 64512   ;;  %246 = vmatprep.subr.msk.bf16.mxu0 %vm86_vm0, %v53_v0  ;;  %247 = vmatprep.subr.msk.bf16.mxu1 %vm86_vm0, %v53_v0  ;;  %v88_v3 = vsel %vm86_vm0, %v53_v0, 0  ;;  %v38_v6 = vld [vmem:[#allocation2 + $0x48] sm:$0xff]  ;;  %v31_v7 = vld [vmem:[#allocation2 + $0x10] sm:$0xff] }
  0x14   :  { %v45_v4 = vpack.c.bf16 %v30_v2, %v29_v1  ;;  %v37_v5 = vld [vmem:[#allocation2 + $0x40] sm:$0xff]  ;;  %227 = vmatpush3.bf16.msra.mxu0 %v88_v3  ;;  %245 = vmatpush3.bf16.msra.mxu1 %v88_v3  ;;  %v32_v9 = vld [vmem:[#allocation2 + $0x18] sm:$0xff]  ;;  %v39_v10 = vld [vmem:[#allocation2 + $0x50] sm:$0xff] }
  0x15   :  { %v49_v8 = vpack.c.bf16 %v38_v6, %v37_v5  ;;  %v40_v11 = vld [vmem:[#allocation2 + $0x58] sm:$0xff]  ;;  %v46_v12 = vpack.c.bf16 %v32_v9, %v31_v7  ;;  %v33_v14 = vld [vmem:[#allocation2 + $0x20] sm:$0xff]  ;;  %v34_v15 = vld [vmem:[#allocation2 + $0x28] sm:$0xff] }
  0x16   :  { %228 = vmatprep.mubr.msk.bf16.mxu0 %vm61_vm1, %v45_v4  ;;  %v50_v13 = vpack.c.bf16 %v40_v11, %v39_v10  ;;  %v41_v16 = vld [vmem:[#allocation2 + $0x60] sm:$0xff]  ;;  %v47_v17 = vpack.c.bf16 %v34_v15, %v33_v14  ;;  %v42_v18 = vld [vmem:[#allocation2 + $0x68] sm:$0xff]  ;;  %v35_v20 = vld [vmem:[#allocation2 + $0x30] sm:$0xff] }
  0x17   :  { %236 = vmatprep.mubr.msk.bf16.mxu1 %vm61_vm1, %v49_v8  ;;  %229 = vmatmul.mubr.msk.bf16.vlgmr.msra.gmra.mrb[0].mxu0 %vm61_vm1, %v46_v12  ;;  %v51_v19 = vpack.c.bf16 %v42_v18, %v41_v16  ;;  %v36_v21 = vld [vmem:[#allocation2 + $0x38] sm:$0xff]  ;;  %v43_v22 = vld [vmem:[#allocation2 + $0x70] sm:$0xff]  ;;  %v208_v26 = vld [vmem:[%s374_s2] ss:$0 sm:$0xff] }
  0x18   :  { %237 = vmatmul.mubr.msk.bf16.vlgmr.msra.gmra.mrb[0].mxu1 %vm61_vm1, %v50_v13  ;;  %232 = vmatprep.mubr.msk.bf16.mxu0 %vm61_vm1, %v47_v17  ;;  %v44_v23 = vld [vmem:[#allocation2 + $0x78] sm:$0xff]  ;;  %v48_v24 = vpack.c.bf16 %v36_v21, %v35_v20 }
  0x19   :  { %240 = vmatprep.mubr.msk.bf16.mxu1 %vm61_vm1, %v51_v19  ;;  %v52_v25 = vpack.c.bf16 %v44_v23, %v43_v22 }
  0x1f   :  { %233 = vmatmul.mubr.msk.bf16.gmra.mrb[4].mxu0 %vm61_vm1, %v48_v24 }
  0x20   :  { %241 = vmatmul.mubr.msk.bf16.gmra.mrb[4].mxu1 %vm61_vm1, %v52_v25 }
  0xea   :  { %v230_v27 = vpop.f32.mrb[0].mxu0 }
  0xeb   :  { %v238_v28 = vpop.f32.mrb[0].mxu1  ;;  %v133_v29 = vadd.f32 %v230_v27, %v208_v26  ;;  %v124_v31 = vpop.f32.mrb[1].mxu0 }
  0xec   :  { %v165_v30 = vadd.f32 %v238_v28, %v208_v26  ;;  %v156_v32 = vpop.f32.mrb[1].mxu1  ;;  %v125_v33 = vadd.f32 %v208_v26, %v124_v31  ;;  %v231_v35 = vpop.f32.mrb[2].mxu0 }
  0xed   :  { %v157_v34 = vadd.f32 %v208_v26, %v156_v32  ;;  %v239_v36 = vpop.f32.mrb[2].mxu1  ;;  %189 = vst [vmem:[%s375_s3 + $0x10] sm:$0xff] %v133_v29  ;;  %v136_v37 = vadd.f32 %v231_v35, %v208_v26  ;;  %v127_v39 = vpop.f32.mrb[3].mxu0 }
  0xee   :  { %197 = vst [vmem:[%s375_s3 + $0x50] sm:$0xff] %v165_v30  ;;  %v168_v38 = vadd.f32 %v239_v36, %v208_v26  ;;  %v159_v40 = vpop.f32.mrb[3].mxu1  ;;  %187 = vst [vmem:[%s375_s3] sm:$0xff] %v125_v33  ;;  %v128_v41 = vadd.f32 %v208_v26, %v127_v39 }
  0xef   :  { %195 = vst [vmem:[%s375_s3 + $0x40] sm:$0xff] %v157_v34  ;;  %v160_v42 = vadd.f32 %v208_v26, %v159_v40  ;;  %190 = vst [vmem:[%s375_s3 + $0x18] sm:$0xff] %v136_v37 }
  0xf0   :  { %198 = vst [vmem:[%s375_s3 + $0x58] sm:$0xff] %v168_v38  ;;  %188 = vst [vmem:[%s375_s3 + $0x8] sm:$0xff] %v128_v41 }
  0xf1   :  { %196 = vst [vmem:[%s375_s3 + $0x48] sm:$0xff] %v160_v42 }
  0xf2   :  { %v234_v43 = vpop.f32.mrb[4].mxu0 }
  0xf3   :  { %v242_v44 = vpop.f32.mrb[4].mxu1  ;;  %v149_v45 = vadd.f32 %v234_v43, %v208_v26  ;;  %v140_v47 = vpop.f32.mrb[5].mxu0 }
  0xf4   :  { %v181_v46 = vadd.f32 %v242_v44, %v208_v26  ;;  %v172_v48 = vpop.f32.mrb[5].mxu1  ;;  %v141_v49 = vadd.f32 %v208_v26, %v140_v47  ;;  %v235_v51 = vpop.f32.mrb[6].mxu0 }
  0xf5   :  { %v173_v50 = vadd.f32 %v208_v26, %v172_v48  ;;  %v243_v52 = vpop.f32.mrb[6].mxu1  ;;  %193 = vst [vmem:[%s375_s3 + $0x30] sm:$0xff] %v149_v45  ;;  %v152_v53 = vadd.f32 %v235_v51, %v208_v26  ;;  %v143_v55 = vpop.f32.mrb[7].mxu0 }
  0xf6   :  { %201 = vst [vmem:[%s375_s3 + $0x70] sm:$0xff] %v181_v46  ;;  %v184_v54 = vadd.f32 %v243_v52, %v208_v26  ;;  %v175_v56 = vpop.f32.mrb[7].mxu1  ;;  %191 = vst [vmem:[%s375_s3 + $0x20] sm:$0xff] %v141_v49  ;;  %v144_v57 = vadd.f32 %v208_v26, %v143_v55 }
  0xf7   :  { %199 = vst [vmem:[%s375_s3 + $0x60] sm:$0xff] %v173_v50  ;;  %v176_v58 = vadd.f32 %v208_v26, %v175_v56  ;;  %194 = vst [vmem:[%s375_s3 + $0x38] sm:$0xff] %v152_v53 }
  0xf8   :  { %202 = vst [vmem:[%s375_s3 + $0x78] sm:$0xff] %v184_v54  ;;  %192 = vst [vmem:[%s375_s3 + $0x28] sm:$0xff] %v144_v57 }
  0xf9   :  { %200 = vst [vmem:[%s375_s3 + $0x68] sm:$0xff] %v176_v58 }
  0xfa   :  { %207 = vsyncpa [#allocation3], 1 }

// kernel: up_block_forward.7
= control target key start
LH: loop header
LB: loop body
LE: loop exit
PB: predicated region body
PF: predicated region fallthrough
CT: control target
= control target key end

     0   :  { %s613_s12 = smov 0   ;;  %s900_s0 = inlined_call_operand.vmem [shape: f32[1024,128], index: 0, kind: input, shape index: {}]   ;;  %s901_s1 = inlined_call_operand.vmem [shape: f32[1,128], index: 1, kind: input, shape index: {}]   ;;  %s902_s2 = inlined_call_operand.vmem [shape: f32[1,128], index: 2, kind: input, shape index: {}]   ;;  %s903_s3 = inlined_call_operand.vmem [shape: f32[1024,128], index: 3, kind: output, shape index: {}]  }
   0x1 LB: > { %s564_s13 = sadd.s32 4294967295, %s591_s12   ;;  %p568_p0 = scmp.ge.s32.totalorder %s591_s12, 1  ;;  %s591_s12 = sphi %s613_s12, %s13_s12  }
   0x2   : > { %p138_p1 = scmp.lt.s32.totalorder %s591_s12, 3 }
   0x4   : > { %p139_p2 = pnand %p568_p0, %p138_p1 }
   0x5   : > { %s569_s14 = sshll.u32 (!%p139_p2), %s564_s13, 6  ;;  %v624_v0 = vld [vmem:[%s901_s1] ss:$0 sm:$0xff] (!%p139_p2) }
   0x6   : > { %142 = sbr.rel (%p139_p2) target bundleno = 70 (0x46), region = 32  ;;  %p163_p3 = scmp.lt.s32.totalorder (!%p139_p2), %s569_s14, 127  ;;  %v634_v1 = vld [vmem:[%s902_s2] ss:$0 sm:$0xff] (!%p139_p2) }
   0xd   : > { %s905_s14 = smov (!%p163_p3, %s569_s14), 127 }
   0xe   : > { %s570_s15 = sshll.u32 %s905_s14, 3 }
   0xf   : > { %s629_s20 = scalar_lea.vmem %s900_s0, %s570_s15  ;;  %s657_s25 = scalar_lea.vmem %s903_s3, %s570_s15 }
  0x10   : > { %v174_v2 = vld [vmem:[%s629_s20] sm:$0xff]  ;;  %v175_v3 = vld [vmem:[%s629_s20 + $0x8] sm:$0xff]  ;;  %v176_v4 = vld [vmem:[%s629_s20 + $0x10] sm:$0xff] }
  0x11   : > { %v245_v5 = vmul.f32 %v624_v0, %v174_v2  ;;  %v246_v6 = vmul.f32 %v624_v0, %v175_v3  ;;  %v247_v7 = vmul.f32 %v624_v0, %v176_v4  ;;  %v177_v8 = vld [vmem:[%s629_s20 + $0x18] sm:$0xff]  ;;  %v178_v9 = vld [vmem:[%s629_s20 + $0x20] sm:$0xff]  ;;  %v179_v10 = vld [vmem:[%s629_s20 + $0x28] sm:$0xff] }
  0x12   : > { %v248_v11 = vmul.f32 %v624_v0, %v177_v8  ;;  %v249_v12 = vmul.f32 %v624_v0, %v178_v9  ;;  %v250_v13 = vmul.f32 %v624_v0, %v179_v10  ;;  %v180_v14 = vld [vmem:[%s629_s20 + $0x30] sm:$0xff]  ;;  %v181_v15 = vld [vmem:[%s629_s20 + $0x38] sm:$0xff]  ;;  %v182_v24 = vld [vmem:[%s629_s20 + $0x40] sm:$0xff] }
  0x13   : > { %v316_v16 = vadd.f32 %v634_v1, %v245_v5  ;;  %v317_v17 = vadd.f32 %v634_v1, %v246_v6  ;;  %v318_v18 = vadd.f32 %v634_v1, %v247_v7  ;;  %v251_v19 = vmul.f32 %v624_v0, %v180_v14  ;;  %v183_v25 = vld [vmem:[%s629_s20 + $0x48] sm:$0xff]  ;;  %v184_v26 = vld [vmem:[%s629_s20 + $0x50] sm:$0xff]  ;;  %v185_v31 = vld [vmem:[%s629_s20 + $0x58] sm:$0xff] }
  0x14   : > { %v319_v20 = vadd.f32 %v634_v1, %v248_v11  ;;  %v320_v21 = vadd.f32 %v634_v1, %v249_v12  ;;  %v321_v22 = vadd.f32 %v634_v1, %v250_v13  ;;  %v252_v23 = vmul.f32 %v624_v0, %v181_v15  ;;  %v186_v32 = vld [vmem:[%s629_s20 + $0x60] sm:$0xff]  ;;  %v187_v33 = vld [vmem:[%s629_s20 + $0x68] sm:$0xff]  ;;  %v188_v38 = vld [vmem:[%s629_s20 + $0x70] sm:$0xff] }
  0x15   : > { %v380_v27 = vmax.f32 %v316_v16, 0.0  ;;  %v381_v28 = vmax.f32 %v317_v17, 0.0  ;;  %v382_v29 = vmax.f32 %v318_v18, 0.0  ;;  %v322_v30 = vadd.f32 %v634_v1, %v251_v19  ;;  %v189_v43 = vld [vmem:[%s629_s20 + $0x78] sm:$0xff]  ;;  %v190_v56 = vld [vmem:[%s629_s20 + $0x80] sm:$0xff]  ;;  %v191_v57 = vld [vmem:[%s629_s20 + $0x88] sm:$0xff] }
  0x16   : > { %v383_v34 = vmax.f32 %v319_v20, 0.0  ;;  %v384_v35 = vmax.f32 %v320_v21, 0.0  ;;  %v385_v36 = vmax.f32 %v321_v22, 0.0  ;;  %v323_v37 = vadd.f32 %v634_v1, %v252_v23  ;;  %v192_v58 = vld [vmem:[%s629_s20 + $0x90] sm:$0xff]  ;;  %v193_v63 = vld [vmem:[%s629_s20 + $0x98] sm:$0xff]  ;;  %v194_v2 = vld [vmem:[%s629_s20 + $0xa0] sm:$0xff] }
  0x17   : > { %444 = vst [vmem:[%s657_s25] sm:$0xff] %v380_v27  ;;  %445 = vst [vmem:[%s657_s25 + $0x8] sm:$0xff] %v381_v28  ;;  %v386_v39 = vmax.f32 %v322_v30, 0.0  ;;  %v253_v40 = vmul.f32 %v624_v0, %v182_v24  ;;  %v254_v41 = vmul.f32 %v624_v0, %v183_v25  ;;  %v255_v42 = vmul.f32 %v624_v0, %v184_v26  ;;  %v195_v3 = vld [vmem:[%s629_s20 + $0xa8] sm:$0xff]  ;;  %v196_v8 = vld [vmem:[%s629_s20 + $0xb0] sm:$0xff] }
  0x18   : > { %446 = vst [vmem:[%s657_s25 + $0x10] sm:$0xff] %v382_v29  ;;  %447 = vst [vmem:[%s657_s25 + $0x18] sm:$0xff] %v383_v34  ;;  %v387_v44 = vmax.f32 %v323_v37, 0.0  ;;  %v256_v45 = vmul.f32 %v624_v0, %v185_v31  ;;  %v257_v46 = vmul.f32 %v624_v0, %v186_v32  ;;  %v258_v47 = vmul.f32 %v624_v0, %v187_v33  ;;  %v197_v13 = vld [vmem:[%s629_s20 + $0xb8] sm:$0xff]  ;;  %v198_v26 = vld [vmem:[%s629_s20 + $0xc0] sm:$0xff] }
  0x19   : > { %448 = vst [vmem:[%s657_s25 + $0x20] sm:$0xff] %v384_v35  ;;  %449 = vst [vmem:[%s657_s25 + $0x28] sm:$0xff] %v385_v36  ;;  %v324_v48 = vadd.f32 %v634_v1, %v253_v40  ;;  %v325_v49 = vadd.f32 %v634_v1, %v254_v41  ;;  %v326_v50 = vadd.f32 %v634_v1, %v255_v42  ;;  %v199_v27 = vld [vmem:[%s629_s20 + $0xc8] sm:$0xff]  ;;  %v200_v28 = vld [vmem:[%s629_s20 + $0xd0] sm:$0xff] }
  0x1a   : > { %450 = vst [vmem:[%s657_s25 + $0x30] sm:$0xff] %v386_v39  ;;  %v259_v51 = vmul.f32 %v624_v0, %v188_v38  ;;  %451 = vst [vmem:[%s657_s25 + $0x38] sm:$0xff] %v387_v44  ;;  %v327_v52 = vadd.f32 %v634_v1, %v256_v45  ;;  %v328_v53 = vadd.f32 %v634_v1, %v257_v46  ;;  %v201_v33 = vld [vmem:[%s629_s20 + $0xd8] sm:$0xff]  ;;  %v202_v34 = vld [vmem:[%s629_s20 + $0xe0] sm:$0xff] }
  0x1b   : > { %v329_v54 = vadd.f32 %v634_v1, %v258_v47  ;;  %v260_v55 = vmul.f32 %v624_v0, %v189_v43  ;;  %v388_v59 = vmax.f32 %v324_v48, 0.0  ;;  %v389_v60 = vmax.f32 %v325_v49, 0.0  ;;  %v203_v35 = vld [vmem:[%s629_s20 + $0xe8] sm:$0xff]  ;;  %v204_v40 = vld [vmem:[%s629_s20 + $0xf0] sm:$0xff]  ;;  %v205_v45 = vld [vmem:[%s629_s20 + $0xf8] sm:$0xff] }
  0x1c   : > { %v390_v61 = vmax.f32 %v326_v50, 0.0  ;;  %v330_v62 = vadd.f32 %v634_v1, %v259_v51  ;;  %v391_v4 = vmax.f32 %v327_v52, 0.0  ;;  %v392_v5 = vmax.f32 %v328_v53, 0.0 }
  0x1d   : > { %v393_v6 = vmax.f32 %v329_v54, 0.0  ;;  %v331_v7 = vadd.f32 %v634_v1, %v260_v55  ;;  %452 = vst [vmem:[%s657_s25 + $0x40] sm:$0xff] %v388_v59  ;;  %453 = vst [vmem:[%s657_s25 + $0x48] sm:$0xff] %v389_v60  ;;  %v261_v10 = vmul.f32 %v624_v0, %v190_v56  ;;  %v262_v11 = vmul.f32 %v624_v0, %v191_v57  ;;  %v207_v59 = vld [vmem:[%s629_s20 + $0x108] sm:$0xff]  ;;  %v208_v60 = vld [vmem:[%s629_s20 + $0x110] sm:$0xff] }
  0x1e   : > { %454 = vst [vmem:[%s657_s25 + $0x50] sm:$0xff] %v390_v61  ;;  %v394_v9 = vmax.f32 %v330_v62, 0.0  ;;  %v263_v12 = vmul.f32 %v624_v0, %v192_v58  ;;  %455 = vst [vmem:[%s657_s25 + $0x58] sm:$0xff] %v391_v4  ;;  %v264_v15 = vmul.f32 %v624_v0, %v193_v63  ;;  %v265_v16 = vmul.f32 %v624_v0, %v194_v2  ;;  %v206_v58 = vld [vmem:[%s629_s20 + $0x100] sm:$0xff] }
  0x1f   : > { %456 = vst [vmem:[%s657_s25 + $0x60] sm:$0xff] %v392_v5  ;;  %457 = vst [vmem:[%s657_s25 + $0x68] sm:$0xff] %v393_v6  ;;  %v395_v14 = vmax.f32 %v331_v7, 0.0  ;;  %v266_v17 = vmul.f32 %v624_v0, %v195_v3  ;;  %v332_v18 = vadd.f32 %v634_v1, %v261_v10  ;;  %v333_v19 = vadd.f32 %v634_v1, %v262_v11  ;;  %v209_v3 = vld [vmem:[%s629_s20 + $0x118] sm:$0xff]  ;;  %v210_v4 = vld [vmem:[%s629_s20 + $0x120] sm:$0xff] }
  0x20   : > { %458 = vst [vmem:[%s657_s25 + $0x70] sm:$0xff] %v394_v9  ;;  %v334_v20 = vadd.f32 %v634_v1, %v263_v12  ;;  %v267_v21 = vmul.f32 %v624_v0, %v196_v8  ;;  %v335_v22 = vadd.f32 %v634_v1, %v264_v15  ;;  %v336_v23 = vadd.f32 %v634_v1, %v265_v16  ;;  %v211_v5 = vld [vmem:[%s629_s20 + $0x128] sm:$0xff]  ;;  %v212_v10 = vld [vmem:[%s629_s20 + $0x130] sm:$0xff]  ;;  %v213_v15 = vld [vmem:[%s629_s20 + $0x138] sm:$0xff] }
  0x21   : > { %459 = vst [vmem:[%s657_s25 + $0x78] sm:$0xff] %v395_v14  ;;  %v337_v24 = vadd.f32 %v634_v1, %v266_v17  ;;  %v268_v25 = vmul.f32 %v624_v0, %v197_v13  ;;  %v396_v29 = vmax.f32 %v332_v18, 0.0  ;;  %v397_v30 = vmax.f32 %v333_v19, 0.0 }
  0x22   : > { %v398_v31 = vmax.f32 %v334_v20, 0.0  ;;  %v338_v32 = vadd.f32 %v634_v1, %v267_v21  ;;  %v399_v36 = vmax.f32 %v335_v22, 0.0  ;;  %v400_v37 = vmax.f32 %v336_v23, 0.0 }
  0x23   : > { %v401_v38 = vmax.f32 %v337_v24, 0.0  ;;  %v339_v39 = vadd.f32 %v634_v1, %v268_v25  ;;  %460 = vst [vmem:[%s657_s25 + $0x80] sm:$0xff] %v396_v29  ;;  %461 = vst [vmem:[%s657_s25 + $0x88] sm:$0xff] %v397_v30  ;;  %v269_v42 = vmul.f32 %v624_v0, %v198_v26  ;;  %v270_v43 = vmul.f32 %v624_v0, %v199_v27  ;;  %v215_v29 = vld [vmem:[%s629_s20 + $0x148] sm:$0xff]  ;;  %v216_v30 = vld [vmem:[%s629_s20 + $0x150] sm:$0xff] }
  0x24   : > { %462 = vst [vmem:[%s657_s25 + $0x90] sm:$0xff] %v398_v31  ;;  %v402_v41 = vmax.f32 %v338_v32, 0.0  ;;  %v271_v44 = vmul.f32 %v624_v0, %v200_v28  ;;  %463 = vst [vmem:[%s657_s25 + $0x98] sm:$0xff] %v399_v36  ;;  %v272_v47 = vmul.f32 %v624_v0, %v201_v33  ;;  %v273_v48 = vmul.f32 %v624_v0, %v202_v34  ;;  %v214_v28 = vld [vmem:[%s629_s20 + $0x140] sm:$0xff] }
  0x25   : > { %464 = vst [vmem:[%s657_s25 + $0xa0] sm:$0xff] %v400_v37  ;;  %465 = vst [vmem:[%s657_s25 + $0xa8] sm:$0xff] %v401_v38  ;;  %v403_v46 = vmax.f32 %v339_v39, 0.0  ;;  %v274_v49 = vmul.f32 %v624_v0, %v203_v35  ;;  %v340_v50 = vadd.f32 %v634_v1, %v269_v42  ;;  %v341_v51 = vadd.f32 %v634_v1, %v270_v43  ;;  %v217_v35 = vld [vmem:[%s629_s20 + $0x158] sm:$0xff]  ;;  %v218_v36 = vld [vmem:[%s629_s20 + $0x160] sm:$0xff] }
  0x26   : > { %466 = vst [vmem:[%s657_s25 + $0xb0] sm:$0xff] %v402_v41  ;;  %v342_v52 = vadd.f32 %v634_v1, %v271_v44  ;;  %v275_v53 = vmul.f32 %v624_v0, %v204_v40  ;;  %v343_v54 = vadd.f32 %v634_v1, %v272_v47  ;;  %v344_v55 = vadd.f32 %v634_v1, %v273_v48  ;;  %v219_v37 = vld [vmem:[%s629_s20 + $0x168] sm:$0xff]  ;;  %v220_v42 = vld [vmem:[%s629_s20 + $0x170] sm:$0xff]  ;;  %v221_v47 = vld [vmem:[%s629_s20 + $0x178] sm:$0xff] }
  0x27   : > { %467 = vst [vmem:[%s657_s25 + $0xb8] sm:$0xff] %v403_v46  ;;  %v345_v56 = vadd.f32 %v634_v1, %v274_v49  ;;  %v276_v57 = vmul.f32 %v624_v0, %v205_v45  ;;  %v404_v61 = vmax.f32 %v340_v50, 0.0  ;;  %v405_v62 = vmax.f32 %v341_v51, 0.0 }
  0x28   : > { %v406_v63 = vmax.f32 %v342_v52, 0.0  ;;  %v346_v2 = vadd.f32 %v634_v1, %v275_v53  ;;  %v407_v6 = vmax.f32 %v343_v54, 0.0  ;;  %v408_v7 = vmax.f32 %v344_v55, 0.0 }
  0x29   : > { %v409_v8 = vmax.f32 %v345_v56, 0.0  ;;  %v347_v9 = vadd.f32 %v634_v1, %v276_v57  ;;  %468 = vst [vmem:[%s657_s25 + $0xc0] sm:$0xff] %v404_v61  ;;  %469 = vst [vmem:[%s657_s25 + $0xc8] sm:$0xff] %v405_v62  ;;  %v277_v12 = vmul.f32 %v624_v0, %v206_v58  ;;  %v278_v13 = vmul.f32 %v624_v0, %v207_v59  ;;  %v223_v61 = vld [vmem:[%s629_s20 + $0x188] sm:$0xff]  ;;  %v224_v62 = vld [vmem:[%s629_s20 + $0x190] sm:$0xff] }
  0x2a   : > { %470 = vst [vmem:[%s657_s25 + $0xd0] sm:$0xff] %v406_v63  ;;  %v410_v11 = vmax.f32 %v346_v2, 0.0  ;;  %v279_v14 = vmul.f32 %v624_v0, %v208_v60  ;;  %471 = vst [vmem:[%s657_s25 + $0xd8] sm:$0xff] %v407_v6  ;;  %v280_v17 = vmul.f32 %v624_v0, %v209_v3  ;;  %v281_v18 = vmul.f32 %v624_v0, %v210_v4  ;;  %v222_v60 = vld [vmem:[%s629_s20 + $0x180] sm:$0xff] }
  0x2b   : > { %472 = vst [vmem:[%s657_s25 + $0xe0] sm:$0xff] %v408_v7  ;;  %473 = vst [vmem:[%s657_s25 + $0xe8] sm:$0xff] %v409_v8  ;;  %v411_v16 = vmax.f32 %v347_v9, 0.0  ;;  %v282_v19 = vmul.f32 %v624_v0, %v211_v5  ;;  %v348_v20 = vadd.f32 %v634_v1, %v277_v12  ;;  %v349_v21 = vadd.f32 %v634_v1, %v278_v13  ;;  %v225_v5 = vld [vmem:[%s629_s20 + $0x198] sm:$0xff]  ;;  %v226_v6 = vld [vmem:[%s629_s20 + $0x1a0] sm:$0xff] }
  0x2c   : > { %474 = vst [vmem:[%s657_s25 + $0xf0] sm:$0xff] %v410_v11  ;;  %v350_v22 = vadd.f32 %v634_v1, %v279_v14  ;;  %v283_v23 = vmul.f32 %v624_v0, %v212_v10  ;;  %v351_v24 = vadd.f32 %v634_v1, %v280_v17  ;;  %v352_v25 = vadd.f32 %v634_v1, %v281_v18  ;;  %v227_v7 = vld [vmem:[%s629_s20 + $0x1a8] sm:$0xff]  ;;  %v228_v12 = vld [vmem:[%s629_s20 + $0x1b0] sm:$0xff]  ;;  %v229_v17 = vld [vmem:[%s629_s20 + $0x1b8] sm:$0xff] }
  0x2d   : > { %475 = vst [vmem:[%s657_s25 + $0xf8] sm:$0xff] %v411_v16  ;;  %v353_v26 = vadd.f32 %v634_v1, %v282_v19  ;;  %v284_v27 = vmul.f32 %v624_v0, %v213_v15  ;;  %v412_v31 = vmax.f32 %v348_v20, 0.0  ;;  %v413_v32 = vmax.f32 %v349_v21, 0.0 }
  0x2e   : > { %v414_v33 = vmax.f32 %v350_v22, 0.0  ;;  %v354_v34 = vadd.f32 %v634_v1, %v283_v23  ;;  %v415_v38 = vmax.f32 %v351_v24, 0.0  ;;  %v416_v39 = vmax.f32 %v352_v25, 0.0 }
  0x2f   : > { %v417_v40 = vmax.f32 %v353_v26, 0.0  ;;  %v355_v41 = vadd.f32 %v634_v1, %v284_v27  ;;  %476 = vst [vmem:[%s657_s25 + $0x100] sm:$0xff] %v412_v31  ;;  %477 = vst [vmem:[%s657_s25 + $0x108] sm:$0xff] %v413_v32  ;;  %v285_v44 = vmul.f32 %v624_v0, %v214_v28  ;;  %v286_v45 = vmul.f32 %v624_v0, %v215_v29  ;;  %v231_v31 = vld [vmem:[%s629_s20 + $0x1c8] sm:$0xff]  ;;  %v232_v32 = vld [vmem:[%s629_s20 + $0x1d0] sm:$0xff] }
  0x30   : > { %478 = vst [vmem:[%s657_s25 + $0x110] sm:$0xff] %v414_v33  ;;  %v418_v43 = vmax.f32 %v354_v34, 0.0  ;;  %v287_v46 = vmul.f32 %v624_v0, %v216_v30  ;;  %479 = vst [vmem:[%s657_s25 + $0x118] sm:$0xff] %v415_v38  ;;  %v288_v49 = vmul.f32 %v624_v0, %v217_v35  ;;  %v289_v50 = vmul.f32 %v624_v0, %v218_v36  ;;  %v230_v30 = vld [vmem:[%s629_s20 + $0x1c0] sm:$0xff] }
  0x31   : > { %480 = vst [vmem:[%s657_s25 + $0x120] sm:$0xff] %v416_v39  ;;  %481 = vst [vmem:[%s657_s25 + $0x128] sm:$0xff] %v417_v40  ;;  %v419_v48 = vmax.f32 %v355_v41, 0.0  ;;  %v290_v51 = vmul.f32 %v624_v0, %v219_v37  ;;  %v356_v52 = vadd.f32 %v634_v1, %v285_v44  ;;  %v357_v53 = vadd.f32 %v634_v1, %v286_v45  ;;  %v233_v37 = vld [vmem:[%s629_s20 + $0x1d8] sm:$0xff]  ;;  %v234_v38 = vld [vmem:[%s629_s20 + $0x1e0] sm:$0xff] }
  0x32   : > { %482 = vst [vmem:[%s657_s25 + $0x130] sm:$0xff] %v418_v43  ;;  %v358_v54 = vadd.f32 %v634_v1, %v287_v46  ;;  %v291_v55 = vmul.f32 %v624_v0, %v220_v42  ;;  %v359_v56 = vadd.f32 %v634_v1, %v288_v49  ;;  %v360_v57 = vadd.f32 %v634_v1, %v289_v50  ;;  %v235_v39 = vld [vmem:[%s629_s20 + $0x1e8] sm:$0xff]  ;;  %v236_v44 = vld [vmem:[%s629_s20 + $0x1f0] sm:$0xff]  ;;  %v237_v49 = vld [vmem:[%s629_s20 + $0x1f8] sm:$0xff] }
  0x33   : > { %483 = vst [vmem:[%s657_s25 + $0x138] sm:$0xff] %v419_v48  ;;  %v361_v58 = vadd.f32 %v634_v1, %v290_v51  ;;  %v292_v59 = vmul.f32 %v624_v0, %v221_v47  ;;  %v420_v63 = vmax.f32 %v356_v52, 0.0  ;;  %v421_v2 = vmax.f32 %v357_v53, 0.0 }
  0x34   : > { %v422_v3 = vmax.f32 %v358_v54, 0.0  ;;  %v362_v4 = vadd.f32 %v634_v1, %v291_v55  ;;  %v423_v8 = vmax.f32 %v359_v56, 0.0  ;;  %v424_v9 = vmax.f32 %v360_v57, 0.0 }
  0x35   : > { %v425_v10 = vmax.f32 %v361_v58, 0.0  ;;  %v363_v11 = vadd.f32 %v634_v1, %v292_v59  ;;  %484 = vst [vmem:[%s657_s25 + $0x140] sm:$0xff] %v420_v63  ;;  %485 = vst [vmem:[%s657_s25 + $0x148] sm:$0xff] %v421_v2  ;;  %v293_v14 = vmul.f32 %v624_v0, %v222_v60  ;;  %v294_v15 = vmul.f32 %v624_v0, %v223_v61 }
  0x36   : > { %486 = vst [vmem:[%s657_s25 + $0x150] sm:$0xff] %v422_v3  ;;  %v426_v13 = vmax.f32 %v362_v4, 0.0  ;;  %v295_v16 = vmul.f32 %v624_v0, %v224_v62  ;;  %487 = vst [vmem:[%s657_s25 + $0x158] sm:$0xff] %v423_v8  ;;  %v296_v19 = vmul.f32 %v624_v0, %v225_v5  ;;  %v297_v20 = vmul.f32 %v624_v0, %v226_v6 }
  0x37   : > { %488 = vst [vmem:[%s657_s25 + $0x160] sm:$0xff] %v424_v9  ;;  %489 = vst [vmem:[%s657_s25 + $0x168] sm:$0xff] %v425_v10  ;;  %v427_v18 = vmax.f32 %v363_v11, 0.0  ;;  %v298_v21 = vmul.f32 %v624_v0, %v227_v7  ;;  %v364_v22 = vadd.f32 %v634_v1, %v293_v14  ;;  %v365_v23 = vadd.f32 %v634_v1, %v294_v15 }
  0x38   : > { %490 = vst [vmem:[%s657_s25 + $0x170] sm:$0xff] %v426_v13  ;;  %v366_v24 = vadd.f32 %v634_v1, %v295_v16  ;;  %v299_v25 = vmul.f32 %v624_v0, %v228_v12  ;;  %v367_v26 = vadd.f32 %v634_v1, %v296_v19  ;;  %v368_v27 = vadd.f32 %v634_v1, %v297_v20 }
  0x39   : > { %491 = vst [vmem:[%s657_s25 + $0x178] sm:$0xff] %v427_v18  ;;  %v369_v28 = vadd.f32 %v634_v1, %v298_v21  ;;  %v300_v29 = vmul.f32 %v624_v0, %v229_v17  ;;  %v428_v33 = vmax.f32 %v364_v22, 0.0  ;;  %v429_v34 = vmax.f32 %v365_v23, 0.0 }
  0x3a   : > { %v430_v35 = vmax.f32 %v366_v24, 0.0  ;;  %v370_v36 = vadd.f32 %v634_v1, %v299_v25  ;;  %v431_v40 = vmax.f32 %v367_v26, 0.0  ;;  %v432_v41 = vmax.f32 %v368_v27, 0.0 }
  0x3b   : > { %v433_v42 = vmax.f32 %v369_v28, 0.0  ;;  %v371_v43 = vadd.f32 %v634_v1, %v300_v29  ;;  %492 = vst [vmem:[%s657_s25 + $0x180] sm:$0xff] %v428_v33  ;;  %493 = vst [vmem:[%s657_s25 + $0x188] sm:$0xff] %v429_v34  ;;  %v301_v46 = vmul.f32 %v624_v0, %v230_v30  ;;  %v302_v47 = vmul.f32 %v624_v0, %v231_v31 }
  0x3c   : > { %494 = vst [vmem:[%s657_s25 + $0x190] sm:$0xff] %v430_v35  ;;  %v434_v45 = vmax.f32 %v370_v36, 0.0  ;;  %v303_v48 = vmul.f32 %v624_v0, %v232_v32  ;;  %495 = vst [vmem:[%s657_s25 + $0x198] sm:$0xff] %v431_v40  ;;  %v304_v51 = vmul.f32 %v624_v0, %v233_v37  ;;  %v305_v52 = vmul.f32 %v624_v0, %v234_v38 }
  0x3d   : > { %496 = vst [vmem:[%s657_s25 + $0x1a0] sm:$0xff] %v432_v41  ;;  %497 = vst [vmem:[%s657_s25 + $0x1a8] sm:$0xff] %v433_v42  ;;  %v435_v50 = vmax.f32 %v371_v43, 0.0  ;;  %v306_v53 = vmul.f32 %v624_v0, %v235_v39  ;;  %v372_v54 = vadd.f32 %v634_v1, %v301_v46  ;;  %v373_v55 = vadd.f32 %v634_v1, %v302_v47 }
  0x3e   : > { %498 = vst [vmem:[%s657_s25 + $0x1b0] sm:$0xff] %v434_v45  ;;  %v374_v56 = vadd.f32 %v634_v1, %v303_v48  ;;  %v307_v57 = vmul.f32 %v624_v0, %v236_v44  ;;  %v375_v58 = vadd.f32 %v634_v1, %v304_v51  ;;  %v376_v59 = vadd.f32 %v634_v1, %v305_v52 }
  0x3f   : > { %499 = vst [vmem:[%s657_s25 + $0x1b8] sm:$0xff] %v435_v50  ;;  %v377_v60 = vadd.f32 %v634_v1, %v306_v53  ;;  %v308_v61 = vmul.f32 %v624_v0, %v237_v49  ;;  %v436_v62 = vmax.f32 %v372_v54, 0.0  ;;  %v437_v63 = vmax.f32 %v373_v55, 0.0 }
  0x40   : > { %v438_v2 = vmax.f32 %v374_v56, 0.0  ;;  %v378_v3 = vadd.f32 %v634_v1, %v307_v57  ;;  %v439_v4 = vmax.f32 %v375_v58, 0.0  ;;  %v440_v5 = vmax.f32 %v376_v59, 0.0 }
  0x41   : > { %v441_v6 = vmax.f32 %v377_v60, 0.0  ;;  %v379_v7 = vadd.f32 %v634_v1, %v308_v61  ;;  %500 = vst [vmem:[%s657_s25 + $0x1c0] sm:$0xff] %v436_v62  ;;  %501 = vst [vmem:[%s657_s25 + $0x1c8] sm:$0xff] %v437_v63 }
  0x42   : > { %502 = vst [vmem:[%s657_s25 + $0x1d0] sm:$0xff] %v438_v2  ;;  %v442_v8 = vmax.f32 %v378_v3, 0.0  ;;  %503 = vst [vmem:[%s657_s25 + $0x1d8] sm:$0xff] %v439_v4 }
  0x43   : > { %504 = vst [vmem:[%s657_s25 + $0x1e0] sm:$0xff] %v440_v5  ;;  %505 = vst [vmem:[%s657_s25 + $0x1e8] sm:$0xff] %v441_v6  ;;  %v443_v0 = vmax.f32 %v379_v7, 0.0 }
  0x44   : > { %506 = vst [vmem:[%s657_s25 + $0x1f0] sm:$0xff] %v442_v8 }
  0x45   : > { %507 = vst [vmem:[%s657_s25 + $0x1f8] sm:$0xff] %v443_v0 }
  0x46 PF: > { %s13_s12 = sadd.s32 1, %s591_s12  }
  0x47   : > { %p10_p4 = scmp.ge.s32.totalorder %s13_s12, 4  }
  0x49   :  { %12 = sbr.rel (!%p10_p4) target bundleno = 1 (0x1), region = 62 }

// kernel: up_block_forward.6
= control target key start
LH: loop header
LB: loop body
LE: loop exit
PB: predicated region body
PF: predicated region fallthrough
CT: control target
= control target key end

     0   :  { %s4328_s21 = smov 0   ;;  %s4330_s22 = smov 0   ;;  %s5423_s0 = inlined_call_operand.vmem [shape: f32[2,10,10,10,8], index: 0, kind: input, shape index: {}, may-alias: {0,1,2}]   ;;  %s5424_s1 = inlined_call_operand.vmem [shape: f32[2,10,10,10,8], index: 1, kind: input, shape index: {}, may-alias: {0,1,2}]   ;;  %s5425_s2 = inlined_call_operand.vmem [shape: f32[2,10,10,10,8], index: 2, kind: input, shape index: {}, may-alias: {0,1,2}]   ;;  %s5426_s3 = inlined_call_operand.vmem [shape: bf16[27,8,128], index: 3, kind: input, shape index: {}]   ;;  %s5427_s4 = inlined_call_operand.vmem [shape: f32[1,128], index: 4, kind: input, shape index: {}]   ;;  %s5428_s5 = inlined_call_operand.vmem [shape: f32[2,8,64,128], index: 5, kind: output, shape index: {0}]   ;;  %s5429_s6 = inlined_call_operand.vmem [shape: f32[2,8,8,128], index: 6, kind: output, shape index: {1}]  }
   0x1   :  { %s4332_s23 = smov 0   ;;  %s4334_s24 = smov 0  }
   0x2   :  { %s4336_s25 = smov 0  }
   0x3 LB: > { %s26_s26 = sadd.s32 1, %s4283_s23  ;;  %s29_s27 = sadd.s32 1, %s4287_s24  ;;  %s4291_s25 = sphi %s4336_s25, %s17_s25   ;;  %s4287_s24 = sphi %s4334_s24, %s5505_s24   ;;  %s4283_s23 = sphi %s4332_s23, %s5504_s23   ;;  %s4279_s22 = sphi %s4330_s22, %s5503_s22   ;;  %s4275_s21 = sphi %s4328_s21, %s5502_s21  }
   0x4   : > { %p27_p0 = scmp.ge.s32.totalorder %s26_s26, 8  ;;  %p3419_p1 = scmp.ge.s32.totalorder %s4291_s25, 1 }
   0x5   : > { %p277_p2 = scmp.lt.s32.totalorder %s4291_s25, 17 }
   0x6   : > { %s5507_s26 = smov (%p27_p0, %s26_s26), 0  ;;  %s5509_s27 = smov (!%p27_p0, %s29_s27), %s4287_s24 }
   0x7   : > { %p278_p3 = pnand %p3419_p1, %p277_p2  ;;  %p31_p4 = scmp.ge.s32.totalorder %s5509_s27, 2 }
   0x9   : > { %s5511_s27 = smov (%p31_p4, %s5509_s27), 0  ;;  %281 = sbr.rel (%p278_p3) target bundleno = 495 (0x1ef), region = 40 }
  0x10   : > { %v3428_v0 = vld [vmem:[%s5426_s3 + $0x4] sm:$0xf]  ;;  %vm485_vm0 = vcmask 1043456   ;;  %v3492_v1 = vld [vmem:[%s5426_s3 + $0x34] sm:$0xf]  ;;  %p343_p5 = scmp.lt.s32.totalorder %s4279_s22, 1 }
  0x11   : > { %4180 = vmatprep.subr.msk.bf16.mxu1 %vm485_vm0, %v3428_v0  ;;  %4193 = vmatprep.subr.msk.bf16.mxu0 %vm485_vm0, %v3492_v1  ;;  %v487_v2 = vsel %vm485_vm0, %v3428_v0, 0  ;;  %v4370_v3 = vsel %vm485_vm0, %v3492_v1, 0  ;;  %p345_p6 = scmp.lt.s32.totalorder %s4275_s21, 9  ;;  %s352_s8 = sadd.s32 1, %s4275_s21  ;;  %v412_v4 = vld [vmem:[%s5426_s3] sm:$0xf] }
  0x12   : > { %5451 = vst [vmem:[#allocation2_spill] sm:$0xff] %v4370_v3  ;;  %3701 = vmatpush3.bf16.msra.mxu1 %v487_v2  ;;  %3831 = vmatpush3.bf16.msra.mxu0 %v4370_v3  ;;  %s5513_s22 = smov (!%p343_p5, %s4279_s22), 1  ;;  %v4383_v5 = vld [vmem:[%s5426_s3 + $0x38] sm:$0xf]  ;;  %p355_p7 = scmp.lt.s32.totalorder %s352_s8, 9  ;;  %vm433_vm1 = vcmask 1046528  }
  0x13   : > { %s346_s13 = scalar_select %p345_p6, %s4275_s21, 9  ;;  %4181 = vmatprep.subr.msk.bf16.mxu1 %vm485_vm0, %v412_v4  ;;  %4195 = vmatprep.subr.msk.bf16.mxu0 %vm485_vm0, %v4383_v5  ;;  %vm472_vm2 = vcmask 64512   ;;  %v4462_v31 = vld [vmem:[%s5426_s3 + $0x8] sm:$0xf]  ;;  %v567_v36 = vsel %vm485_vm0, %v412_v4, 0  ;;  %vm634_vm3 = vcmask 1045504  }
  0x14   : > { %s4390_s14 = smul.u32 200, %s5513_s22  ;;  %s5515_s8 = smov (!%p355_p7, %s352_s8), 9  ;;  %v1908_v61 = vsel %vm485_vm0, %v4383_v5, 0  ;;  %v686_v57 = vsel %vm485_vm0, %v4462_v31, 0  ;;  %vm3226_vm4 = vcmask 1040384   ;;  %vm3228_vm5 = vcmask 1041408  }
  0x15   : > { %s4208_s15 = smul.u32 20, %s346_s13  ;;  %s363_s19 = sadd.s32 2, %s4275_s21 }
  0x16   : > { %s4210_s18 = smul.u32 20, %s5515_s8  ;;  %p366_p8 = scmp.lt.s32.totalorder %s363_s19, 9 }
  0x17   : > { %s349_s16 = sadd.s32 %s4390_s14, %s4208_s15  ;;  %p376_p9 = scmp.lt.s32.totalorder %s4275_s21, 7 }
  0x18   : > { %s3420_s17 = sshll.u32 %s349_s16, 3  ;;  %s359_s29 = sadd.s32 %s4210_s18, %s4390_s14 }
  0x19   : > { %s4396_s28 = scalar_lea.vmem %s5423_s0, %s3420_s17  ;;  %s3421_s30 = sshll.u32 %s359_s29, 3 }
  0x1a   : > { %v4399_v6 = vld [vmem:[%s4396_s28] sm:$0xff]  ;;  %v4402_v7 = vld [vmem:[%s4396_s28 + $0x8] sm:$0x3]  ;;  %v4405_v8 = vld [vmem:[%s4396_s28 + $0x10] sm:$0xff]  ;;  %s4435_s9 = scalar_lea.vmem %s5424_s1, %s3421_s30  ;;  %s5517_s19 = smov (!%p366_p8, %s363_s19), 9 }
  0x1b   : > { %v4409_v9 = vld [vmem:[%s4396_s28 + $0x18] sm:$0x3]  ;;  %v4412_v10 = vld [vmem:[%s4396_s28 + $0x20] sm:$0xff]  ;;  %v4415_v11 = vld [vmem:[%s4396_s28 + $0x28] sm:$0x3]  ;;  %v434_v12 = vrot.slane %v4399_v6, 1  ;;  %v413_v5 = vpack.c.bf16 %v4405_v8, %v4399_v6 }
  0x1c   : > { %v4419_v13 = vld [vmem:[%s4396_s28 + $0x30] sm:$0xff]  ;;  %v4422_v14 = vld [vmem:[%s4396_s28 + $0x38] sm:$0x3]  ;;  %v435_v15 = vrot.slane %v4402_v7, 1  ;;  %v437_v16 = vrot.slane %v4405_v8, 1  ;;  %v438_v17 = vrot.slane %v4409_v9, 1 }
  0x1d   : > { %v440_v18 = vrot.slane %v4412_v10, 1  ;;  %v441_v19 = vrot.slane %v4415_v11, 1  ;;  %v443_v21 = vrot.slane %v4419_v13, 1  ;;  %v444_v22 = vrot.slane %v4422_v14, 1  ;;  %v4438_v23 = vld [vmem:[%s4396_s28 + $0x40] sm:$0xff]  ;;  %v4457_v30 = vld [vmem:[%s4435_s9 + $0x10] sm:$0xff] }
  0x1e   : > { %v436_v20 = vsel %vm433_vm1, %v434_v12, %v435_v15  ;;  %v4441_v24 = vsel %vm433_vm1, %v437_v16, %v438_v17  ;;  %v4447_v26 = vld [vmem:[%s4396_s28 + $0x48] sm:$0x3]  ;;  %5452 = vst [vmem:[#allocation3_spill] sm:$0xff] %v4457_v30  ;;  %v4469_v33 = vld [vmem:[%s4435_s9 + $0x18] sm:$0x3]  ;;  %v4472_v34 = vld [vmem:[%s4435_s9 + $0x20] sm:$0xff] }
  0x1f   : > { %v4444_v25 = vsel %vm433_vm1, %v440_v18, %v441_v19  ;;  %v4450_v27 = vsel %vm433_vm1, %v443_v21, %v444_v22  ;;  %v468_v28 = vpack.c.bf16 %v4441_v24, %v436_v20  ;;  %v4454_v29 = vld [vmem:[%s4435_s9 + $0x8] sm:$0x3]  ;;  %5454 = vst [vmem:[#allocation5_spill] sm:$0xff] %v4472_v34  ;;  %v4480_v37 = vld [vmem:[%s4435_s9] sm:$0xff]  ;;  %v4483_v38 = vld [vmem:[%s4435_s9 + $0x30] sm:$0xff]  ;;  %v1442_v44 = vrot.slane %v4457_v30, 1 }
  0x20   : > { %v4466_v32 = vpack.c.bf16 %v4450_v27, %v4444_v25  ;;  %v4475_v35 = vld [vmem:[%s4435_s9 + $0x28] sm:$0x3]  ;;  %5455 = vst [vmem:[#allocation6_spill] sm:$0xff] %v4483_v38  ;;  %v4486_v39 = vld [vmem:[%s4435_s9 + $0x38] sm:$0x3]  ;;  %v4491_v40 = vld [vmem:[%s4435_s9 + $0x40] sm:$0xff] }
  0x21   : > { %3702 = vmatprep.mubr.msk.bf16.mxu1 %vm472_vm2, %v468_v28  ;;  %5456 = vst [vmem:[#allocation7_spill] sm:$0xff] %v4491_v40  ;;  %v4494_v41 = vld [vmem:[%s4435_s9 + $0x48] sm:$0x3]  ;;  %v1439_v42 = vrot.slane %v4480_v37, 1  ;;  %v1440_v43 = vrot.slane %v4454_v29, 1  ;;  %v446_v45 = vrot.slane %v4438_v23, 1 }
  0x22   : > { %5453 = vst [vmem:[#allocation4_spill] sm:$0xff] %v4466_v32  ;;  %3703 = vmatmul.mubr.msk.bf16.vlgmr.msra.gmra.mrb[0].mxu1 %vm472_vm2, %v4466_v32  ;;  %v1443_v46 = vrot.slane %v4469_v33, 1  ;;  %v1445_v47 = vrot.slane %v4472_v34, 1  ;;  %v1446_v48 = vrot.slane %v4475_v35, 1  ;;  %v447_v49 = vrot.slane %v4447_v26, 1  ;;  %v4522_v58 = vld [vmem:[%s4396_s28 + $0x50] sm:$0xff] }
  0x23   : > { %3711 = vmatpush3.bf16.msra.mxu1 %v567_v36  ;;  %v4505_v50 = vsel %vm433_vm1, %v1439_v42, %v1440_v43  ;;  %v1448_v51 = vrot.slane %v4483_v38, 1  ;;  %v1449_v52 = vrot.slane %v4486_v39, 1  ;;  %v1451_v54 = vrot.slane %v4491_v40, 1  ;;  %v4533_v62 = vld [vmem:[%s4396_s28 + $0x58] sm:$0x3]  ;;  %v4536_v63 = vld [vmem:[%s4396_s28 + $0x60] sm:$0xff] }
  0x24   : > { %5457 = vst [vmem:[#allocation8_spill] sm:$0xff] %v4505_v50  ;;  %4182 = vmatprep.subr.msk.bf16.mxu1 %vm485_vm0, %v4462_v31  ;;  %v4512_v53 = vsel %vm433_vm1, %v1442_v44, %v1443_v46  ;;  %v1452_v55 = vrot.slane %v4494_v41, 1  ;;  %v4517_v56 = vsel %vm433_vm1, %v1445_v47, %v1446_v48  ;;  %v4539_v0 = vld [vmem:[%s4396_s28 + $0x68] sm:$0x3]  ;;  %v4542_v1 = vsel %vm433_vm1, %v446_v45, %v447_v49  ;;  %v4547_v12 = vld [vmem:[%s4396_s28 + $0x70] sm:$0xff]  ;;  %v4587_v49 = vld [vmem:[%s4435_s9 + $0x60] sm:$0xff] }
  0x25   : > { %5458 = vst [vmem:[#allocation9_spill] sm:$0xff] %v4512_v53  ;;  %v4525_v59 = vsel %vm433_vm1, %v1448_v51, %v1449_v52  ;;  %v1569_v2 = vrot.slane %v4469_v33, 2  ;;  %v1572_v4 = vrot.slane %v4475_v35, 2  ;;  %v4550_v15 = vld [vmem:[%s4396_s28 + $0x78] sm:$0x3]  ;;  %v1574_v16 = vrot.slane %v4483_v38, 2 }
  0x26   : > { %v4528_v60 = vsel %vm433_vm1, %v1451_v54, %v1452_v55  ;;  %v1575_v17 = vrot.slane %v4486_v39, 2  ;;  %v1793_v19 = vpack.c.bf16 %v4517_v56, %v4512_v53  ;;  %v449_v21 = vrot.slane %v4522_v58, 1  ;;  %v3502_v33 = vld [vmem:[%s5426_s3 + $0x3c] sm:$0xf]  ;;  %v4569_v35 = vld [vmem:[%s4435_s9 + $0x50] sm:$0xff]  ;;  %5460 = vst [vmem:[#allocation11_spill] sm:$0xff] %v4587_v49 }
  0x27   : > { %v1794_v20 = vpack.c.bf16 %v4528_v60, %v4525_v59  ;;  %v450_v22 = vrot.slane %v4533_v62, 1  ;;  %v452_v28 = vrot.slane %v4536_v63, 1  ;;  %5459 = vst [vmem:[#allocation10_spill] sm:$0xff] %v4569_v35  ;;  %v453_v36 = vrot.slane %v4539_v0, 1  ;;  %v4577_v44 = vld [vmem:[%s4435_s9 + $0x58] sm:$0x3] }
  0x28   : > { %3832 = vmatprep.mubr.msk.bf16.mxu0 %vm472_vm2, %v1793_v19  ;;  %v455_v39 = vrot.slane %v4547_v12, 1  ;;  %v456_v42 = vrot.slane %v4550_v15, 1  ;;  %v1568_v43 = vrot.slane %v4457_v30, 2  ;;  %v1578_v45 = vrot.slane %v4494_v41, 2  ;;  %v4603_v55 = vld [vmem:[%s4435_s9 + $0x68] sm:$0x3] }
  0x29   : > { %3833 = vmatmul.mubr.msk.bf16.vlgmr.msra.gmra.mrb[0].mxu0 %vm472_vm2, %v1794_v20  ;;  %v4582_v46 = vsel %vm433_vm1, %v449_v21, %v450_v22  ;;  %v1571_v47 = vrot.slane %v4472_v34, 2  ;;  %v1577_v48 = vrot.slane %v4491_v40, 2  ;;  %v4594_v52 = vsel %vm433_vm1, %v452_v28, %v453_v36  ;;  %s4211_s20 = smul.u32 20, %s5517_s19  ;;  %s5519_s21 = smov (!%p376_p9, %s4275_s21), 7 }
  0x2a   : > { %3841 = vmatpush3.bf16.msra.mxu0 %v1908_v61  ;;  %v4591_v51 = vpack.c.bf16 %v4582_v46, %v4542_v1  ;;  %v4597_v41 = vsel %vm433_vm1, %v455_v39, %v456_v42  ;;  %v4600_v54 = vsel %vm634_vm3, %v1568_v43, %v1569_v2  ;;  %v1580_v20 = vrot.slane %v4569_v35, 2  ;;  %v4632_v39 = vld [vmem:[%s4435_s9 + $0x70] sm:$0xff]  ;;  %v1324_v42 = vld [vmem:[%s4435_s9 + $0x78] sm:$0x3]  ;;  %v4636_v43 = vld [vmem:[%s4435_s9 + $0x80] sm:$0xff]  ;;  %s3423_s16 = sshll.u32 %s5519_s21, 3 }
  0x2b   : > { %v4607_v61 = vpack.c.bf16 %v4597_v41, %v4594_v52  ;;  %v4610_v19 = vsel %vm634_vm3, %v1571_v47, %v1572_v4  ;;  %4196 = vmatprep.subr.msk.bf16.mxu0 %vm485_vm0, %v3502_v33  ;;  %v1581_v21 = vrot.slane %v4577_v44, 2  ;;  %v1583_v22 = vrot.slane %v4587_v49, 2  ;;  %v1326_v47 = vld [vmem:[%s4435_s9 + $0x88] sm:$0x3]  ;;  %s370_s10 = sadd.s32 %s4211_s20, %s4390_s14  ;;  %s3424_s17 = sshll.u32 %s5513_s22, 6 }
  0x2c   : > { %5461 = vst [vmem:[#allocation12_spill] sm:$0xff] %v4591_v51  ;;  %3706 = vmatprep.mubr.msk.bf16.mxu1 %vm472_vm2, %v4591_v51  ;;  %v1891_v2 = vpack.c.bf16 %v4610_v19, %v4600_v54  ;;  %v1584_v4 = vrot.slane %v4603_v55, 2  ;;  %v4625_v28 = vsel %vm634_vm3, %v1574_v16, %v1575_v17  ;;  %v4628_v36 = vsel %vm634_vm3, %v1577_v48, %v1578_v45  ;;  %s3422_s11 = sshll.u32 %s370_s10, 3  ;;  %s380_s18 = sadd.s32 %s3424_s17, %s3423_s16 }
  0x2d   : > { %5462 = vst [vmem:[#allocation13_spill] sm:$0xff] %v4607_v61  ;;  %3707 = vmatmul.mubr.msk.bf16.gmra.mrb[4].mxu1 %vm472_vm2, %v4607_v61  ;;  %v1990_v18 = vsel %vm485_vm0, %v3502_v33, 0  ;;  %v635_v17 = vrot.slane %v4399_v6, 2  ;;  %v636_v45 = vrot.slane %v4402_v7, 2  ;;  %v1892_v33 = vpack.c.bf16 %v4628_v36, %v4625_v28  ;;  %v3507_v7 = vld [vmem:[%s5426_s3 + $0x40] sm:$0xf]  ;;  %s4830_s13 = scalar_lea.vmem %s5425_s2, %s3422_s11 }
  0x2e   : > { %3842 = vmatprep.mubr.msk.bf16.mxu0 %vm472_vm2, %v1891_v2  ;;  %3712 = vmatprep.mubr.msk.bf16.mxu1 %vm472_vm2, %v413_v5  ;;  %v4643_v2 = vsel %vm634_vm3, %v1580_v20, %v1581_v21  ;;  %v4646_v16 = vsel %vm634_vm3, %v1583_v22, %v1584_v4  ;;  %v4650_v5 = vpack.c.bf16 %v4419_v13, %v4412_v10  ;;  %v1586_v48 = vrot.slane %v4632_v39, 2  ;;  %s3425_s19 = sshll.u32 %s380_s18, 3  ;;  %s3426_s10 = sshll.u32 %s5513_s22, 3 }
  0x2f   : > { %v1587_v31 = vrot.slane %v1324_v42, 2  ;;  %v1885_v20 = vrot.slane %v4636_v43, 2  ;;  %v1886_v21 = vrot.slane %v1326_v47, 2  ;;  %v639_v22 = vrot.slane %v4409_v9, 2  ;;  %v3442_v9 = vld [vmem:[%s5426_s3 + $0xc] sm:$0xf]  ;;  %s5393_s8 = scalar_lea.vmem %s5428_s5, %s3425_s19  ;;  %s388_s11 = sadd.s32 %s3426_s10, %s5519_s21 }
  0x30   : > { %v1893_v4 = vpack.c.bf16 %v4646_v16, %v4643_v2  ;;  %v4663_v3 = vpack.c.bf16 %v4522_v58, %v4438_v23  ;;  %v638_v6 = vrot.slane %v4405_v8, 2  ;;  %v647_v61 = vrot.slane %v4438_v23, 2  ;;  %s3427_s14 = sshll.u32 %s388_s11, 3 }
  0x31   : > { %v4676_v50 = vsel %vm634_vm3, %v1586_v48, %v1587_v31  ;;  %v4679_v53 = vsel %vm634_vm3, %v1885_v20, %v1886_v21  ;;  %v1787_v48 = vrot.slane %v4636_v43, 1  ;;  %v641_v31 = vrot.slane %v4412_v10, 2 }
  0x32   : > { %5463 = vst [vmem:[#allocation14_spill] sm:$0xff] %v4663_v3  ;;  %v4686_v30 = vsel %vm634_vm3, %v638_v6, %v639_v22  ;;  %v642_v20 = vrot.slane %v4415_v11, 2  ;;  %v645_v21 = vrot.slane %v4422_v14, 2  ;;  %v1894_v22 = vpack.c.bf16 %v4679_v53, %v4676_v50 }
  0x33   : > { %v4708_v11 = vpack.c.bf16 %v4483_v38, %v4472_v34  ;;  %v648_v51 = vrot.slane %v4447_v26, 2  ;;  %v650_v38 = vrot.slane %v4522_v58, 2  ;;  %v651_v34 = vrot.slane %v4533_v62, 2 }
  0x34   : > { %v4732_v26 = vsel %vm634_vm3, %v641_v31, %v642_v20  ;;  %v1457_v32 = vrot.slane %v4587_v49, 1 }
  0x35   : > { %3843 = vmatmul.mubr.msk.bf16.vlgmr.msra.gmra.mrb[0].mxu0 %vm472_vm2, %v1892_v33  ;;  %3713 = vmatmul.mubr.msk.bf16.vlgmr.msra.gmra.mrb[0].mxu1 %vm472_vm2, %v4650_v5  ;;  %v637_v33 = vsel %vm634_vm3, %v635_v17, %v636_v45  ;;  %v1788_v17 = vrot.slane %v1326_v47, 1  ;;  %v644_v45 = vrot.slane %v4419_v13, 2  ;;  %v4749_v31 = vsel %vm634_vm3, %v650_v38, %v651_v34 }
  0x36   : > { %3851 = vmatpush3.bf16.msra.mxu0 %v1990_v18  ;;  %3721 = vmatpush3.bf16.msra.mxu1 %v686_v57  ;;  %v1460_v57 = vrot.slane %v4632_v39, 1  ;;  %v1461_v18 = vrot.slane %v1324_v42, 1  ;;  %v4700_v42 = vpack.c.bf16 %v4547_v12, %v4536_v63  ;;  %v669_v47 = vpack.c.bf16 %v4686_v30, %v637_v33 }
  0x37   : > { %3846 = vmatprep.mubr.msk.bf16.mxu0 %vm472_vm2, %v1893_v4  ;;  %3716 = vmatprep.mubr.msk.bf16.mxu1 %vm472_vm2, %v4663_v3  ;;  %v4703_v4 = vld [vmem:[%s4396_s28 + $0x88] sm:$0x3]  ;;  %v4715_v14 = vsel %vm433_vm1, %v1787_v48, %v1788_v17  ;;  %v4722_v3 = vld [vmem:[%s4396_s28 + $0x80] sm:$0xff]  ;;  %v4746_v17 = vsel %vm634_vm3, %v647_v61, %v648_v51  ;;  %v656_v51 = vrot.slane %v4547_v12, 2  ;;  %v657_v61 = vrot.slane %v4550_v15, 2 }
  0x38   : > { %4197 = vmatprep.subr.msk.bf16.mxu0 %vm485_vm0, %v3507_v7  ;;  %4183 = vmatprep.subr.msk.bf16.mxu1 %vm485_vm0, %v3442_v9  ;;  %v4712_v6 = vsel %vm433_vm1, %v1460_v57, %v1461_v18  ;;  %5465 = vst [vmem:[#allocation16_spill] sm:$0xff] %v4715_v14  ;;  %v857_v33 = vrot.slane %v4722_v3, 1  ;;  %v858_v57 = vrot.slane %v4703_v4, 1  ;;  %v4735_v18 = vsel %vm634_vm3, %v644_v45, %v645_v21  ;;  %v3447_v15 = vld [vmem:[%s5426_s3 + $0x10] sm:$0xf] }
  0x39   : > { %5464 = vst [vmem:[#allocation15_spill] sm:$0xff] %v4712_v6  ;;  %v4753_v20 = vpack.c.bf16 %v4735_v18, %v4732_v26  ;;  %v4757_v45 = vpack.c.bf16 %v4569_v35, %v4491_v40  ;;  %v653_v21 = vrot.slane %v4536_v63, 2  ;;  %v2078_v34 = vsel %vm485_vm0, %v3507_v7, 0  ;;  %v4784_v7 = vld [vmem:[%s4435_s9 + $0x90] sm:$0xff] }
  0x3a   : > { %v4741_v62 = vsel %vm433_vm1, %v857_v33, %v858_v57  ;;  %v780_v38 = vsel %vm485_vm0, %v3442_v9, 0  ;;  %v4771_v33 = vpack.c.bf16 %v4749_v31, %v4746_v17  ;;  %v4790_v57 = vsel %vm634_vm3, %v656_v51, %v657_v61 }
  0x3b   : > { %5466 = vst [vmem:[#allocation17_spill] sm:$0xff] %v4757_v45  ;;  %v1455_v51 = vrot.slane %v4577_v44, 1  ;;  %v4809_v61 = vpack.c.bf16 %v4525_v59, %v4517_v56  ;;  %v1458_v48 = vrot.slane %v4603_v55, 1  ;;  %v4825_v56 = vld [vmem:[%s4435_s9 + $0x98] sm:$0x3]  ;;  %v2067_v44 = vrot.slane %v4784_v7, 1 }
  0x3c   : > { %v764_v55 = vpack.c.bf16 %v4438_v23, %v4419_v13  ;;  %v4858_v13 = vld [vmem:[%s4830_s13 + $0x80] sm:$0xff] }
  0x3d   : > { %3847 = vmatmul.mubr.msk.bf16.gmra.mrb[4].mxu0 %vm472_vm2, %v1894_v22  ;;  %3717 = vmatmul.mubr.msk.bf16.gmra.mrb[4].mxu1 %vm472_vm2, %v4700_v42  ;;  %v654_v22 = vrot.slane %v4539_v0, 2  ;;  %v3512_v0 = vld [vmem:[%s5426_s3 + $0x44] sm:$0xf]  ;;  %5468 = vst [vmem:[#allocation19_spill] sm:$0xff] %v4809_v61 }
  0x3e   : > { %3852 = vmatprep.mubr.msk.bf16.mxu0 %vm472_vm2, %v4708_v11  ;;  %3722 = vmatprep.mubr.msk.bf16.mxu1 %vm472_vm2, %v669_v47  ;;  %v4767_v47 = vpack.c.bf16 %v4632_v39, %v4587_v49 }
  0x3f   : > { %v4787_v9 = vsel %vm634_vm3, %v653_v21, %v654_v22  ;;  %v1454_v22 = vrot.slane %v4569_v35, 1 }
  0x40   : > { %5467 = vst [vmem:[#allocation18_spill] sm:$0xff] %v4767_v47  ;;  %v4803_v21 = vpack.c.bf16 %v4790_v57, %v4787_v9 }
  0x41   : > { %v4819_v40 = vsel %vm433_vm1, %v1454_v22, %v1455_v51  ;;  %v4845_v22 = vld [vmem:[%s4830_s13 + $0x70] sm:$0xff]  ;;  %v2256_v51 = vld [vmem:[%s4830_s13 + $0x88] sm:$0x3] }
  0x42   : > { %5469 = vst [vmem:[#allocation20_spill] sm:$0xff] %v4819_v40  ;;  %v4838_v59 = vpack.c.bf16 %v4819_v40, %v4528_v60  ;;  %v765_v40 = vpack.c.bf16 %v4536_v63, %v4522_v58  ;;  %v2516_v23 = vrot.slane %v4845_v22, 2  ;;  %v3517_v58 = vld [vmem:[%s5426_s3 + $0x48] sm:$0xf]  ;;  %v3452_v63 = vld [vmem:[%s5426_s3 + $0x14] sm:$0xf] }
  0x45   : > { %3853 = vmatmul.mubr.msk.bf16.vlgmr.msra.gmra.mrb[0].mxu0 %vm472_vm2, %v4757_v45  ;;  %3723 = vmatmul.mubr.msk.bf16.vlgmr.msra.gmra.mrb[0].mxu1 %vm472_vm2, %v4753_v20  ;;  %v1566_v45 = vrot.slane %v4454_v29, 2 }
  0x46   : > { %3861 = vmatpush3.bf16.msra.mxu0 %v2078_v34  ;;  %3731 = vmatpush3.bf16.msra.mxu1 %v780_v38  ;;  %v1985_v34 = vpack.c.bf16 %v4784_v7, %v4636_v43  ;;  %v763_v38 = vpack.c.bf16 %v4412_v10, %v4405_v8  ;;  %v2254_v8 = vld [vmem:[%s4830_s13 + $0x78] sm:$0x3]  ;;  %v4834_v10 = vsel %vm433_vm1, %v1457_v32, %v1458_v48  ;;  %v2164_v32 = vsel %vm485_vm0, %v3512_v0, 0 }
  0x47   : > { %3856 = vmatprep.mubr.msk.bf16.mxu0 %vm472_vm2, %v4767_v47  ;;  %3726 = vmatprep.mubr.msk.bf16.mxu1 %vm472_vm2, %v4771_v33  ;;  %v2391_v49 = vrot.slane %v2254_v8, 1  ;;  %v880_v48 = vsel %vm485_vm0, %v3447_v15, 0  ;;  %v4853_v60 = vpack.c.bf16 %v4712_v6, %v4834_v10  ;;  %v2517_v35 = vrot.slane %v2254_v8, 2 }
  0x48   : > { %4198 = vmatprep.subr.msk.bf16.mxu0 %vm485_vm0, %v3512_v0  ;;  %4184 = vmatprep.subr.msk.bf16.mxu1 %vm485_vm0, %v3447_v15  ;;  %v2718_v47 = vrot.slane %v2256_v51, 1  ;;  %v2815_v8 = vrot.slane %v4858_v13, 2 }
  0x4d   : > { %3857 = vmatmul.mubr.msk.bf16.gmra.mrb[4].mxu0 %vm472_vm2, %v1985_v34  ;;  %3727 = vmatmul.mubr.msk.bf16.gmra.mrb[4].mxu1 %vm472_vm2, %v4803_v21  ;;  %v2068_v34 = vrot.slane %v4825_v56, 1 }
  0x4e   : > { %3862 = vmatprep.mubr.msk.bf16.mxu0 %vm472_vm2, %v4809_v61  ;;  %3732 = vmatprep.mubr.msk.bf16.mxu1 %vm472_vm2, %v763_v38  ;;  %v2390_v38 = vrot.slane %v4845_v22, 1  ;;  %v2717_v61 = vrot.slane %v4858_v13, 1 }
  0x4f   : > { %v2069_v0 = vsel %vm433_vm1, %v2067_v44, %v2068_v34  ;;  %v1565_v34 = vrot.slane %v4480_v37, 2 }
  0x50   : > { %v4874_v29 = vsel %vm433_vm1, %v2390_v38, %v2391_v49  ;;  %v4877_v15 = vsel %vm433_vm1, %v2717_v61, %v2718_v47  ;;  %v4892_v49 = vsel %vm634_vm3, %v2516_v23, %v2517_v35  ;;  %v2073_v61 = vpack.c.bf16 %v2069_v0, %v4715_v14 }
  0x51   : > { %v863_v35 = vpack.c.bf16 %v4444_v25, %v4441_v24  ;;  %v4911_v23 = vpack.c.bf16 %v4625_v28, %v4610_v19  ;;  %v4924_v24 = vpack.c.bf16 %v4643_v2, %v4628_v36  ;;  %v2153_v25 = vrot.slane %v4784_v7, 2  ;;  %v3457_v36 = vld [vmem:[%s5426_s3 + $0x18] sm:$0xf] }
  0x52   : > { %v2154_v19 = vrot.slane %v4825_v56, 2  ;;  %v2278_v28 = vsel %vm485_vm0, %v3517_v58, 0  ;;  %v4932_v0 = vpack.c.bf16 %v4676_v50, %v4646_v16  ;;  %v2258_v16 = vld [vmem:[%s4830_s13 + $0x98] sm:$0x3] }
  0x53   : > { %v2998_v7 = vrot.slane %v2258_v16, 1 }
  0x54   : > { %v2155_v50 = vsel %vm634_vm3, %v2153_v25, %v2154_v19  ;;  %v962_v25 = vpack.c.bf16 %v4746_v17, %v4735_v18  ;;  %v956_v18 = vrot.slane %v4703_v4, 2  ;;  %v963_v17 = vpack.c.bf16 %v4787_v9, %v4749_v31  ;;  %v3462_v4 = vld [vmem:[%s5426_s3 + $0x1c] sm:$0xf]  ;;  %v5026_v31 = vld [vmem:[%s4830_s13 + $0x60] sm:$0xff] }
  0x55   : > { %3863 = vmatmul.mubr.msk.bf16.vlgmr.msra.gmra.mrb[0].mxu0 %vm472_vm2, %v4838_v59  ;;  %3733 = vmatmul.mubr.msk.bf16.vlgmr.msra.gmra.mrb[0].mxu1 %vm472_vm2, %v764_v55  ;;  %v2816_v55 = vrot.slane %v2256_v51, 2  ;;  %v766_v51 = vpack.c.bf16 %v4722_v3, %v4547_v12  ;;  %v864_v12 = vpack.c.bf16 %v4542_v1, %v4450_v27  ;;  %v865_v27 = vpack.c.bf16 %v4594_v52, %v4582_v46  ;;  %v3522_v1 = vld [vmem:[%s5426_s3 + $0x4c] sm:$0xf]  ;;  %v4951_v46 = vld [vmem:[%s4830_s13] sm:$0xff]  ;;  %v4954_v52 = vld [vmem:[%s4830_s13 + $0x10] sm:$0xff] }
  0x56   : > { %3871 = vmatpush3.bf16.msra.mxu0 %v2164_v32  ;;  %3741 = vmatpush3.bf16.msra.mxu1 %v880_v48  ;;  %v4887_v32 = vld [vmem:[%s4830_s13 + $0x90] sm:$0xff]  ;;  %v4905_v48 = vsel %vm634_vm3, %v1565_v34, %v1566_v45  ;;  %v978_v45 = vsel %vm485_vm0, %v3452_v63, 0  ;;  %v2159_v56 = vpack.c.bf16 %v2155_v50, %v4679_v53 }
  0x57   : > { %3866 = vmatprep.mubr.msk.bf16.mxu0 %vm472_vm2, %v4853_v60  ;;  %3736 = vmatprep.mubr.msk.bf16.mxu1 %vm472_vm2, %v765_v40  ;;  %v4895_v47 = vsel %vm634_vm3, %v2815_v8, %v2816_v55  ;;  %v2997_v2 = vrot.slane %v4887_v32, 1 }
  0x58   : > { %4199 = vmatprep.subr.msk.bf16.mxu0 %vm485_vm0, %v3517_v58  ;;  %4185 = vmatprep.subr.msk.bf16.mxu1 %vm485_vm0, %v3452_v63  ;;  %v2261_v58 = vpack.c.bf16 %v4954_v52, %v4951_v46  ;;  %v961_v63 = vpack.c.bf16 %v4732_v26, %v4686_v30  ;;  %v4981_v30 = vld [vmem:[%s4830_s13 + $0x30] sm:$0xff]  ;;  %v4985_v26 = vld [vmem:[%s4830_s13 + $0x40] sm:$0xff] }
  0x59   : > { %v4965_v55 = vsel %vm433_vm1, %v2997_v2, %v2998_v7  ;;  %v955_v2 = vrot.slane %v4722_v3, 2  ;;  %v2381_v40 = vrot.slane %v4985_v26, 1 }
  0x5b   : > { %v5029_v9 = vsel %vm634_vm3, %v955_v2, %v956_v18  ;;  %v5049_v2 = vpack.c.bf16 %v4845_v22, %v5026_v31 }
  0x5c   : > { %v964_v18 = vpack.c.bf16 %v5029_v9, %v4790_v57 }
  0x5d   : > { %3867 = vmatmul.mubr.msk.bf16.gmra.mrb[4].mxu0 %vm472_vm2, %v2073_v61  ;;  %3737 = vmatmul.mubr.msk.bf16.gmra.mrb[4].mxu1 %vm472_vm2, %v766_v51  ;;  %v5470_v61 = vpack.c.bf16 %v4741_v62, %v4597_v41  ;;  %v4978_v51 = vld [vmem:[%s4830_s13 + $0x20] sm:$0xff]  ;;  %v4994_v41 = vld [vmem:[%s4830_s13 + $0x18] sm:$0x3] }
  0x5e   : > { %3872 = vmatprep.mubr.msk.bf16.mxu0 %vm472_vm2, %v4911_v23  ;;  %3742 = vmatprep.mubr.msk.bf16.mxu1 %vm472_vm2, %v863_v35  ;;  %v4988_v35 = vld [vmem:[%s4830_s13 + $0x50] sm:$0xff]  ;;  %v5000_v19 = vpack.c.bf16 %v4981_v30, %v4978_v51 }
  0x5f   : > { %v5007_v50 = vpack.c.bf16 %v4988_v35, %v4985_v26  ;;  %v2384_v38 = vrot.slane %v4988_v35, 1  ;;  %v2510_v6 = vrot.slane %v4988_v35, 2 }
  0x65   : > { %3873 = vmatmul.mubr.msk.bf16.vlgmr.msra.gmra.mrb[0].mxu0 %vm472_vm2, %v4924_v24  ;;  %3743 = vmatmul.mubr.msk.bf16.vlgmr.msra.gmra.mrb[0].mxu1 %vm472_vm2, %v864_v12  ;;  %v4991_v12 = vld [vmem:[%s4830_s13 + $0x8] sm:$0x3] }
  0x66   : > { %3881 = vmatpush3.bf16.msra.mxu0 %v2278_v28  ;;  %3751 = vmatpush3.bf16.msra.mxu1 %v978_v45  ;;  %v2420_v28 = vsel %vm485_vm0, %v3522_v1, 0  ;;  %v1060_v45 = vsel %vm485_vm0, %v3457_v36, 0  ;;  %v2370_v7 = vrot.slane %v4991_v12, 1 }
  0x67   : > { %3876 = vmatprep.mubr.msk.bf16.mxu0 %vm472_vm2, %v4932_v0  ;;  %3746 = vmatprep.mubr.msk.bf16.mxu1 %vm472_vm2, %v865_v27  ;;  %v2369_v27 = vrot.slane %v4951_v46, 1 }
  0x68   : > { %4200 = vmatprep.subr.msk.bf16.mxu0 %vm485_vm0, %v3522_v1  ;;  %4186 = vmatprep.subr.msk.bf16.mxu1 %vm485_vm0, %v3457_v36  ;;  %v2372_v1 = vrot.slane %v4954_v52, 1  ;;  %v2373_v36 = vrot.slane %v4994_v41, 1 }
  0x6d   : > { %3877 = vmatmul.mubr.msk.bf16.gmra.mrb[4].mxu0 %vm472_vm2, %v2159_v56  ;;  %3747 = vmatmul.mubr.msk.bf16.gmra.mrb[4].mxu1 %vm472_vm2, %v5470_v61  ;;  %v3527_v56 = vld [vmem:[%s5426_s3 + $0x50] sm:$0xf]  ;;  %v2371_v61 = vsel %vm433_vm1, %v2369_v27, %v2370_v7  ;;  %v5056_v7 = vld [vmem:[%s4830_s13 + $0x48] sm:$0x3] }
  0x6e   : > { %3882 = vmatprep.mubr.msk.bf16.mxu0 %vm472_vm2, %v2261_v58  ;;  %3752 = vmatprep.mubr.msk.bf16.mxu1 %vm472_vm2, %v961_v63  ;;  %v5032_v58 = vld [vmem:[%s4830_s13 + $0x28] sm:$0x3]  ;;  %v3083_v63 = vrot.slane %v4887_v32, 2  ;;  %v2382_v8 = vrot.slane %v5056_v7, 1 }
  0x6f   : > { %v2376_v27 = vrot.slane %v5032_v58, 1 }
  0x70   : > { %v5089_v57 = vsel %vm433_vm1, %v2381_v40, %v2382_v8  ;;  %v2499_v8 = vrot.slane %v4994_v41, 2  ;;  %v5124_v41 = vld [vmem:[%s4396_s28 + $0x90] sm:$0xff] }
  0x75   : > { %3883 = vmatmul.mubr.msk.bf16.vlgmr.msra.gmra.mrb[0].mxu0 %vm472_vm2, %v5000_v19  ;;  %3753 = vmatmul.mubr.msk.bf16.vlgmr.msra.gmra.mrb[0].mxu1 %vm472_vm2, %v962_v25  ;;  %v5040_v25 = vsel %vm433_vm1, %v2372_v1, %v2373_v36  ;;  %v5059_v1 = vld [vmem:[%s4830_s13 + $0x58] sm:$0x3] }
  0x76   : > { %3891 = vmatpush3.bf16.msra.mxu0 %v2420_v28  ;;  %3761 = vmatpush3.bf16.msra.mxu1 %v1060_v45  ;;  %v5043_v28 = vld [vmem:[%s4830_s13 + $0x38] sm:$0x3]  ;;  %v3084_v45 = vrot.slane %v2258_v16, 2  ;;  %v2403_v36 = vpack.c.bf16 %v5040_v25, %v2371_v61  ;;  %v2378_v16 = vrot.slane %v4981_v30, 1  ;;  %v2385_v44 = vrot.slane %v5059_v1, 1 }
  0x77   : > { %3886 = vmatprep.mubr.msk.bf16.mxu0 %vm472_vm2, %v5007_v50  ;;  %3756 = vmatprep.mubr.msk.bf16.mxu1 %vm472_vm2, %v963_v17  ;;  %v2375_v17 = vrot.slane %v4978_v51, 1  ;;  %v2379_v53 = vrot.slane %v5043_v28, 1  ;;  %v2511_v14 = vrot.slane %v5059_v1, 2 }
  0x78   : > { %4201 = vmatprep.subr.msk.bf16.mxu0 %vm485_vm0, %v3527_v56  ;;  %4187 = vmatprep.subr.msk.bf16.mxu1 %vm485_vm0, %v3462_v4  ;;  %v5065_v34 = vsel %vm634_vm3, %v3083_v63, %v3084_v45  ;;  %v5086_v45 = vld [vmem:[%s4830_s13 + $0x68] sm:$0x3] }
  0x79   : > { %5471 = vst [vmem:[#allocation21_spill] sm:$0xff] %v5065_v34  ;;  %v5078_v63 = vsel %vm433_vm1, %v2375_v17, %v2376_v27  ;;  %v5081_v61 = vsel %vm433_vm1, %v2378_v16, %v2379_v53  ;;  %v5092_v34 = vsel %vm433_vm1, %v2384_v38, %v2385_v44  ;;  %v2546_v53 = vsel %vm485_vm0, %v3527_v56, 0  ;;  %v3532_v56 = vld [vmem:[%s5426_s3 + $0x54] sm:$0xf] }
  0x7a   : > { %v5097_v17 = vpack.c.bf16 %v5081_v61, %v5078_v63  ;;  %v1148_v27 = vsel %vm485_vm0, %v3462_v4, 0  ;;  %v5105_v40 = vpack.c.bf16 %v5092_v34, %v5089_v57  ;;  %v2496_v44 = vrot.slane %v4991_v12, 2  ;;  %v3467_v4 = vld [vmem:[%s5426_s3 + $0x20] sm:$0xf] }
  0x7b   : > { %v2498_v38 = vrot.slane %v4954_v52, 2  ;;  %v5168_v1 = vsel %vm634_vm3, %v2510_v6, %v2511_v14  ;;  %v5474_v6 = vld [vmem:[#allocation12_spill] sm:$0xff]  ;;  %v3537_v14 = vld [vmem:[%s5426_s3 + $0x58] sm:$0xf] }
  0x7d   : > { %3887 = vmatmul.mubr.msk.bf16.gmra.mrb[4].mxu0 %vm472_vm2, %v5049_v2  ;;  %3757 = vmatmul.mubr.msk.bf16.gmra.mrb[4].mxu1 %vm472_vm2, %v964_v18  ;;  %v2495_v18 = vrot.slane %v4951_v46, 2  ;;  %v5472_v46 = vld [vmem:[#allocation14_spill] sm:$0xff] }
  0x7e   : > { %3892 = vmatprep.mubr.msk.bf16.mxu0 %vm472_vm2, %v2403_v36  ;;  %3762 = vmatprep.mubr.msk.bf16.mxu1 %vm472_vm2, %v4650_v5  ;;  %v2387_v5 = vrot.slane %v5026_v31, 1  ;;  %v2388_v36 = vrot.slane %v5086_v45, 1 }
  0x7f   : > { %v2497_v16 = vsel %vm634_vm3, %v2495_v18, %v2496_v44  ;;  %v2502_v18 = vrot.slane %v5032_v58, 2  ;;  %v2505_v44 = vrot.slane %v5043_v28, 2  ;;  %v5473_v28 = vld [vmem:[#allocation4_spill] sm:$0xff] }
  0x80   : > { %v5121_v12 = vsel %vm433_vm1, %v2387_v5, %v2388_v36  ;;  %v2501_v5 = vrot.slane %v4978_v51, 2  ;;  %v2504_v36 = vrot.slane %v4981_v30, 2 }
  0x82   : > { %v5159_v58 = vsel %vm634_vm3, %v2504_v36, %v2505_v44  ;;  %v2640_v44 = vsel %vm485_vm0, %v3532_v56, 0 }
  0x85   : > { %3893 = vmatmul.mubr.msk.bf16.vlgmr.msra.gmra.mrb[0].mxu0 %vm472_vm2, %v5097_v17  ;;  %3763 = vmatmul.mubr.msk.bf16.vlgmr.msra.gmra.mrb[0].mxu1 %vm472_vm2, %v5472_v46  ;;  %v5132_v46 = vsel %vm634_vm3, %v2498_v38, %v2499_v8  ;;  %v2507_v38 = vrot.slane %v4985_v26, 2  ;;  %v2508_v8 = vrot.slane %v5056_v7, 2  ;;  %v411_v7 = vld [vmem:[%s4396_s28 + $0x98] sm:$0x3]  ;;  %s390_s28 = scalar_lea.vmem %s5429_s6, %s3427_s14 }
  0x86   : > { %3901 = vmatpush3.bf16.msra.mxu0 %v2546_v53  ;;  %3771 = vmatpush3.bf16.msra.mxu1 %v1148_v27  ;;  %v5138_v53 = vpack.c.bf16 %v4874_v29, %v5121_v12  ;;  %v1055_v27 = vpack.c.bf16 %v5124_v41, %v4722_v3  ;;  %v5156_v3 = vsel %vm634_vm3, %v2501_v5, %v2502_v18  ;;  %v1137_v5 = vrot.slane %v5124_v41, 1 }
  0x87   : > { %3896 = vmatprep.mubr.msk.bf16.mxu0 %vm472_vm2, %v5105_v40  ;;  %3766 = vmatprep.mubr.msk.bf16.mxu1 %vm472_vm2, %v4700_v42  ;;  %v2529_v42 = vpack.c.bf16 %v5132_v46, %v2497_v16  ;;  %v5165_v16 = vsel %vm634_vm3, %v2507_v38, %v2508_v8  ;;  %v2514_v18 = vrot.slane %v5086_v45, 2  ;;  %v1138_v36 = vrot.slane %v411_v7, 1  ;;  %v3472_v45 = vld [vmem:[%s5426_s3 + $0x24] sm:$0xf]  ;;  %v5475_v8 = vld [vmem:[#allocation13_spill] sm:$0xff] }
  0x88   : > { %4202 = vmatprep.subr.msk.bf16.mxu0 %vm485_vm0, %v3532_v56  ;;  %4188 = vmatprep.subr.msk.bf16.mxu1 %vm485_vm0, %v3467_v4  ;;  %v5181_v38 = vpack.c.bf16 %v5168_v1, %v5165_v16 }
  0x8d   : > { %3897 = vmatmul.mubr.msk.bf16.gmra.mrb[4].mxu0 %vm472_vm2, %v5138_v53  ;;  %3767 = vmatmul.mubr.msk.bf16.gmra.mrb[4].mxu1 %vm472_vm2, %v1055_v27  ;;  %v5172_v27 = vpack.c.bf16 %v5159_v58, %v5156_v3 }
  0x8e   : > { %3902 = vmatprep.mubr.msk.bf16.mxu0 %vm472_vm2, %v2529_v42  ;;  %3772 = vmatprep.mubr.msk.bf16.mxu1 %vm472_vm2, %v5473_v28  ;;  %v2513_v42 = vrot.slane %v5026_v31, 2  ;;  %v1234_v28 = vsel %vm485_vm0, %v3467_v4, 0  ;;  %v1139_v4 = vsel %vm433_vm1, %v1137_v5, %v1138_v36  ;;  %v2624_v5 = vpack.c.bf16 %v4985_v26, %v4981_v30  ;;  %v3477_v30 = vld [vmem:[%s5426_s3 + $0x28] sm:$0xf] }
  0x8f   : > { %v1224_v36 = vrot.slane %v411_v7, 2 }
  0x90   : > { %v5194_v56 = vsel %vm634_vm3, %v2513_v42, %v2514_v18  ;;  %v2623_v42 = vpack.c.bf16 %v4978_v51, %v4954_v52  ;;  %v1223_v18 = vrot.slane %v5124_v41, 2  ;;  %v1348_v52 = vsel %vm485_vm0, %v3472_v45, 0  ;;  %v5476_v41 = vld [vmem:[#allocation3_spill] sm:$0xff] }
  0x91   : > { %v2625_v51 = vpack.c.bf16 %v5026_v31, %v4988_v35  ;;  %v2723_v31 = vpack.c.bf16 %v5078_v63, %v5040_v25  ;;  %v1331_v7 = vpack.c.bf16 %v5476_v41, %v4480_v37  ;;  %v2725_v25 = vpack.c.bf16 %v5121_v12, %v5092_v34  ;;  %v3547_v37 = vld [vmem:[%s5426_s3 + $0x60] sm:$0xf]  ;;  %v5477_v63 = vld [vmem:[#allocation17_spill] sm:$0xff] }
  0x92   : > { %v1225_v26 = vsel %vm634_vm3, %v1223_v18, %v1224_v36  ;;  %v5478_v34 = vpack.c.bf16 %v4877_v15, %v4874_v29  ;;  %v5480_v12 = vld [vmem:[#allocation9_spill] sm:$0xff]  ;;  %v2823_v29 = vpack.c.bf16 %v5194_v56, %v5168_v1  ;;  %v5485_v1 = vpack.c.bf16 %v4600_v54, %v4905_v48  ;;  %v4252_v54 = vld [vmem:[%s5426_s3 + $0x34] sm:$0xf] }
  0x93   : > { %v1229_v35 = vpack.c.bf16 %v1225_v26, %v5029_v9  ;;  %v1490_v9 = vsel %vm485_vm0, %v3477_v30, 0 }
  0x95   : > { %3903 = vmatmul.mubr.msk.bf16.vlgmr.msra.gmra.mrb[0].mxu0 %vm472_vm2, %v5172_v27  ;;  %3773 = vmatmul.mubr.msk.bf16.vlgmr.msra.gmra.mrb[0].mxu1 %vm472_vm2, %v5474_v6  ;;  %v5205_v6 = vpack.c.bf16 %v4892_v49, %v5194_v56 }
  0x96   : > { %3911 = vmatpush3.bf16.msra.mxu0 %v2640_v44  ;;  %3781 = vmatpush3.bf16.msra.mxu1 %v1234_v28  ;;  %v1143_v44 = vpack.c.bf16 %v1139_v4, %v4741_v62  ;;  %v2740_v62 = vsel %vm485_vm0, %v3537_v14, 0  ;;  %v5481_v28 = vld [vmem:[#allocation8_spill] sm:$0xff]  ;;  %v5483_v4 = vld [vmem:[#allocation19_spill] sm:$0xff] }
  0x97   : > { %3906 = vmatprep.mubr.msk.bf16.mxu0 %vm472_vm2, %v5181_v38  ;;  %3776 = vmatprep.mubr.msk.bf16.mxu1 %vm472_vm2, %v5475_v8  ;;  %v3552_v8 = vld [vmem:[%s5426_s3 + $0x64] sm:$0xf] }
  0x98   : > { %4203 = vmatprep.subr.msk.bf16.mxu0 %vm485_vm0, %v3537_v14  ;;  %4189 = vmatprep.subr.msk.bf16.mxu1 %vm485_vm0, %v3472_v45  ;;  %v5482_v14 = vpack.c.bf16 %v5480_v12, %v5481_v28  ;;  %v2822_v45 = vpack.c.bf16 %v5165_v16, %v5159_v58  ;;  %v3487_v58 = vld [vmem:[%s5426_s3 + $0x30] sm:$0xf]  ;;  %v5484_v16 = vpack.c.bf16 %v4895_v47, %v4892_v49  ;;  %v5486_v49 = vld [vmem:[#allocation5_spill] sm:$0xff] }
  0x99   : > { %v1710_v56 = vsel %vm485_vm0, %v3487_v58, 0  ;;  %v1693_v48 = vpack.c.bf16 %v5486_v49, %v5476_v41 }
  0x9d   : > { %3907 = vmatmul.mubr.msk.bf16.gmra.mrb[4].mxu0 %vm472_vm2, %v5205_v6  ;;  %3777 = vmatmul.mubr.msk.bf16.gmra.mrb[4].mxu1 %vm472_vm2, %v1143_v44  ;;  %v5490_v44 = vld [vmem:[#allocation7_spill] sm:$0xff] }
  0x9e   : > { %3912 = vmatprep.mubr.msk.bf16.mxu0 %vm472_vm2, %v2623_v42  ;;  %3782 = vmatprep.mubr.msk.bf16.mxu1 %vm472_vm2, %v4753_v20  ;;  %v3542_v20 = vld [vmem:[%s5426_s3 + $0x5c] sm:$0xf] }
  0xa5   : > { %3913 = vmatmul.mubr.msk.bf16.vlgmr.msra.gmra.mrb[0].mxu0 %vm472_vm2, %v2624_v5  ;;  %3783 = vmatmul.mubr.msk.bf16.vlgmr.msra.gmra.mrb[0].mxu1 %vm472_vm2, %v4771_v33  ;;  %v2626_v33 = vpack.c.bf16 %v4858_v13, %v4845_v22  ;;  %v2838_v22 = vsel %vm485_vm0, %v3542_v20, 0  ;;  %v5496_v5 = vpack.c.bf16 %v4636_v43, %v4632_v39 }
  0xa6   : > { %3921 = vmatpush3.bf16.msra.mxu0 %v2740_v62  ;;  %3791 = vmatpush3.bf16.msra.mxu1 %v1348_v52 }
  0xa7   : > { %3916 = vmatprep.mubr.msk.bf16.mxu0 %vm472_vm2, %v2625_v51  ;;  %3786 = vmatprep.mubr.msk.bf16.mxu1 %vm472_vm2, %v4803_v21  ;;  %v2724_v21 = vpack.c.bf16 %v5089_v57, %v5081_v61  ;;  %v3482_v57 = vld [vmem:[%s5426_s3 + $0x2c] sm:$0xf]  ;;  %v5479_v61 = vld [vmem:[#allocation18_spill] sm:$0xff] }
  0xa8   : > { %4204 = vmatprep.subr.msk.bf16.mxu0 %vm485_vm0, %v3542_v20  ;;  %4190 = vmatprep.subr.msk.bf16.mxu1 %vm485_vm0, %v3477_v30 }
  0xad   : > { %3917 = vmatmul.mubr.msk.bf16.gmra.mrb[4].mxu0 %vm472_vm2, %v2626_v33  ;;  %3787 = vmatmul.mubr.msk.bf16.gmra.mrb[4].mxu1 %vm472_vm2, %v1229_v35 }
  0xae   : > { %3922 = vmatprep.mubr.msk.bf16.mxu0 %vm472_vm2, %v2723_v31  ;;  %3792 = vmatprep.mubr.msk.bf16.mxu1 %vm472_vm2, %v1331_v7 }
  0xb5   : > { %3923 = vmatmul.mubr.msk.bf16.vlgmr.msra.gmra.mrb[0].mxu0 %vm472_vm2, %v2724_v21  ;;  %3793 = vmatmul.mubr.msk.bf16.vlgmr.msra.gmra.mrb[0].mxu1 %vm472_vm2, %v4708_v11  ;;  %v2821_v11 = vpack.c.bf16 %v5156_v3, %v5132_v46  ;;  %v2920_v46 = vsel %vm485_vm0, %v3547_v37, 0  ;;  %v1616_v3 = vsel %vm485_vm0, %v3482_v57, 0 }
  0xb6   : > { %3931 = vmatpush3.bf16.msra.mxu0 %v2838_v22  ;;  %3801 = vmatpush3.bf16.msra.mxu1 %v1490_v9 }
  0xb7   : > { %3926 = vmatprep.mubr.msk.bf16.mxu0 %vm472_vm2, %v2725_v25  ;;  %3796 = vmatprep.mubr.msk.bf16.mxu1 %vm472_vm2, %v5477_v63 }
  0xb8   : > { %4205 = vmatprep.subr.msk.bf16.mxu0 %vm485_vm0, %v3547_v37  ;;  %4191 = vmatprep.subr.msk.bf16.mxu1 %vm485_vm0, %v3482_v57 }
  0xbd   : > { %3927 = vmatmul.mubr.msk.bf16.gmra.mrb[4].mxu0 %vm472_vm2, %v5478_v34  ;;  %3797 = vmatmul.mubr.msk.bf16.gmra.mrb[4].mxu1 %vm472_vm2, %v5479_v61 }
  0xbe   : > { %3932 = vmatprep.mubr.msk.bf16.mxu0 %vm472_vm2, %v2821_v11  ;;  %3802 = vmatprep.mubr.msk.bf16.mxu1 %vm472_vm2, %v5482_v14 }
  0xc5   : > { %3933 = vmatmul.mubr.msk.bf16.vlgmr.msra.gmra.mrb[0].mxu0 %vm472_vm2, %v2822_v45  ;;  %3803 = vmatmul.mubr.msk.bf16.vlgmr.msra.gmra.mrb[0].mxu1 %vm472_vm2, %v5483_v4 }
  0xc6   : > { %3941 = vmatpush3.bf16.msra.mxu0 %v2920_v46  ;;  %3811 = vmatpush3.bf16.msra.mxu1 %v1616_v3 }
  0xc7   : > { %3936 = vmatprep.mubr.msk.bf16.mxu0 %vm472_vm2, %v2823_v29  ;;  %3806 = vmatprep.mubr.msk.bf16.mxu1 %vm472_vm2, %v4838_v59  ;;  %v3008_v59 = vsel %vm485_vm0, %v3552_v8, 0 }
  0xc8   : > { %4206 = vmatprep.subr.msk.bf16.mxu0 %vm485_vm0, %v3552_v8  ;;  %4192 = vmatprep.subr.msk.bf16.mxu1 %vm485_vm0, %v3487_v58 }
  0xcd   : > { %3937 = vmatmul.mubr.msk.bf16.gmra.mrb[4].mxu0 %vm472_vm2, %v5484_v16  ;;  %3807 = vmatmul.mubr.msk.bf16.gmra.mrb[4].mxu1 %vm472_vm2, %v4853_v60  ;;  %v3557_v60 = vld [vmem:[%s5426_s3 + $0x68] sm:$0xf] }
  0xce   : > { %3942 = vmatprep.mubr.msk.bf16.mxu0 %vm472_vm2, %v5000_v19  ;;  %3812 = vmatprep.mubr.msk.bf16.mxu1 %vm472_vm2, %v5485_v1  ;;  %v5488_v19 = vld [vmem:[#allocation10_spill] sm:$0xff] }
  0xd5   : > { %3943 = vmatmul.mubr.msk.bf16.vlgmr.msra.gmra.mrb[0].mxu0 %vm472_vm2, %v5007_v50  ;;  %3813 = vmatmul.mubr.msk.bf16.vlgmr.msra.gmra.mrb[0].mxu1 %vm472_vm2, %v4911_v23  ;;  %v5487_v23 = vpack.c.bf16 %v4887_v32, %v4858_v13  ;;  %v5489_v50 = vld [vmem:[#allocation11_spill] sm:$0xff]  ;;  %v5491_v13 = vld [vmem:[#allocation6_spill] sm:$0xff] }
  0xd6   : > { %3951 = vmatpush3.bf16.msra.mxu0 %v3008_v59  ;;  %3821 = vmatpush3.bf16.msra.mxu1 %v1710_v56  ;;  %v5492_v32 = vpack.c.bf16 %v5490_v44, %v5491_v13 }
  0xd7   : > { %3946 = vmatprep.mubr.msk.bf16.mxu0 %vm472_vm2, %v5049_v2  ;;  %3816 = vmatprep.mubr.msk.bf16.mxu1 %vm472_vm2, %v4924_v24  ;;  %v3094_v24 = vsel %vm485_vm0, %v3557_v60, 0  ;;  %v1695_v2 = vpack.c.bf16 %v5489_v50, %v5488_v19 }
  0xd8   : > { %4207 = vmatprep.subr.msk.bf16.mxu0 %vm485_vm0, %v3557_v60  ;;  %4194 = vmatprep.subr.msk.bf16.mxu1 %vm485_vm0, %v4252_v54 }
  0xdd   : > { %3947 = vmatmul.mubr.msk.bf16.gmra.mrb[4].mxu0 %vm472_vm2, %v5487_v23  ;;  %3817 = vmatmul.mubr.msk.bf16.gmra.mrb[4].mxu1 %vm472_vm2, %v4932_v0  ;;  %v5493_v0 = vld [vmem:[#allocation2_spill] sm:$0xff] }
  0xde   : > { %3952 = vmatprep.mubr.msk.bf16.mxu0 %vm472_vm2, %v5097_v17  ;;  %3822 = vmatprep.mubr.msk.bf16.mxu1 %vm472_vm2, %v1693_v48  ;;  %v5494_v17 = vld [vmem:[#allocation20_spill] sm:$0xff] }
  0xdf   : > { %v1795_v42 = vpack.c.bf16 %v4834_v10, %v5494_v17  ;;  %v5497_v10 = vld [vmem:[#allocation16_spill] sm:$0xff] }
  0xe5   : > { %3953 = vmatmul.mubr.msk.bf16.vlgmr.msra.gmra.mrb[0].mxu0 %vm472_vm2, %v5105_v40  ;;  %3823 = vmatmul.mubr.msk.bf16.vlgmr.msra.gmra.mrb[0].mxu1 %vm472_vm2, %v5492_v32  ;;  %v5495_v40 = vpack.c.bf16 %v4965_v55, %v4877_v15  ;;  %v5498_v15 = vld [vmem:[#allocation15_spill] sm:$0xff] }
  0xe6   : > { %3961 = vmatpush3.bf16.msra.mxu0 %v3094_v24  ;;  %3971 = vmatpush3.bf16.msra.mxu1 %v5493_v0  ;;  %v5499_v55 = vpack.c.bf16 %v5497_v10, %v5498_v15 }
  0xe7   : > { %3956 = vmatprep.mubr.msk.bf16.mxu0 %vm472_vm2, %v5138_v53  ;;  %3826 = vmatprep.mubr.msk.bf16.mxu1 %vm472_vm2, %v1695_v2  ;;  %v5500_v53 = vld [vmem:[#allocation21_spill] sm:$0xff] }
  0xe8   : > { %v5501_v39 = vpack.c.bf16 %v5500_v53, %v4895_v47 }
  0xed   : > { %3957 = vmatmul.mubr.msk.bf16.gmra.mrb[4].mxu0 %vm472_vm2, %v5495_v40  ;;  %3827 = vmatmul.mubr.msk.bf16.gmra.mrb[4].mxu1 %vm472_vm2, %v5496_v5 }
  0xee   : > { %3962 = vmatprep.mubr.msk.bf16.mxu0 %vm472_vm2, %v5172_v27  ;;  %3836 = vmatprep.mubr.msk.bf16.mxu1 %vm472_vm2, %v1795_v42 }
  0xf5   : > { %3963 = vmatmul.mubr.msk.bf16.vlgmr.msra.gmra.mrb[0].mxu0 %vm472_vm2, %v5181_v38 }
  0xf6   : > { %3966 = vmatprep.mubr.msk.bf16.mxu0 %vm472_vm2, %v5205_v6  ;;  %v3562_v6 = vld [vmem:[%s5427_s4] ss:$0 sm:$0xff] }
  0xf9   : > { %3837 = vmatmul.mubr.msk.bf16.vlgmr.msra.gmra.mrb[4].mxu1 %vm472_vm2, %v5499_v55 }
  0xfd   : > { %3967 = vmatmul.mubr.msk.bf16.gmra.mrb[4].mxu0 %vm472_vm2, %v5501_v39 }
 0x1b8   : > { %v3824_v43 = vpop.f32.mrb[0].mxu1 }
 0x1b9   : > { %v1746_v27 = vpop.f32.mrb[1].mxu1 }
 0x1ba   : > { %v3825_v18 = vpop.f32.mrb[2].mxu1 }
 0x1bb   : > { %v1749_v36 = vpop.f32.mrb[3].mxu1 }
 0x1c8   : > { %v3964_v38 = vpop.f32.mrb[0].mxu0 }
 0x1c9   : > { %v3972_v47 = vadd.f32 %v3964_v38, %v3824_v43  ;;  %v3130_v62 = vpop.f32.mrb[1].mxu0 }
 0x1ca   : > { %v3973_v52 = vadd.f32 %v3130_v62, %v1746_v27  ;;  %v3965_v51 = vpop.f32.mrb[2].mxu0 }
 0x1cb   : > { %v3178_v20 = vadd.f32 %v3972_v47, %v3562_v6  ;;  %v3974_v30 = vadd.f32 %v3965_v51, %v3825_v18  ;;  %v3133_v26 = vpop.f32.mrb[3].mxu0 }
 0x1cc   : > { %v3176_v33 = vadd.f32 %v3973_v52, %v3562_v6  ;;  %v3975_v35 = vadd.f32 %v3133_v26, %v1749_v36  ;;  %v3838_v31 = vpop.f32.mrb[4].mxu1 }
 0x1cd   : > { %3186 = vst [vmem:[%s5393_s8 + $0x10] sm:$0xff] %v3178_v20  ;;  %v3179_v41 = vadd.f32 %v3974_v30, %v3562_v6  ;;  %v1862_v7 = vpop.f32.mrb[5].mxu1  ;;  %v3207_v61 = vmul.f32 %v3178_v20, %v3178_v20 }
 0x1ce   : > { %3184 = vst [vmem:[%s5393_s8] sm:$0xff] %v3176_v33  ;;  %v3177_v21 = vadd.f32 %v3975_v35, %v3562_v6  ;;  %v3839_v22 = vpop.f32.mrb[6].mxu1  ;;  %v3205_v25 = vmul.f32 %v3176_v33, %v3176_v33 }
 0x1cf   : > { %3187 = vst [vmem:[%s5393_s8 + $0x18] sm:$0xff] %v3179_v41  ;;  %v1865_v9 = vpop.f32.mrb[7].mxu1  ;;  %v3208_v46 = vmul.f32 %v3179_v41, %v3179_v41 }
 0x1d0   : > { %3185 = vst [vmem:[%s5393_s8 + $0x8] sm:$0xff] %v3177_v21  ;;  %v3192_v37 = vadd.f32 %v3177_v21, %v3176_v33  ;;  %v3206_v57 = vmul.f32 %v3177_v21, %v3177_v21  ;;  %v3968_v63 = vpop.f32.mrb[4].mxu0 }
 0x1d1   : > { %v3976_v11 = vadd.f32 %v3968_v63, %v3838_v31  ;;  %v3146_v34 = vpop.f32.mrb[5].mxu0 }
 0x1d2   : > { %v3193_v12 = vadd.f32 %v3192_v37, %v3178_v20  ;;  %v3213_v28 = vadd.f32 %v3206_v57, %v3205_v25  ;;  %v3977_v14 = vadd.f32 %v3146_v34, %v1862_v7  ;;  %v3969_v45 = vpop.f32.mrb[6].mxu0 }
 0x1d3   : > { %v3182_v3 = vadd.f32 %v3976_v11, %v3562_v6  ;;  %v3978_v29 = vadd.f32 %v3969_v45, %v3839_v22  ;;  %v3149_v4 = vpop.f32.mrb[7].mxu0 }
 0x1d4   : > { %v3214_v8 = vadd.f32 %v3213_v28, %v3207_v61  ;;  %v3180_v58 = vadd.f32 %v3977_v14, %v3562_v6  ;;  %v3194_v16 = vadd.f32 %v3193_v12, %v3179_v41  ;;  %v3979_v1 = vadd.f32 %v3149_v4, %v1865_v9 }
 0x1d5   : > { %3190 = vst [vmem:[%s5393_s8 + $0x30] sm:$0xff] %v3182_v3  ;;  %v3183_v59 = vadd.f32 %v3978_v29, %v3562_v6  ;;  %v3211_v19 = vmul.f32 %v3182_v3, %v3182_v3 }
 0x1d6   : > { %3188 = vst [vmem:[%s5393_s8 + $0x20] sm:$0xff] %v3180_v58  ;;  %v3195_v56 = vadd.f32 %v3194_v16, %v3180_v58  ;;  %v3209_v60 = vmul.f32 %v3180_v58, %v3180_v58  ;;  %v3215_v54 = vadd.f32 %v3214_v8, %v3208_v46  ;;  %v3181_v49 = vadd.f32 %v3979_v1, %v3562_v6 }
 0x1d7   : > { %3191 = vst [vmem:[%s5393_s8 + $0x38] sm:$0xff] %v3183_v59  ;;  %v3212_v44 = vmul.f32 %v3183_v59, %v3183_v59 }
 0x1d8   : > { %v3216_v48 = vadd.f32 %v3215_v54, %v3209_v60  ;;  %3189 = vst [vmem:[%s5393_s8 + $0x28] sm:$0xff] %v3181_v49  ;;  %v3196_v23 = vadd.f32 %v3195_v56, %v3181_v49  ;;  %v3210_v24 = vmul.f32 %v3181_v49, %v3181_v49 }
 0x1da   : > { %v3197_v50 = vadd.f32 %v3196_v23, %v3182_v3  ;;  %v3217_v2 = vadd.f32 %v3216_v48, %v3210_v24 }
 0x1dc   : > { %v3198_v13 = vadd.f32 %v3197_v50, %v3183_v59  ;;  %v3218_v32 = vadd.f32 %v3217_v2, %v3211_v19 }
 0x1de   : > { %v3199_v0 = vrot.slane %v3198_v13, 4  ;;  %v3219_v17 = vadd.f32 %v3218_v32, %v3212_v44 }
 0x1e0   : > { %v3200_v42 = vadd.f32 %v3199_v0, %v3198_v13  ;;  %v3220_v40 = vrot.slane %v3219_v17, 4 }
 0x1e2   : > { %v3201_v5 = vrot.slane %v3200_v42, 2  ;;  %v3221_v10 = vadd.f32 %v3220_v40, %v3219_v17 }
 0x1e4   : > { %v3202_v15 = vadd.f32 %v3201_v5, %v3200_v42  ;;  %v3222_v55 = vrot.slane %v3221_v10, 2 }
 0x1e6   : > { %v3203_v53 = vrot.slane %v3202_v15, 1  ;;  %v3223_v39 = vadd.f32 %v3222_v55, %v3221_v10 }
 0x1e8   : > { %v3224_v43 = vrot.slane %v3223_v39, 1  ;;  %v3204_v27 = vadd.f32 %v3203_v53, %v3202_v15 }
 0x1ea   : > { %v3225_v18 = vadd.f32 %v3224_v43, %v3223_v39 }
 0x1ec   : > { %v3227_v36 = vsel %vm3226_vm4, %v3204_v27, %v3225_v18 }
 0x1ed   : > { %v3229_v38 = vsel %vm3228_vm5, %v3227_v36, 0.0 }
 0x1ee   : > { %3230 = vst [vmem:[%s390_s28] sm:$0xff] %v3229_v38 }
 0x1ef PF: > { %s17_s25 = sadd.s32 1, %s4291_s25   ;;  %s5502_s21 = smov %s4283_s23 }
 0x1f0   : > { %p14_p10 = scmp.ge.s32.totalorder %s17_s25, 18   ;;  %s5503_s22 = smov %s4287_s24 }
 0x1f1   : > { %s5504_s23 = smov %s5507_s26  ;;  %s5505_s24 = smov %s5511_s27 }
 0x1f2   :  { %16 = sbr.rel (!%p14_p10) target bundleno = 3 (0x3), region = 114 }

// kernel: up_block_forward.8
= control target key start
LH: loop header
LB: loop body
LE: loop exit
PB: predicated region body
PF: predicated region fallthrough
CT: control target
= control target key end

     0   :  { %s4327_s21 = smov 0   ;;  %s4329_s22 = smov 0   ;;  %s5423_s0 = inlined_call_operand.vmem [shape: f32[2,10,10,10,4], index: 0, kind: input, shape index: {}, may-alias: {0,1,2}]   ;;  %s5424_s1 = inlined_call_operand.vmem [shape: f32[2,10,10,10,4], index: 1, kind: input, shape index: {}, may-alias: {0,1,2}]   ;;  %s5425_s2 = inlined_call_operand.vmem [shape: f32[2,10,10,10,4], index: 2, kind: input, shape index: {}, may-alias: {0,1,2}]   ;;  %s5426_s3 = inlined_call_operand.vmem [shape: bf16[27,4,128], index: 3, kind: input, shape index: {}]   ;;  %s5427_s4 = inlined_call_operand.vmem [shape: f32[1,128], index: 4, kind: input, shape index: {}]   ;;  %s5428_s5 = inlined_call_operand.vmem [shape: f32[2,8,64,128], index: 5, kind: output, shape index: {0}]   ;;  %s5429_s6 = inlined_call_operand.vmem [shape: f32[2,8,8,128], index: 6, kind: output, shape index: {1}]  }
   0x1   :  { %s4331_s23 = smov 0   ;;  %s4333_s24 = smov 0  }
   0x2   :  { %s4335_s25 = smov 0  }
   0x3 LB: > { %s26_s26 = sadd.s32 1, %s4282_s23  ;;  %s29_s27 = sadd.s32 1, %s4286_s24  ;;  %s4290_s25 = sphi %s4335_s25, %s17_s25   ;;  %s4286_s24 = sphi %s4333_s24, %s5505_s24   ;;  %s4282_s23 = sphi %s4331_s23, %s5504_s23   ;;  %s4278_s22 = sphi %s4329_s22, %s5503_s22   ;;  %s4274_s21 = sphi %s4327_s21, %s5502_s21  }
   0x4   : > { %p27_p0 = scmp.ge.s32.totalorder %s26_s26, 8  ;;  %p3418_p1 = scmp.ge.s32.totalorder %s4290_s25, 1 }
   0x5   : > { %p277_p2 = scmp.lt.s32.totalorder %s4290_s25, 17 }
   0x6   : > { %s5507_s26 = smov (%p27_p0, %s26_s26), 0  ;;  %s5509_s27 = smov (!%p27_p0, %s29_s27), %s4286_s24 }
   0x7   : > { %p278_p3 = pnand %p3418_p1, %p277_p2  ;;  %p31_p4 = scmp.ge.s32.totalorder %s5509_s27, 2 }
   0x9   : > { %s5511_s27 = smov (%p31_p4, %s5509_s27), 0  ;;  %281 = sbr.rel (%p278_p3) target bundleno = 495 (0x1ef), region = 40 }
  0x10   : > { %v3427_v0 = vld [vmem:[%s5426_s3 + $0x2] sm:$0x3]  ;;  %vm485_vm0 = vcmask 1041408   ;;  %v3491_v1 = vld [vmem:[%s5426_s3 + $0x1a] sm:$0x3]  ;;  %p343_p5 = scmp.lt.s32.totalorder %s4278_s22, 1 }
  0x11   : > { %4179 = vmatprep.subr.msk.bf16.mxu1 %vm485_vm0, %v3427_v0  ;;  %4192 = vmatprep.subr.msk.bf16.mxu0 %vm485_vm0, %v3491_v1  ;;  %v487_v2 = vsel %vm485_vm0, %v3427_v0, 0  ;;  %v4369_v3 = vsel %vm485_vm0, %v3491_v1, 0  ;;  %p345_p6 = scmp.lt.s32.totalorder %s4274_s21, 9  ;;  %s352_s8 = sadd.s32 1, %s4274_s21  ;;  %v412_v4 = vld [vmem:[%s5426_s3] sm:$0x3] }
  0x12   : > { %5451 = vst [vmem:[#allocation2_spill] sm:$0xff] %v4369_v3  ;;  %3700 = vmatpush3.bf16.msra.mxu1 %v487_v2  ;;  %3830 = vmatpush3.bf16.msra.mxu0 %v4369_v3  ;;  %s5513_s22 = smov (!%p343_p5, %s4278_s22), 1  ;;  %v4382_v5 = vld [vmem:[%s5426_s3 + $0x1c] sm:$0x3]  ;;  %p355_p7 = scmp.lt.s32.totalorder %s352_s8, 9  ;;  %vm433_vm1 = vcmask 1046528  }
  0x13   : > { %s346_s13 = scalar_select %p345_p6, %s4274_s21, 9  ;;  %4180 = vmatprep.subr.msk.bf16.mxu1 %vm485_vm0, %v412_v4  ;;  %4194 = vmatprep.subr.msk.bf16.mxu0 %vm485_vm0, %v4382_v5  ;;  %vm472_vm2 = vcmask 31744   ;;  %v4461_v31 = vld [vmem:[%s5426_s3 + $0x4] sm:$0x3]  ;;  %v567_v36 = vsel %vm485_vm0, %v412_v4, 0  ;;  %vm634_vm3 = vcmask 1045504  }
  0x14   : > { %s4389_s14 = smul.u32 200, %s5513_s22  ;;  %s5515_s8 = smov (!%p355_p7, %s352_s8), 9  ;;  %v1908_v61 = vsel %vm485_vm0, %v4382_v5, 0  ;;  %v686_v57 = vsel %vm485_vm0, %v4461_v31, 0  ;;  %vm3226_vm4 = vcmask 1040384  }
  0x15   : > { %s4207_s15 = smul.u32 20, %s346_s13  ;;  %s363_s19 = sadd.s32 2, %s4274_s21 }
  0x16   : > { %s4209_s18 = smul.u32 20, %s5515_s8  ;;  %p366_p8 = scmp.lt.s32.totalorder %s363_s19, 9 }
  0x17   : > { %s349_s16 = sadd.s32 %s4389_s14, %s4207_s15  ;;  %p376_p9 = scmp.lt.s32.totalorder %s4274_s21, 7 }
  0x18   : > { %s3419_s17 = sshll.u32 %s349_s16, 3  ;;  %s359_s29 = sadd.s32 %s4209_s18, %s4389_s14 }
  0x19   : > { %s4395_s28 = scalar_lea.vmem %s5423_s0, %s3419_s17  ;;  %s3420_s30 = sshll.u32 %s359_s29, 3 }
  0x1a   : > { %v4398_v6 = vld [vmem:[%s4395_s28] sm:$0xff]  ;;  %v4401_v7 = vld [vmem:[%s4395_s28 + $0x8] sm:$0x3]  ;;  %v4404_v8 = vld [vmem:[%s4395_s28 + $0x10] sm:$0xff]  ;;  %s4434_s9 = scalar_lea.vmem %s5424_s1, %s3420_s30  ;;  %s5517_s19 = smov (!%p366_p8, %s363_s19), 9 }
  0x1b   : > { %v4408_v9 = vld [vmem:[%s4395_s28 + $0x18] sm:$0x3]  ;;  %v4411_v10 = vld [vmem:[%s4395_s28 + $0x20] sm:$0xff]  ;;  %v4414_v11 = vld [vmem:[%s4395_s28 + $0x28] sm:$0x3]  ;;  %v434_v12 = vrot.slane %v4398_v6, 1  ;;  %v413_v5 = vpack.c.bf16 %v4404_v8, %v4398_v6 }
  0x1c   : > { %v4418_v13 = vld [vmem:[%s4395_s28 + $0x30] sm:$0xff]  ;;  %v4421_v14 = vld [vmem:[%s4395_s28 + $0x38] sm:$0x3]  ;;  %v435_v15 = vrot.slane %v4401_v7, 1  ;;  %v437_v16 = vrot.slane %v4404_v8, 1  ;;  %v438_v17 = vrot.slane %v4408_v9, 1 }
  0x1d   : > { %v440_v18 = vrot.slane %v4411_v10, 1  ;;  %v441_v19 = vrot.slane %v4414_v11, 1  ;;  %v443_v21 = vrot.slane %v4418_v13, 1  ;;  %v444_v22 = vrot.slane %v4421_v14, 1  ;;  %v4437_v23 = vld [vmem:[%s4395_s28 + $0x40] sm:$0xff]  ;;  %v4456_v30 = vld [vmem:[%s4434_s9 + $0x10] sm:$0xff] }
  0x1e   : > { %v436_v20 = vsel %vm433_vm1, %v434_v12, %v435_v15  ;;  %v4440_v24 = vsel %vm433_vm1, %v437_v16, %v438_v17  ;;  %v4446_v26 = vld [vmem:[%s4395_s28 + $0x48] sm:$0x3]  ;;  %5452 = vst [vmem:[#allocation3_spill] sm:$0xff] %v4456_v30  ;;  %v4468_v33 = vld [vmem:[%s4434_s9 + $0x18] sm:$0x3]  ;;  %v4471_v34 = vld [vmem:[%s4434_s9 + $0x20] sm:$0xff] }
  0x1f   : > { %v4443_v25 = vsel %vm433_vm1, %v440_v18, %v441_v19  ;;  %v4449_v27 = vsel %vm433_vm1, %v443_v21, %v444_v22  ;;  %v468_v28 = vpack.c.bf16 %v4440_v24, %v436_v20  ;;  %v4453_v29 = vld [vmem:[%s4434_s9 + $0x8] sm:$0x3]  ;;  %5454 = vst [vmem:[#allocation5_spill] sm:$0xff] %v4471_v34  ;;  %v4479_v37 = vld [vmem:[%s4434_s9] sm:$0xff]  ;;  %v4482_v38 = vld [vmem:[%s4434_s9 + $0x30] sm:$0xff]  ;;  %v1442_v44 = vrot.slane %v4456_v30, 1 }
  0x20   : > { %v4465_v32 = vpack.c.bf16 %v4449_v27, %v4443_v25  ;;  %v4474_v35 = vld [vmem:[%s4434_s9 + $0x28] sm:$0x3]  ;;  %5455 = vst [vmem:[#allocation6_spill] sm:$0xff] %v4482_v38  ;;  %v4485_v39 = vld [vmem:[%s4434_s9 + $0x38] sm:$0x3]  ;;  %v4490_v40 = vld [vmem:[%s4434_s9 + $0x40] sm:$0xff] }
  0x21   : > { %3701 = vmatprep.mubr.msk.bf16.mxu1 %vm472_vm2, %v468_v28  ;;  %5456 = vst [vmem:[#allocation7_spill] sm:$0xff] %v4490_v40  ;;  %v4493_v41 = vld [vmem:[%s4434_s9 + $0x48] sm:$0x3]  ;;  %v1439_v42 = vrot.slane %v4479_v37, 1  ;;  %v1440_v43 = vrot.slane %v4453_v29, 1  ;;  %v446_v45 = vrot.slane %v4437_v23, 1 }
  0x22   : > { %5453 = vst [vmem:[#allocation4_spill] sm:$0xff] %v4465_v32  ;;  %3702 = vmatmul.mubr.msk.bf16.vlgmr.msra.gmra.mrb[0].mxu1 %vm472_vm2, %v4465_v32  ;;  %v1443_v46 = vrot.slane %v4468_v33, 1  ;;  %v1445_v47 = vrot.slane %v4471_v34, 1  ;;  %v1446_v48 = vrot.slane %v4474_v35, 1  ;;  %v447_v49 = vrot.slane %v4446_v26, 1  ;;  %v4521_v58 = vld [vmem:[%s4395_s28 + $0x50] sm:$0xff] }
  0x23   : > { %3710 = vmatpush3.bf16.msra.mxu1 %v567_v36  ;;  %v4504_v50 = vsel %vm433_vm1, %v1439_v42, %v1440_v43  ;;  %v1448_v51 = vrot.slane %v4482_v38, 1  ;;  %v1449_v52 = vrot.slane %v4485_v39, 1  ;;  %v1451_v54 = vrot.slane %v4490_v40, 1  ;;  %v4532_v62 = vld [vmem:[%s4395_s28 + $0x58] sm:$0x3]  ;;  %v4535_v63 = vld [vmem:[%s4395_s28 + $0x60] sm:$0xff] }
  0x24   : > { %5457 = vst [vmem:[#allocation8_spill] sm:$0xff] %v4504_v50  ;;  %4181 = vmatprep.subr.msk.bf16.mxu1 %vm485_vm0, %v4461_v31  ;;  %v4511_v53 = vsel %vm433_vm1, %v1442_v44, %v1443_v46  ;;  %v1452_v55 = vrot.slane %v4493_v41, 1  ;;  %v4516_v56 = vsel %vm433_vm1, %v1445_v47, %v1446_v48  ;;  %v4538_v0 = vld [vmem:[%s4395_s28 + $0x68] sm:$0x3]  ;;  %v4541_v1 = vsel %vm433_vm1, %v446_v45, %v447_v49  ;;  %v4546_v12 = vld [vmem:[%s4395_s28 + $0x70] sm:$0xff]  ;;  %v4586_v49 = vld [vmem:[%s4434_s9 + $0x60] sm:$0xff] }
  0x25   : > { %5458 = vst [vmem:[#allocation9_spill] sm:$0xff] %v4511_v53  ;;  %v4524_v59 = vsel %vm433_vm1, %v1448_v51, %v1449_v52  ;;  %v1569_v2 = vrot.slane %v4468_v33, 2  ;;  %v1572_v4 = vrot.slane %v4474_v35, 2  ;;  %v4549_v15 = vld [vmem:[%s4395_s28 + $0x78] sm:$0x3]  ;;  %v1574_v16 = vrot.slane %v4482_v38, 2 }
  0x26   : > { %v4527_v60 = vsel %vm433_vm1, %v1451_v54, %v1452_v55  ;;  %v1575_v17 = vrot.slane %v4485_v39, 2  ;;  %v1793_v19 = vpack.c.bf16 %v4516_v56, %v4511_v53  ;;  %v449_v21 = vrot.slane %v4521_v58, 1  ;;  %v3501_v33 = vld [vmem:[%s5426_s3 + $0x1e] sm:$0x3]  ;;  %v4568_v35 = vld [vmem:[%s4434_s9 + $0x50] sm:$0xff]  ;;  %5460 = vst [vmem:[#allocation11_spill] sm:$0xff] %v4586_v49 }
  0x27   : > { %v1794_v20 = vpack.c.bf16 %v4527_v60, %v4524_v59  ;;  %v450_v22 = vrot.slane %v4532_v62, 1  ;;  %v452_v28 = vrot.slane %v4535_v63, 1  ;;  %5459 = vst [vmem:[#allocation10_spill] sm:$0xff] %v4568_v35  ;;  %v453_v36 = vrot.slane %v4538_v0, 1  ;;  %v4576_v44 = vld [vmem:[%s4434_s9 + $0x58] sm:$0x3] }
  0x28   : > { %3831 = vmatprep.mubr.msk.bf16.mxu0 %vm472_vm2, %v1793_v19  ;;  %v455_v39 = vrot.slane %v4546_v12, 1  ;;  %v456_v42 = vrot.slane %v4549_v15, 1  ;;  %v1568_v43 = vrot.slane %v4456_v30, 2  ;;  %v1578_v45 = vrot.slane %v4493_v41, 2  ;;  %v4602_v55 = vld [vmem:[%s4434_s9 + $0x68] sm:$0x3] }
  0x29   : > { %3832 = vmatmul.mubr.msk.bf16.vlgmr.msra.gmra.mrb[0].mxu0 %vm472_vm2, %v1794_v20  ;;  %v4581_v46 = vsel %vm433_vm1, %v449_v21, %v450_v22  ;;  %v1571_v47 = vrot.slane %v4471_v34, 2  ;;  %v1577_v48 = vrot.slane %v4490_v40, 2  ;;  %v4593_v52 = vsel %vm433_vm1, %v452_v28, %v453_v36  ;;  %s4210_s20 = smul.u32 20, %s5517_s19  ;;  %s5519_s21 = smov (!%p376_p9, %s4274_s21), 7 }
  0x2a   : > { %3840 = vmatpush3.bf16.msra.mxu0 %v1908_v61  ;;  %v4590_v51 = vpack.c.bf16 %v4581_v46, %v4541_v1  ;;  %v4596_v41 = vsel %vm433_vm1, %v455_v39, %v456_v42  ;;  %v4599_v54 = vsel %vm634_vm3, %v1568_v43, %v1569_v2  ;;  %v1580_v20 = vrot.slane %v4568_v35, 2  ;;  %v4631_v39 = vld [vmem:[%s4434_s9 + $0x70] sm:$0xff]  ;;  %v1324_v42 = vld [vmem:[%s4434_s9 + $0x78] sm:$0x3]  ;;  %v4635_v43 = vld [vmem:[%s4434_s9 + $0x80] sm:$0xff]  ;;  %s3422_s16 = sshll.u32 %s5519_s21, 3 }
  0x2b   : > { %v4606_v61 = vpack.c.bf16 %v4596_v41, %v4593_v52  ;;  %v4609_v19 = vsel %vm634_vm3, %v1571_v47, %v1572_v4  ;;  %4195 = vmatprep.subr.msk.bf16.mxu0 %vm485_vm0, %v3501_v33  ;;  %v1581_v21 = vrot.slane %v4576_v44, 2  ;;  %v1583_v22 = vrot.slane %v4586_v49, 2  ;;  %v1326_v47 = vld [vmem:[%s4434_s9 + $0x88] sm:$0x3]  ;;  %s370_s10 = sadd.s32 %s4210_s20, %s4389_s14  ;;  %s3423_s17 = sshll.u32 %s5513_s22, 6 }
  0x2c   : > { %5461 = vst [vmem:[#allocation12_spill] sm:$0xff] %v4590_v51  ;;  %3705 = vmatprep.mubr.msk.bf16.mxu1 %vm472_vm2, %v4590_v51  ;;  %v1891_v2 = vpack.c.bf16 %v4609_v19, %v4599_v54  ;;  %v1584_v4 = vrot.slane %v4602_v55, 2  ;;  %v4624_v28 = vsel %vm634_vm3, %v1574_v16, %v1575_v17  ;;  %v4627_v36 = vsel %vm634_vm3, %v1577_v48, %v1578_v45  ;;  %s3421_s11 = sshll.u32 %s370_s10, 3  ;;  %s380_s18 = sadd.s32 %s3423_s17, %s3422_s16 }
  0x2d   : > { %5462 = vst [vmem:[#allocation13_spill] sm:$0xff] %v4606_v61  ;;  %3706 = vmatmul.mubr.msk.bf16.gmra.mrb[4].mxu1 %vm472_vm2, %v4606_v61  ;;  %v1990_v18 = vsel %vm485_vm0, %v3501_v33, 0  ;;  %v635_v17 = vrot.slane %v4398_v6, 2  ;;  %v636_v45 = vrot.slane %v4401_v7, 2  ;;  %v1892_v33 = vpack.c.bf16 %v4627_v36, %v4624_v28  ;;  %v3506_v7 = vld [vmem:[%s5426_s3 + $0x20] sm:$0x3]  ;;  %s4829_s13 = scalar_lea.vmem %s5425_s2, %s3421_s11 }
  0x2e   : > { %3841 = vmatprep.mubr.msk.bf16.mxu0 %vm472_vm2, %v1891_v2  ;;  %3711 = vmatprep.mubr.msk.bf16.mxu1 %vm472_vm2, %v413_v5  ;;  %v4642_v2 = vsel %vm634_vm3, %v1580_v20, %v1581_v21  ;;  %v4645_v16 = vsel %vm634_vm3, %v1583_v22, %v1584_v4  ;;  %v4649_v5 = vpack.c.bf16 %v4418_v13, %v4411_v10  ;;  %v1586_v48 = vrot.slane %v4631_v39, 2  ;;  %s3424_s19 = sshll.u32 %s380_s18, 3  ;;  %s3425_s10 = sshll.u32 %s5513_s22, 3 }
  0x2f   : > { %v1587_v31 = vrot.slane %v1324_v42, 2  ;;  %v1885_v20 = vrot.slane %v4635_v43, 2  ;;  %v1886_v21 = vrot.slane %v1326_v47, 2  ;;  %v639_v22 = vrot.slane %v4408_v9, 2  ;;  %v3441_v9 = vld [vmem:[%s5426_s3 + $0x6] sm:$0x3]  ;;  %s5392_s8 = scalar_lea.vmem %s5428_s5, %s3424_s19  ;;  %s388_s11 = sadd.s32 %s3425_s10, %s5519_s21 }
  0x30   : > { %v1893_v4 = vpack.c.bf16 %v4645_v16, %v4642_v2  ;;  %v4662_v3 = vpack.c.bf16 %v4521_v58, %v4437_v23  ;;  %v638_v6 = vrot.slane %v4404_v8, 2  ;;  %v647_v61 = vrot.slane %v4437_v23, 2  ;;  %s3426_s14 = sshll.u32 %s388_s11, 3 }
  0x31   : > { %v4675_v50 = vsel %vm634_vm3, %v1586_v48, %v1587_v31  ;;  %v4678_v53 = vsel %vm634_vm3, %v1885_v20, %v1886_v21  ;;  %v1787_v48 = vrot.slane %v4635_v43, 1  ;;  %v641_v31 = vrot.slane %v4411_v10, 2 }
  0x32   : > { %5463 = vst [vmem:[#allocation14_spill] sm:$0xff] %v4662_v3  ;;  %v4685_v30 = vsel %vm634_vm3, %v638_v6, %v639_v22  ;;  %v642_v20 = vrot.slane %v4414_v11, 2  ;;  %v645_v21 = vrot.slane %v4421_v14, 2  ;;  %v1894_v22 = vpack.c.bf16 %v4678_v53, %v4675_v50 }
  0x33   : > { %v4707_v11 = vpack.c.bf16 %v4482_v38, %v4471_v34  ;;  %v648_v51 = vrot.slane %v4446_v26, 2  ;;  %v650_v38 = vrot.slane %v4521_v58, 2  ;;  %v651_v34 = vrot.slane %v4532_v62, 2 }
  0x34   : > { %v4731_v26 = vsel %vm634_vm3, %v641_v31, %v642_v20  ;;  %v1457_v32 = vrot.slane %v4586_v49, 1 }
  0x35   : > { %3842 = vmatmul.mubr.msk.bf16.vlgmr.msra.gmra.mrb[0].mxu0 %vm472_vm2, %v1892_v33  ;;  %3712 = vmatmul.mubr.msk.bf16.vlgmr.msra.gmra.mrb[0].mxu1 %vm472_vm2, %v4649_v5  ;;  %v637_v33 = vsel %vm634_vm3, %v635_v17, %v636_v45  ;;  %v1788_v17 = vrot.slane %v1326_v47, 1  ;;  %v644_v45 = vrot.slane %v4418_v13, 2  ;;  %v4748_v31 = vsel %vm634_vm3, %v650_v38, %v651_v34 }
  0x36   : > { %3850 = vmatpush3.bf16.msra.mxu0 %v1990_v18  ;;  %3720 = vmatpush3.bf16.msra.mxu1 %v686_v57  ;;  %v1460_v57 = vrot.slane %v4631_v39, 1  ;;  %v1461_v18 = vrot.slane %v1324_v42, 1  ;;  %v4699_v42 = vpack.c.bf16 %v4546_v12, %v4535_v63  ;;  %v669_v47 = vpack.c.bf16 %v4685_v30, %v637_v33 }
  0x37   : > { %3845 = vmatprep.mubr.msk.bf16.mxu0 %vm472_vm2, %v1893_v4  ;;  %3715 = vmatprep.mubr.msk.bf16.mxu1 %vm472_vm2, %v4662_v3  ;;  %v4702_v4 = vld [vmem:[%s4395_s28 + $0x88] sm:$0x3]  ;;  %v4714_v14 = vsel %vm433_vm1, %v1787_v48, %v1788_v17  ;;  %v4721_v3 = vld [vmem:[%s4395_s28 + $0x80] sm:$0xff]  ;;  %v4745_v17 = vsel %vm634_vm3, %v647_v61, %v648_v51  ;;  %v656_v51 = vrot.slane %v4546_v12, 2  ;;  %v657_v61 = vrot.slane %v4549_v15, 2 }
  0x38   : > { %4196 = vmatprep.subr.msk.bf16.mxu0 %vm485_vm0, %v3506_v7  ;;  %4182 = vmatprep.subr.msk.bf16.mxu1 %vm485_vm0, %v3441_v9  ;;  %v4711_v6 = vsel %vm433_vm1, %v1460_v57, %v1461_v18  ;;  %5465 = vst [vmem:[#allocation16_spill] sm:$0xff] %v4714_v14  ;;  %v857_v33 = vrot.slane %v4721_v3, 1  ;;  %v858_v57 = vrot.slane %v4702_v4, 1  ;;  %v4734_v18 = vsel %vm634_vm3, %v644_v45, %v645_v21  ;;  %v3446_v15 = vld [vmem:[%s5426_s3 + $0x8] sm:$0x3] }
  0x39   : > { %5464 = vst [vmem:[#allocation15_spill] sm:$0xff] %v4711_v6  ;;  %v4752_v20 = vpack.c.bf16 %v4734_v18, %v4731_v26  ;;  %v4756_v45 = vpack.c.bf16 %v4568_v35, %v4490_v40  ;;  %v653_v21 = vrot.slane %v4535_v63, 2  ;;  %v2078_v34 = vsel %vm485_vm0, %v3506_v7, 0  ;;  %v4783_v7 = vld [vmem:[%s4434_s9 + $0x90] sm:$0xff] }
  0x3a   : > { %v4740_v62 = vsel %vm433_vm1, %v857_v33, %v858_v57  ;;  %v780_v38 = vsel %vm485_vm0, %v3441_v9, 0  ;;  %v4770_v33 = vpack.c.bf16 %v4748_v31, %v4745_v17  ;;  %v4789_v57 = vsel %vm634_vm3, %v656_v51, %v657_v61 }
  0x3b   : > { %5466 = vst [vmem:[#allocation17_spill] sm:$0xff] %v4756_v45  ;;  %v1455_v51 = vrot.slane %v4576_v44, 1  ;;  %v4808_v61 = vpack.c.bf16 %v4524_v59, %v4516_v56  ;;  %v1458_v48 = vrot.slane %v4602_v55, 1  ;;  %v4824_v56 = vld [vmem:[%s4434_s9 + $0x98] sm:$0x3]  ;;  %v2067_v44 = vrot.slane %v4783_v7, 1 }
  0x3c   : > { %v764_v55 = vpack.c.bf16 %v4437_v23, %v4418_v13  ;;  %v4857_v13 = vld [vmem:[%s4829_s13 + $0x80] sm:$0xff] }
  0x3d   : > { %3846 = vmatmul.mubr.msk.bf16.gmra.mrb[4].mxu0 %vm472_vm2, %v1894_v22  ;;  %3716 = vmatmul.mubr.msk.bf16.gmra.mrb[4].mxu1 %vm472_vm2, %v4699_v42  ;;  %v654_v22 = vrot.slane %v4538_v0, 2  ;;  %v3511_v0 = vld [vmem:[%s5426_s3 + $0x22] sm:$0x3]  ;;  %5468 = vst [vmem:[#allocation19_spill] sm:$0xff] %v4808_v61 }
  0x3e   : > { %3851 = vmatprep.mubr.msk.bf16.mxu0 %vm472_vm2, %v4707_v11  ;;  %3721 = vmatprep.mubr.msk.bf16.mxu1 %vm472_vm2, %v669_v47  ;;  %v4766_v47 = vpack.c.bf16 %v4631_v39, %v4586_v49 }
  0x3f   : > { %v4786_v9 = vsel %vm634_vm3, %v653_v21, %v654_v22  ;;  %v1454_v22 = vrot.slane %v4568_v35, 1 }
  0x40   : > { %5467 = vst [vmem:[#allocation18_spill] sm:$0xff] %v4766_v47  ;;  %v4802_v21 = vpack.c.bf16 %v4789_v57, %v4786_v9 }
  0x41   : > { %v4818_v40 = vsel %vm433_vm1, %v1454_v22, %v1455_v51  ;;  %v4844_v22 = vld [vmem:[%s4829_s13 + $0x70] sm:$0xff]  ;;  %v2256_v51 = vld [vmem:[%s4829_s13 + $0x88] sm:$0x3] }
  0x42   : > { %5469 = vst [vmem:[#allocation20_spill] sm:$0xff] %v4818_v40  ;;  %v4837_v59 = vpack.c.bf16 %v4818_v40, %v4527_v60  ;;  %v765_v40 = vpack.c.bf16 %v4535_v63, %v4521_v58  ;;  %v2516_v23 = vrot.slane %v4844_v22, 2  ;;  %v3516_v58 = vld [vmem:[%s5426_s3 + $0x24] sm:$0x3]  ;;  %v3451_v63 = vld [vmem:[%s5426_s3 + $0xa] sm:$0x3] }
  0x45   : > { %3852 = vmatmul.mubr.msk.bf16.vlgmr.msra.gmra.mrb[0].mxu0 %vm472_vm2, %v4756_v45  ;;  %3722 = vmatmul.mubr.msk.bf16.vlgmr.msra.gmra.mrb[0].mxu1 %vm472_vm2, %v4752_v20  ;;  %v1566_v45 = vrot.slane %v4453_v29, 2 }
  0x46   : > { %3860 = vmatpush3.bf16.msra.mxu0 %v2078_v34  ;;  %3730 = vmatpush3.bf16.msra.mxu1 %v780_v38  ;;  %v1985_v34 = vpack.c.bf16 %v4783_v7, %v4635_v43  ;;  %v763_v38 = vpack.c.bf16 %v4411_v10, %v4404_v8  ;;  %v2254_v8 = vld [vmem:[%s4829_s13 + $0x78] sm:$0x3]  ;;  %v4833_v10 = vsel %vm433_vm1, %v1457_v32, %v1458_v48  ;;  %v2164_v32 = vsel %vm485_vm0, %v3511_v0, 0 }
  0x47   : > { %3855 = vmatprep.mubr.msk.bf16.mxu0 %vm472_vm2, %v4766_v47  ;;  %3725 = vmatprep.mubr.msk.bf16.mxu1 %vm472_vm2, %v4770_v33  ;;  %v2391_v49 = vrot.slane %v2254_v8, 1  ;;  %v880_v48 = vsel %vm485_vm0, %v3446_v15, 0  ;;  %v4852_v60 = vpack.c.bf16 %v4711_v6, %v4833_v10  ;;  %v2517_v35 = vrot.slane %v2254_v8, 2 }
  0x48   : > { %4197 = vmatprep.subr.msk.bf16.mxu0 %vm485_vm0, %v3511_v0  ;;  %4183 = vmatprep.subr.msk.bf16.mxu1 %vm485_vm0, %v3446_v15  ;;  %v2718_v47 = vrot.slane %v2256_v51, 1  ;;  %v2815_v8 = vrot.slane %v4857_v13, 2 }
  0x4d   : > { %3856 = vmatmul.mubr.msk.bf16.gmra.mrb[4].mxu0 %vm472_vm2, %v1985_v34  ;;  %3726 = vmatmul.mubr.msk.bf16.gmra.mrb[4].mxu1 %vm472_vm2, %v4802_v21  ;;  %v2068_v34 = vrot.slane %v4824_v56, 1 }
  0x4e   : > { %3861 = vmatprep.mubr.msk.bf16.mxu0 %vm472_vm2, %v4808_v61  ;;  %3731 = vmatprep.mubr.msk.bf16.mxu1 %vm472_vm2, %v763_v38  ;;  %v2390_v38 = vrot.slane %v4844_v22, 1  ;;  %v2717_v61 = vrot.slane %v4857_v13, 1 }
  0x4f   : > { %v2069_v0 = vsel %vm433_vm1, %v2067_v44, %v2068_v34  ;;  %v1565_v34 = vrot.slane %v4479_v37, 2 }
  0x50   : > { %v4873_v29 = vsel %vm433_vm1, %v2390_v38, %v2391_v49  ;;  %v4876_v15 = vsel %vm433_vm1, %v2717_v61, %v2718_v47  ;;  %v4891_v49 = vsel %vm634_vm3, %v2516_v23, %v2517_v35  ;;  %v2073_v61 = vpack.c.bf16 %v2069_v0, %v4714_v14 }
  0x51   : > { %v863_v35 = vpack.c.bf16 %v4443_v25, %v4440_v24  ;;  %v4910_v23 = vpack.c.bf16 %v4624_v28, %v4609_v19  ;;  %v4923_v24 = vpack.c.bf16 %v4642_v2, %v4627_v36  ;;  %v2153_v25 = vrot.slane %v4783_v7, 2  ;;  %v3456_v36 = vld [vmem:[%s5426_s3 + $0xc] sm:$0x3] }
  0x52   : > { %v2154_v19 = vrot.slane %v4824_v56, 2  ;;  %v2278_v28 = vsel %vm485_vm0, %v3516_v58, 0  ;;  %v4931_v0 = vpack.c.bf16 %v4675_v50, %v4645_v16  ;;  %v2258_v16 = vld [vmem:[%s4829_s13 + $0x98] sm:$0x3] }
  0x53   : > { %v2998_v7 = vrot.slane %v2258_v16, 1 }
  0x54   : > { %v2155_v50 = vsel %vm634_vm3, %v2153_v25, %v2154_v19  ;;  %v962_v25 = vpack.c.bf16 %v4745_v17, %v4734_v18  ;;  %v956_v18 = vrot.slane %v4702_v4, 2  ;;  %v963_v17 = vpack.c.bf16 %v4786_v9, %v4748_v31  ;;  %v3461_v4 = vld [vmem:[%s5426_s3 + $0xe] sm:$0x3]  ;;  %v5025_v31 = vld [vmem:[%s4829_s13 + $0x60] sm:$0xff] }
  0x55   : > { %3862 = vmatmul.mubr.msk.bf16.vlgmr.msra.gmra.mrb[0].mxu0 %vm472_vm2, %v4837_v59  ;;  %3732 = vmatmul.mubr.msk.bf16.vlgmr.msra.gmra.mrb[0].mxu1 %vm472_vm2, %v764_v55  ;;  %v2816_v55 = vrot.slane %v2256_v51, 2  ;;  %v766_v51 = vpack.c.bf16 %v4721_v3, %v4546_v12  ;;  %v864_v12 = vpack.c.bf16 %v4541_v1, %v4449_v27  ;;  %v865_v27 = vpack.c.bf16 %v4593_v52, %v4581_v46  ;;  %v3521_v1 = vld [vmem:[%s5426_s3 + $0x26] sm:$0x3]  ;;  %v4953_v52 = vld [vmem:[%s4829_s13 + $0x10] sm:$0xff] }
  0x56   : > { %3870 = vmatpush3.bf16.msra.mxu0 %v2164_v32  ;;  %3740 = vmatpush3.bf16.msra.mxu1 %v880_v48  ;;  %v4886_v32 = vld [vmem:[%s4829_s13 + $0x90] sm:$0xff]  ;;  %v4904_v48 = vsel %vm634_vm3, %v1565_v34, %v1566_v45  ;;  %v978_v45 = vsel %vm485_vm0, %v3451_v63, 0  ;;  %v4950_v46 = vld [vmem:[%s4829_s13] sm:$0xff]  ;;  %v2159_v56 = vpack.c.bf16 %v2155_v50, %v4678_v53 }
  0x57   : > { %3865 = vmatprep.mubr.msk.bf16.mxu0 %vm472_vm2, %v4852_v60  ;;  %3735 = vmatprep.mubr.msk.bf16.mxu1 %vm472_vm2, %v765_v40  ;;  %v4894_v47 = vsel %vm634_vm3, %v2815_v8, %v2816_v55  ;;  %v2997_v2 = vrot.slane %v4886_v32, 1 }
  0x58   : > { %4198 = vmatprep.subr.msk.bf16.mxu0 %vm485_vm0, %v3516_v58  ;;  %4184 = vmatprep.subr.msk.bf16.mxu1 %vm485_vm0, %v3451_v63  ;;  %v2261_v58 = vpack.c.bf16 %v4953_v52, %v4950_v46  ;;  %v961_v63 = vpack.c.bf16 %v4731_v26, %v4685_v30  ;;  %v4980_v30 = vld [vmem:[%s4829_s13 + $0x30] sm:$0xff]  ;;  %v4984_v26 = vld [vmem:[%s4829_s13 + $0x40] sm:$0xff] }
  0x59   : > { %v4964_v55 = vsel %vm433_vm1, %v2997_v2, %v2998_v7  ;;  %v955_v2 = vrot.slane %v4721_v3, 2  ;;  %v2381_v40 = vrot.slane %v4984_v26, 1 }
  0x5b   : > { %v5028_v9 = vsel %vm634_vm3, %v955_v2, %v956_v18  ;;  %v5048_v2 = vpack.c.bf16 %v4844_v22, %v5025_v31 }
  0x5c   : > { %v964_v18 = vpack.c.bf16 %v5028_v9, %v4789_v57 }
  0x5d   : > { %3866 = vmatmul.mubr.msk.bf16.gmra.mrb[4].mxu0 %vm472_vm2, %v2073_v61  ;;  %3736 = vmatmul.mubr.msk.bf16.gmra.mrb[4].mxu1 %vm472_vm2, %v766_v51  ;;  %v5470_v61 = vpack.c.bf16 %v4740_v62, %v4596_v41  ;;  %v4977_v51 = vld [vmem:[%s4829_s13 + $0x20] sm:$0xff]  ;;  %v4993_v41 = vld [vmem:[%s4829_s13 + $0x18] sm:$0x3] }
  0x5e   : > { %3871 = vmatprep.mubr.msk.bf16.mxu0 %vm472_vm2, %v4910_v23  ;;  %3741 = vmatprep.mubr.msk.bf16.mxu1 %vm472_vm2, %v863_v35  ;;  %v4987_v35 = vld [vmem:[%s4829_s13 + $0x50] sm:$0xff]  ;;  %v4999_v19 = vpack.c.bf16 %v4980_v30, %v4977_v51 }
  0x5f   : > { %v5006_v50 = vpack.c.bf16 %v4987_v35, %v4984_v26  ;;  %v2384_v38 = vrot.slane %v4987_v35, 1  ;;  %v2510_v6 = vrot.slane %v4987_v35, 2 }
  0x65   : > { %3872 = vmatmul.mubr.msk.bf16.vlgmr.msra.gmra.mrb[0].mxu0 %vm472_vm2, %v4923_v24  ;;  %3742 = vmatmul.mubr.msk.bf16.vlgmr.msra.gmra.mrb[0].mxu1 %vm472_vm2, %v864_v12  ;;  %v4990_v12 = vld [vmem:[%s4829_s13 + $0x8] sm:$0x3] }
  0x66   : > { %3880 = vmatpush3.bf16.msra.mxu0 %v2278_v28  ;;  %3750 = vmatpush3.bf16.msra.mxu1 %v978_v45  ;;  %v2420_v28 = vsel %vm485_vm0, %v3521_v1, 0  ;;  %v1060_v45 = vsel %vm485_vm0, %v3456_v36, 0  ;;  %v2370_v7 = vrot.slane %v4990_v12, 1 }
  0x67   : > { %3875 = vmatprep.mubr.msk.bf16.mxu0 %vm472_vm2, %v4931_v0  ;;  %3745 = vmatprep.mubr.msk.bf16.mxu1 %vm472_vm2, %v865_v27  ;;  %v2369_v27 = vrot.slane %v4950_v46, 1 }
  0x68   : > { %4199 = vmatprep.subr.msk.bf16.mxu0 %vm485_vm0, %v3521_v1  ;;  %4185 = vmatprep.subr.msk.bf16.mxu1 %vm485_vm0, %v3456_v36  ;;  %v2372_v1 = vrot.slane %v4953_v52, 1  ;;  %v2373_v36 = vrot.slane %v4993_v41, 1 }
  0x6d   : > { %3876 = vmatmul.mubr.msk.bf16.gmra.mrb[4].mxu0 %vm472_vm2, %v2159_v56  ;;  %3746 = vmatmul.mubr.msk.bf16.gmra.mrb[4].mxu1 %vm472_vm2, %v5470_v61  ;;  %v3526_v56 = vld [vmem:[%s5426_s3 + $0x28] sm:$0x3]  ;;  %v2371_v61 = vsel %vm433_vm1, %v2369_v27, %v2370_v7 }
  0x6e   : > { %3881 = vmatprep.mubr.msk.bf16.mxu0 %vm472_vm2, %v2261_v58  ;;  %3751 = vmatprep.mubr.msk.bf16.mxu1 %vm472_vm2, %v961_v63  ;;  %v5031_v58 = vld [vmem:[%s4829_s13 + $0x28] sm:$0x3]  ;;  %v3083_v63 = vrot.slane %v4886_v32, 2 }
  0x6f   : > { %v2376_v27 = vrot.slane %v5031_v58, 1  ;;  %v5055_v7 = vld [vmem:[%s4829_s13 + $0x48] sm:$0x3] }
  0x70   : > { %v2382_v8 = vrot.slane %v5055_v7, 1 }
  0x72   : > { %v5088_v57 = vsel %vm433_vm1, %v2381_v40, %v2382_v8  ;;  %v2499_v8 = vrot.slane %v4993_v41, 2  ;;  %v5123_v41 = vld [vmem:[%s4395_s28 + $0x90] sm:$0xff] }
  0x75   : > { %3882 = vmatmul.mubr.msk.bf16.vlgmr.msra.gmra.mrb[0].mxu0 %vm472_vm2, %v4999_v19  ;;  %3752 = vmatmul.mubr.msk.bf16.vlgmr.msra.gmra.mrb[0].mxu1 %vm472_vm2, %v962_v25  ;;  %v5039_v25 = vsel %vm433_vm1, %v2372_v1, %v2373_v36  ;;  %v5058_v1 = vld [vmem:[%s4829_s13 + $0x58] sm:$0x3] }
  0x76   : > { %3890 = vmatpush3.bf16.msra.mxu0 %v2420_v28  ;;  %3760 = vmatpush3.bf16.msra.mxu1 %v1060_v45  ;;  %v5042_v28 = vld [vmem:[%s4829_s13 + $0x38] sm:$0x3]  ;;  %v3084_v45 = vrot.slane %v2258_v16, 2  ;;  %v2403_v36 = vpack.c.bf16 %v5039_v25, %v2371_v61  ;;  %v2378_v16 = vrot.slane %v4980_v30, 1  ;;  %v2385_v44 = vrot.slane %v5058_v1, 1 }
  0x77   : > { %3885 = vmatprep.mubr.msk.bf16.mxu0 %vm472_vm2, %v5006_v50  ;;  %3755 = vmatprep.mubr.msk.bf16.mxu1 %vm472_vm2, %v963_v17  ;;  %v2375_v17 = vrot.slane %v4977_v51, 1  ;;  %v2379_v53 = vrot.slane %v5042_v28, 1  ;;  %v2511_v14 = vrot.slane %v5058_v1, 2 }
  0x78   : > { %4200 = vmatprep.subr.msk.bf16.mxu0 %vm485_vm0, %v3526_v56  ;;  %4186 = vmatprep.subr.msk.bf16.mxu1 %vm485_vm0, %v3461_v4  ;;  %v5064_v34 = vsel %vm634_vm3, %v3083_v63, %v3084_v45  ;;  %v5085_v45 = vld [vmem:[%s4829_s13 + $0x68] sm:$0x3] }
  0x79   : > { %5471 = vst [vmem:[#allocation21_spill] sm:$0xff] %v5064_v34  ;;  %v5077_v63 = vsel %vm433_vm1, %v2375_v17, %v2376_v27  ;;  %v5080_v61 = vsel %vm433_vm1, %v2378_v16, %v2379_v53  ;;  %v5091_v34 = vsel %vm433_vm1, %v2384_v38, %v2385_v44  ;;  %v2546_v53 = vsel %vm485_vm0, %v3526_v56, 0  ;;  %v3531_v56 = vld [vmem:[%s5426_s3 + $0x2a] sm:$0x3] }
  0x7a   : > { %v5096_v17 = vpack.c.bf16 %v5080_v61, %v5077_v63  ;;  %v1148_v27 = vsel %vm485_vm0, %v3461_v4, 0  ;;  %v5104_v40 = vpack.c.bf16 %v5091_v34, %v5088_v57  ;;  %v2496_v44 = vrot.slane %v4990_v12, 2  ;;  %v3466_v4 = vld [vmem:[%s5426_s3 + $0x10] sm:$0x3] }
  0x7b   : > { %v2498_v38 = vrot.slane %v4953_v52, 2  ;;  %v5167_v1 = vsel %vm634_vm3, %v2510_v6, %v2511_v14  ;;  %v5474_v6 = vld [vmem:[#allocation12_spill] sm:$0xff]  ;;  %v3536_v14 = vld [vmem:[%s5426_s3 + $0x2c] sm:$0x3] }
  0x7d   : > { %3886 = vmatmul.mubr.msk.bf16.gmra.mrb[4].mxu0 %vm472_vm2, %v5048_v2  ;;  %3756 = vmatmul.mubr.msk.bf16.gmra.mrb[4].mxu1 %vm472_vm2, %v964_v18  ;;  %v2495_v18 = vrot.slane %v4950_v46, 2  ;;  %v5472_v46 = vld [vmem:[#allocation14_spill] sm:$0xff] }
  0x7e   : > { %3891 = vmatprep.mubr.msk.bf16.mxu0 %vm472_vm2, %v2403_v36  ;;  %3761 = vmatprep.mubr.msk.bf16.mxu1 %vm472_vm2, %v4649_v5  ;;  %v2387_v5 = vrot.slane %v5025_v31, 1  ;;  %v2388_v36 = vrot.slane %v5085_v45, 1 }
  0x7f   : > { %v2497_v16 = vsel %vm634_vm3, %v2495_v18, %v2496_v44  ;;  %v2502_v18 = vrot.slane %v5031_v58, 2  ;;  %v2505_v44 = vrot.slane %v5042_v28, 2  ;;  %v5473_v28 = vld [vmem:[#allocation4_spill] sm:$0xff] }
  0x80   : > { %v5120_v12 = vsel %vm433_vm1, %v2387_v5, %v2388_v36  ;;  %v2501_v5 = vrot.slane %v4977_v51, 2  ;;  %v2504_v36 = vrot.slane %v4980_v30, 2 }
  0x82   : > { %v5158_v58 = vsel %vm634_vm3, %v2504_v36, %v2505_v44  ;;  %v2640_v44 = vsel %vm485_vm0, %v3531_v56, 0 }
  0x85   : > { %3892 = vmatmul.mubr.msk.bf16.vlgmr.msra.gmra.mrb[0].mxu0 %vm472_vm2, %v5096_v17  ;;  %3762 = vmatmul.mubr.msk.bf16.vlgmr.msra.gmra.mrb[0].mxu1 %vm472_vm2, %v5472_v46  ;;  %v5131_v46 = vsel %vm634_vm3, %v2498_v38, %v2499_v8  ;;  %v2507_v38 = vrot.slane %v4984_v26, 2  ;;  %v2508_v8 = vrot.slane %v5055_v7, 2  ;;  %v411_v7 = vld [vmem:[%s4395_s28 + $0x98] sm:$0x3]  ;;  %s390_s28 = scalar_lea.vmem %s5429_s6, %s3426_s14 }
  0x86   : > { %3900 = vmatpush3.bf16.msra.mxu0 %v2546_v53  ;;  %3770 = vmatpush3.bf16.msra.mxu1 %v1148_v27  ;;  %v5137_v53 = vpack.c.bf16 %v4873_v29, %v5120_v12  ;;  %v1055_v27 = vpack.c.bf16 %v5123_v41, %v4721_v3  ;;  %v5155_v3 = vsel %vm634_vm3, %v2501_v5, %v2502_v18  ;;  %v1137_v5 = vrot.slane %v5123_v41, 1 }
  0x87   : > { %3895 = vmatprep.mubr.msk.bf16.mxu0 %vm472_vm2, %v5104_v40  ;;  %3765 = vmatprep.mubr.msk.bf16.mxu1 %vm472_vm2, %v4699_v42  ;;  %v2529_v42 = vpack.c.bf16 %v5131_v46, %v2497_v16  ;;  %v5164_v16 = vsel %vm634_vm3, %v2507_v38, %v2508_v8  ;;  %v2514_v18 = vrot.slane %v5085_v45, 2  ;;  %v1138_v36 = vrot.slane %v411_v7, 1  ;;  %v3471_v45 = vld [vmem:[%s5426_s3 + $0x12] sm:$0x3]  ;;  %v5475_v8 = vld [vmem:[#allocation13_spill] sm:$0xff] }
  0x88   : > { %4201 = vmatprep.subr.msk.bf16.mxu0 %vm485_vm0, %v3531_v56  ;;  %4187 = vmatprep.subr.msk.bf16.mxu1 %vm485_vm0, %v3466_v4  ;;  %v5180_v38 = vpack.c.bf16 %v5167_v1, %v5164_v16 }
  0x8d   : > { %3896 = vmatmul.mubr.msk.bf16.gmra.mrb[4].mxu0 %vm472_vm2, %v5137_v53  ;;  %3766 = vmatmul.mubr.msk.bf16.gmra.mrb[4].mxu1 %vm472_vm2, %v1055_v27  ;;  %v5171_v27 = vpack.c.bf16 %v5158_v58, %v5155_v3 }
  0x8e   : > { %3901 = vmatprep.mubr.msk.bf16.mxu0 %vm472_vm2, %v2529_v42  ;;  %3771 = vmatprep.mubr.msk.bf16.mxu1 %vm472_vm2, %v5473_v28  ;;  %v2513_v42 = vrot.slane %v5025_v31, 2  ;;  %v1234_v28 = vsel %vm485_vm0, %v3466_v4, 0  ;;  %v1139_v4 = vsel %vm433_vm1, %v1137_v5, %v1138_v36  ;;  %v2624_v5 = vpack.c.bf16 %v4984_v26, %v4980_v30  ;;  %v3476_v30 = vld [vmem:[%s5426_s3 + $0x14] sm:$0x3] }
  0x8f   : > { %v1224_v36 = vrot.slane %v411_v7, 2 }
  0x90   : > { %v5193_v56 = vsel %vm634_vm3, %v2513_v42, %v2514_v18  ;;  %v2623_v42 = vpack.c.bf16 %v4977_v51, %v4953_v52  ;;  %v1223_v18 = vrot.slane %v5123_v41, 2  ;;  %v1348_v52 = vsel %vm485_vm0, %v3471_v45, 0  ;;  %v5476_v41 = vld [vmem:[#allocation3_spill] sm:$0xff] }
  0x91   : > { %v2625_v51 = vpack.c.bf16 %v5025_v31, %v4987_v35  ;;  %v2723_v31 = vpack.c.bf16 %v5077_v63, %v5039_v25  ;;  %v1331_v7 = vpack.c.bf16 %v5476_v41, %v4479_v37  ;;  %v2725_v25 = vpack.c.bf16 %v5120_v12, %v5091_v34  ;;  %v3546_v37 = vld [vmem:[%s5426_s3 + $0x30] sm:$0x3]  ;;  %v5477_v63 = vld [vmem:[#allocation17_spill] sm:$0xff] }
  0x92   : > { %v1225_v26 = vsel %vm634_vm3, %v1223_v18, %v1224_v36  ;;  %v5478_v34 = vpack.c.bf16 %v4876_v15, %v4873_v29  ;;  %v5480_v12 = vld [vmem:[#allocation9_spill] sm:$0xff]  ;;  %v2823_v29 = vpack.c.bf16 %v5193_v56, %v5167_v1  ;;  %v5485_v1 = vpack.c.bf16 %v4599_v54, %v4904_v48 }
  0x93   : > { %v1229_v35 = vpack.c.bf16 %v1225_v26, %v5028_v9  ;;  %v1490_v9 = vsel %vm485_vm0, %v3476_v30, 0  ;;  %v4251_v54 = vld [vmem:[%s5426_s3 + $0x1a] sm:$0x3] }
  0x95   : > { %3902 = vmatmul.mubr.msk.bf16.vlgmr.msra.gmra.mrb[0].mxu0 %vm472_vm2, %v5171_v27  ;;  %3772 = vmatmul.mubr.msk.bf16.vlgmr.msra.gmra.mrb[0].mxu1 %vm472_vm2, %v5474_v6  ;;  %v5204_v6 = vpack.c.bf16 %v4891_v49, %v5193_v56 }
  0x96   : > { %3910 = vmatpush3.bf16.msra.mxu0 %v2640_v44  ;;  %3780 = vmatpush3.bf16.msra.mxu1 %v1234_v28  ;;  %v1143_v44 = vpack.c.bf16 %v1139_v4, %v4740_v62  ;;  %v2740_v62 = vsel %vm485_vm0, %v3536_v14, 0  ;;  %v5481_v28 = vld [vmem:[#allocation8_spill] sm:$0xff]  ;;  %v5483_v4 = vld [vmem:[#allocation19_spill] sm:$0xff] }
  0x97   : > { %3905 = vmatprep.mubr.msk.bf16.mxu0 %vm472_vm2, %v5180_v38  ;;  %3775 = vmatprep.mubr.msk.bf16.mxu1 %vm472_vm2, %v5475_v8  ;;  %v3551_v8 = vld [vmem:[%s5426_s3 + $0x32] sm:$0x3] }
  0x98   : > { %4202 = vmatprep.subr.msk.bf16.mxu0 %vm485_vm0, %v3536_v14  ;;  %4188 = vmatprep.subr.msk.bf16.mxu1 %vm485_vm0, %v3471_v45  ;;  %v5482_v14 = vpack.c.bf16 %v5480_v12, %v5481_v28  ;;  %v2822_v45 = vpack.c.bf16 %v5164_v16, %v5158_v58  ;;  %v3486_v58 = vld [vmem:[%s5426_s3 + $0x18] sm:$0x3]  ;;  %v5484_v16 = vpack.c.bf16 %v4894_v47, %v4891_v49 }
  0x99   : > { %v1710_v56 = vsel %vm485_vm0, %v3486_v58, 0  ;;  %v5486_v49 = vld [vmem:[#allocation5_spill] sm:$0xff] }
  0x9a   : > { %v1693_v48 = vpack.c.bf16 %v5486_v49, %v5476_v41 }
  0x9d   : > { %3906 = vmatmul.mubr.msk.bf16.gmra.mrb[4].mxu0 %vm472_vm2, %v5204_v6  ;;  %3776 = vmatmul.mubr.msk.bf16.gmra.mrb[4].mxu1 %vm472_vm2, %v1143_v44  ;;  %v5490_v44 = vld [vmem:[#allocation7_spill] sm:$0xff] }
  0x9e   : > { %3911 = vmatprep.mubr.msk.bf16.mxu0 %vm472_vm2, %v2623_v42  ;;  %3781 = vmatprep.mubr.msk.bf16.mxu1 %vm472_vm2, %v4752_v20  ;;  %v3541_v20 = vld [vmem:[%s5426_s3 + $0x2e] sm:$0x3] }
  0xa5   : > { %3912 = vmatmul.mubr.msk.bf16.vlgmr.msra.gmra.mrb[0].mxu0 %vm472_vm2, %v2624_v5  ;;  %3782 = vmatmul.mubr.msk.bf16.vlgmr.msra.gmra.mrb[0].mxu1 %vm472_vm2, %v4770_v33  ;;  %v2626_v33 = vpack.c.bf16 %v4857_v13, %v4844_v22  ;;  %v2838_v22 = vsel %vm485_vm0, %v3541_v20, 0  ;;  %v5496_v5 = vpack.c.bf16 %v4635_v43, %v4631_v39 }
  0xa6   : > { %3920 = vmatpush3.bf16.msra.mxu0 %v2740_v62  ;;  %3790 = vmatpush3.bf16.msra.mxu1 %v1348_v52 }
  0xa7   : > { %3915 = vmatprep.mubr.msk.bf16.mxu0 %vm472_vm2, %v2625_v51  ;;  %3785 = vmatprep.mubr.msk.bf16.mxu1 %vm472_vm2, %v4802_v21  ;;  %v2724_v21 = vpack.c.bf16 %v5088_v57, %v5080_v61  ;;  %v3481_v57 = vld [vmem:[%s5426_s3 + $0x16] sm:$0x3]  ;;  %v5479_v61 = vld [vmem:[#allocation18_spill] sm:$0xff] }
  0xa8   : > { %4203 = vmatprep.subr.msk.bf16.mxu0 %vm485_vm0, %v3541_v20  ;;  %4189 = vmatprep.subr.msk.bf16.mxu1 %vm485_vm0, %v3476_v30 }
  0xad   : > { %3916 = vmatmul.mubr.msk.bf16.gmra.mrb[4].mxu0 %vm472_vm2, %v2626_v33  ;;  %3786 = vmatmul.mubr.msk.bf16.gmra.mrb[4].mxu1 %vm472_vm2, %v1229_v35 }
  0xae   : > { %3921 = vmatprep.mubr.msk.bf16.mxu0 %vm472_vm2, %v2723_v31  ;;  %3791 = vmatprep.mubr.msk.bf16.mxu1 %vm472_vm2, %v1331_v7 }
  0xb5   : > { %3922 = vmatmul.mubr.msk.bf16.vlgmr.msra.gmra.mrb[0].mxu0 %vm472_vm2, %v2724_v21  ;;  %3792 = vmatmul.mubr.msk.bf16.vlgmr.msra.gmra.mrb[0].mxu1 %vm472_vm2, %v4707_v11  ;;  %v2821_v11 = vpack.c.bf16 %v5155_v3, %v5131_v46  ;;  %v2920_v46 = vsel %vm485_vm0, %v3546_v37, 0  ;;  %v1616_v3 = vsel %vm485_vm0, %v3481_v57, 0 }
  0xb6   : > { %3930 = vmatpush3.bf16.msra.mxu0 %v2838_v22  ;;  %3800 = vmatpush3.bf16.msra.mxu1 %v1490_v9 }
  0xb7   : > { %3925 = vmatprep.mubr.msk.bf16.mxu0 %vm472_vm2, %v2725_v25  ;;  %3795 = vmatprep.mubr.msk.bf16.mxu1 %vm472_vm2, %v5477_v63 }
  0xb8   : > { %4204 = vmatprep.subr.msk.bf16.mxu0 %vm485_vm0, %v3546_v37  ;;  %4190 = vmatprep.subr.msk.bf16.mxu1 %vm485_vm0, %v3481_v57 }
  0xbd   : > { %3926 = vmatmul.mubr.msk.bf16.gmra.mrb[4].mxu0 %vm472_vm2, %v5478_v34  ;;  %3796 = vmatmul.mubr.msk.bf16.gmra.mrb[4].mxu1 %vm472_vm2, %v5479_v61 }
  0xbe   : > { %3931 = vmatprep.mubr.msk.bf16.mxu0 %vm472_vm2, %v2821_v11  ;;  %3801 = vmatprep.mubr.msk.bf16.mxu1 %vm472_vm2, %v5482_v14 }
  0xc5   : > { %3932 = vmatmul.mubr.msk.bf16.vlgmr.msra.gmra.mrb[0].mxu0 %vm472_vm2, %v2822_v45  ;;  %3802 = vmatmul.mubr.msk.bf16.vlgmr.msra.gmra.mrb[0].mxu1 %vm472_vm2, %v5483_v4 }
  0xc6   : > { %3940 = vmatpush3.bf16.msra.mxu0 %v2920_v46  ;;  %3810 = vmatpush3.bf16.msra.mxu1 %v1616_v3 }
  0xc7   : > { %3935 = vmatprep.mubr.msk.bf16.mxu0 %vm472_vm2, %v2823_v29  ;;  %3805 = vmatprep.mubr.msk.bf16.mxu1 %vm472_vm2, %v4837_v59  ;;  %v3008_v59 = vsel %vm485_vm0, %v3551_v8, 0 }
  0xc8   : > { %4205 = vmatprep.subr.msk.bf16.mxu0 %vm485_vm0, %v3551_v8  ;;  %4191 = vmatprep.subr.msk.bf16.mxu1 %vm485_vm0, %v3486_v58 }
  0xcd   : > { %3936 = vmatmul.mubr.msk.bf16.gmra.mrb[4].mxu0 %vm472_vm2, %v5484_v16  ;;  %3806 = vmatmul.mubr.msk.bf16.gmra.mrb[4].mxu1 %vm472_vm2, %v4852_v60  ;;  %v3556_v60 = vld [vmem:[%s5426_s3 + $0x34] sm:$0x3] }
  0xce   : > { %3941 = vmatprep.mubr.msk.bf16.mxu0 %vm472_vm2, %v4999_v19  ;;  %3811 = vmatprep.mubr.msk.bf16.mxu1 %vm472_vm2, %v5485_v1  ;;  %v5488_v19 = vld [vmem:[#allocation10_spill] sm:$0xff] }
  0xd5   : > { %3942 = vmatmul.mubr.msk.bf16.vlgmr.msra.gmra.mrb[0].mxu0 %vm472_vm2, %v5006_v50  ;;  %3812 = vmatmul.mubr.msk.bf16.vlgmr.msra.gmra.mrb[0].mxu1 %vm472_vm2, %v4910_v23  ;;  %v5487_v23 = vpack.c.bf16 %v4886_v32, %v4857_v13  ;;  %v5489_v50 = vld [vmem:[#allocation11_spill] sm:$0xff]  ;;  %v5491_v13 = vld [vmem:[#allocation6_spill] sm:$0xff] }
  0xd6   : > { %3950 = vmatpush3.bf16.msra.mxu0 %v3008_v59  ;;  %3820 = vmatpush3.bf16.msra.mxu1 %v1710_v56  ;;  %v5492_v32 = vpack.c.bf16 %v5490_v44, %v5491_v13 }
  0xd7   : > { %3945 = vmatprep.mubr.msk.bf16.mxu0 %vm472_vm2, %v5048_v2  ;;  %3815 = vmatprep.mubr.msk.bf16.mxu1 %vm472_vm2, %v4923_v24  ;;  %v3094_v24 = vsel %vm485_vm0, %v3556_v60, 0  ;;  %v1695_v2 = vpack.c.bf16 %v5489_v50, %v5488_v19 }
  0xd8   : > { %4206 = vmatprep.subr.msk.bf16.mxu0 %vm485_vm0, %v3556_v60  ;;  %4193 = vmatprep.subr.msk.bf16.mxu1 %vm485_vm0, %v4251_v54 }
  0xdd   : > { %3946 = vmatmul.mubr.msk.bf16.gmra.mrb[4].mxu0 %vm472_vm2, %v5487_v23  ;;  %3816 = vmatmul.mubr.msk.bf16.gmra.mrb[4].mxu1 %vm472_vm2, %v4931_v0  ;;  %v5493_v0 = vld [vmem:[#allocation2_spill] sm:$0xff] }
  0xde   : > { %3951 = vmatprep.mubr.msk.bf16.mxu0 %vm472_vm2, %v5096_v17  ;;  %3821 = vmatprep.mubr.msk.bf16.mxu1 %vm472_vm2, %v1693_v48  ;;  %v5494_v17 = vld [vmem:[#allocation20_spill] sm:$0xff] }
  0xdf   : > { %v1795_v42 = vpack.c.bf16 %v4833_v10, %v5494_v17  ;;  %v5497_v10 = vld [vmem:[#allocation16_spill] sm:$0xff] }
  0xe5   : > { %3952 = vmatmul.mubr.msk.bf16.vlgmr.msra.gmra.mrb[0].mxu0 %vm472_vm2, %v5104_v40  ;;  %3822 = vmatmul.mubr.msk.bf16.vlgmr.msra.gmra.mrb[0].mxu1 %vm472_vm2, %v5492_v32  ;;  %v5495_v40 = vpack.c.bf16 %v4964_v55, %v4876_v15  ;;  %v5498_v15 = vld [vmem:[#allocation15_spill] sm:$0xff] }
  0xe6   : > { %3960 = vmatpush3.bf16.msra.mxu0 %v3094_v24  ;;  %3970 = vmatpush3.bf16.msra.mxu1 %v5493_v0  ;;  %v5499_v55 = vpack.c.bf16 %v5497_v10, %v5498_v15 }
  0xe7   : > { %3955 = vmatprep.mubr.msk.bf16.mxu0 %vm472_vm2, %v5137_v53  ;;  %3825 = vmatprep.mubr.msk.bf16.mxu1 %vm472_vm2, %v1695_v2  ;;  %v5500_v53 = vld [vmem:[#allocation21_spill] sm:$0xff] }
  0xe8   : > { %v5501_v39 = vpack.c.bf16 %v5500_v53, %v4894_v47 }
  0xed   : > { %3956 = vmatmul.mubr.msk.bf16.gmra.mrb[4].mxu0 %vm472_vm2, %v5495_v40  ;;  %3826 = vmatmul.mubr.msk.bf16.gmra.mrb[4].mxu1 %vm472_vm2, %v5496_v5 }
  0xee   : > { %3961 = vmatprep.mubr.msk.bf16.mxu0 %vm472_vm2, %v5171_v27  ;;  %3835 = vmatprep.mubr.msk.bf16.mxu1 %vm472_vm2, %v1795_v42 }
  0xf5   : > { %3962 = vmatmul.mubr.msk.bf16.vlgmr.msra.gmra.mrb[0].mxu0 %vm472_vm2, %v5180_v38 }
  0xf6   : > { %3965 = vmatprep.mubr.msk.bf16.mxu0 %vm472_vm2, %v5204_v6  ;;  %v3561_v6 = vld [vmem:[%s5427_s4] ss:$0 sm:$0xff] }
  0xf9   : > { %3836 = vmatmul.mubr.msk.bf16.vlgmr.msra.gmra.mrb[4].mxu1 %vm472_vm2, %v5499_v55 }
  0xfd   : > { %3966 = vmatmul.mubr.msk.bf16.gmra.mrb[4].mxu0 %vm472_vm2, %v5501_v39 }
 0x1b8   : > { %v3823_v43 = vpop.f32.mrb[0].mxu1 }
 0x1b9   : > { %v1746_v27 = vpop.f32.mrb[1].mxu1 }
 0x1ba   : > { %v3824_v18 = vpop.f32.mrb[2].mxu1 }
 0x1bb   : > { %v1749_v36 = vpop.f32.mrb[3].mxu1 }
 0x1c8   : > { %v3963_v38 = vpop.f32.mrb[0].mxu0 }
 0x1c9   : > { %v3971_v47 = vadd.f32 %v3963_v38, %v3823_v43  ;;  %v3130_v62 = vpop.f32.mrb[1].mxu0 }
 0x1ca   : > { %v3972_v52 = vadd.f32 %v3130_v62, %v1746_v27  ;;  %v3964_v51 = vpop.f32.mrb[2].mxu0 }
 0x1cb   : > { %v3178_v20 = vadd.f32 %v3971_v47, %v3561_v6  ;;  %v3973_v30 = vadd.f32 %v3964_v51, %v3824_v18  ;;  %v3133_v26 = vpop.f32.mrb[3].mxu0 }
 0x1cc   : > { %v3176_v33 = vadd.f32 %v3972_v52, %v3561_v6  ;;  %v3974_v35 = vadd.f32 %v3133_v26, %v1749_v36  ;;  %v3837_v31 = vpop.f32.mrb[4].mxu1 }
 0x1cd   : > { %3186 = vst [vmem:[%s5392_s8 + $0x10] sm:$0xff] %v3178_v20  ;;  %v3179_v41 = vadd.f32 %v3973_v30, %v3561_v6  ;;  %v1862_v7 = vpop.f32.mrb[5].mxu1  ;;  %v3207_v61 = vmul.f32 %v3178_v20, %v3178_v20 }
 0x1ce   : > { %3184 = vst [vmem:[%s5392_s8] sm:$0xff] %v3176_v33  ;;  %v3177_v21 = vadd.f32 %v3974_v35, %v3561_v6  ;;  %v3838_v22 = vpop.f32.mrb[6].mxu1  ;;  %v3205_v25 = vmul.f32 %v3176_v33, %v3176_v33 }
 0x1cf   : > { %3187 = vst [vmem:[%s5392_s8 + $0x18] sm:$0xff] %v3179_v41  ;;  %v1865_v9 = vpop.f32.mrb[7].mxu1  ;;  %v3208_v46 = vmul.f32 %v3179_v41, %v3179_v41 }
 0x1d0   : > { %3185 = vst [vmem:[%s5392_s8 + $0x8] sm:$0xff] %v3177_v21  ;;  %v3192_v37 = vadd.f32 %v3177_v21, %v3176_v33  ;;  %v3206_v57 = vmul.f32 %v3177_v21, %v3177_v21  ;;  %v3967_v63 = vpop.f32.mrb[4].mxu0 }
 0x1d1   : > { %v3975_v11 = vadd.f32 %v3967_v63, %v3837_v31  ;;  %v3146_v34 = vpop.f32.mrb[5].mxu0 }
 0x1d2   : > { %v3193_v12 = vadd.f32 %v3192_v37, %v3178_v20  ;;  %v3213_v28 = vadd.f32 %v3206_v57, %v3205_v25  ;;  %v3976_v14 = vadd.f32 %v3146_v34, %v1862_v7  ;;  %v3968_v45 = vpop.f32.mrb[6].mxu0 }
 0x1d3   : > { %v3182_v3 = vadd.f32 %v3975_v11, %v3561_v6  ;;  %v3977_v29 = vadd.f32 %v3968_v45, %v3838_v22  ;;  %v3149_v4 = vpop.f32.mrb[7].mxu0 }
 0x1d4   : > { %v3214_v8 = vadd.f32 %v3213_v28, %v3207_v61  ;;  %v3180_v58 = vadd.f32 %v3976_v14, %v3561_v6  ;;  %v3194_v16 = vadd.f32 %v3193_v12, %v3179_v41  ;;  %v3978_v1 = vadd.f32 %v3149_v4, %v1865_v9 }
 0x1d5   : > { %3190 = vst [vmem:[%s5392_s8 + $0x30] sm:$0xff] %v3182_v3  ;;  %v3183_v59 = vadd.f32 %v3977_v29, %v3561_v6  ;;  %v3211_v19 = vmul.f32 %v3182_v3, %v3182_v3 }
 0x1d6   : > { %3188 = vst [vmem:[%s5392_s8 + $0x20] sm:$0xff] %v3180_v58  ;;  %v3195_v56 = vadd.f32 %v3194_v16, %v3180_v58  ;;  %v3209_v60 = vmul.f32 %v3180_v58, %v3180_v58  ;;  %v3215_v54 = vadd.f32 %v3214_v8, %v3208_v46  ;;  %v3181_v49 = vadd.f32 %v3978_v1, %v3561_v6 }
 0x1d7   : > { %3191 = vst [vmem:[%s5392_s8 + $0x38] sm:$0xff] %v3183_v59  ;;  %v3212_v44 = vmul.f32 %v3183_v59, %v3183_v59 }
 0x1d8   : > { %v3216_v48 = vadd.f32 %v3215_v54, %v3209_v60  ;;  %3189 = vst [vmem:[%s5392_s8 + $0x28] sm:$0xff] %v3181_v49  ;;  %v3196_v23 = vadd.f32 %v3195_v56, %v3181_v49  ;;  %v3210_v24 = vmul.f32 %v3181_v49, %v3181_v49 }
 0x1da   : > { %v3197_v50 = vadd.f32 %v3196_v23, %v3182_v3  ;;  %v3217_v2 = vadd.f32 %v3216_v48, %v3210_v24 }
 0x1dc   : > { %v3198_v13 = vadd.f32 %v3197_v50, %v3183_v59  ;;  %v3218_v32 = vadd.f32 %v3217_v2, %v3211_v19 }
 0x1de   : > { %v3199_v0 = vrot.slane %v3198_v13, 4  ;;  %v3219_v17 = vadd.f32 %v3218_v32, %v3212_v44 }
 0x1e0   : > { %v3200_v42 = vadd.f32 %v3199_v0, %v3198_v13  ;;  %v3220_v40 = vrot.slane %v3219_v17, 4 }
 0x1e2   : > { %v3201_v5 = vrot.slane %v3200_v42, 2  ;;  %v3221_v10 = vadd.f32 %v3220_v40, %v3219_v17 }
 0x1e4   : > { %v3202_v15 = vadd.f32 %v3201_v5, %v3200_v42  ;;  %v3222_v55 = vrot.slane %v3221_v10, 2 }
 0x1e6   : > { %v3203_v53 = vrot.slane %v3202_v15, 1  ;;  %v3223_v39 = vadd.f32 %v3222_v55, %v3221_v10 }
 0x1e8   : > { %v3224_v43 = vrot.slane %v3223_v39, 1  ;;  %v3204_v27 = vadd.f32 %v3203_v53, %v3202_v15 }
 0x1ea   : > { %v3225_v18 = vadd.f32 %v3224_v43, %v3223_v39 }
 0x1ec   : > { %v3227_v36 = vsel %vm3226_vm4, %v3204_v27, %v3225_v18 }
 0x1ed   : > { %v3228_v38 = vsel %vm485_vm0, %v3227_v36, 0.0 }
 0x1ee   : > { %3229 = vst [vmem:[%s390_s28] sm:$0xff] %v3228_v38 }
 0x1ef PF: > { %s17_s25 = sadd.s32 1, %s4290_s25   ;;  %s5502_s21 = smov %s4282_s23 }
 0x1f0   : > { %p14_p10 = scmp.ge.s32.totalorder %s17_s25, 18   ;;  %s5503_s22 = smov %s4286_s24 }
 0x1f1   : > { %s5504_s23 = smov %s5507_s26  ;;  %s5505_s24 = smov %s5511_s27 }
 0x1f2   :  { %16 = sbr.rel (!%p14_p10) target bundleno = 3 (0x3), region = 114 }

</bundles_post_ra>
